<compile_context>
chip_gen: v7x
topology: tpu7x:2x2x1
jax: 0.10.0
libtpu: 0.0.40
codegen_flags: <defaults>
</compile_context>

<pallas_src>
import jax
import jax.numpy as jnp
from jax.experimental import pallas as pl
from jax.experimental.pallas import tpu as pltpu

F32 = jnp.float32
BF16 = jnp.bfloat16
L_IN = 12          # input length implied by fc1_scale1 = Linear(64*3, 128)
L_PAD = L_IN + 4   # input padded by 2 on each side (max conv padding)

C1A, C2A = 32, 64      # scale-1 channel counts
C1B, C2B = 64, 128     # scale-2 channel counts
W1A, W1B = L_IN * C1A, L_IN * C1B          # 384, 768  conv1 slab widths
W2A, W2B = 6 * C2A, 6 * C2B                # 384, 768  conv2 slab widths


# ----------------------------------------------------------------------------
# Pallas kernel: full forward for one batch tile of BT samples.
# ----------------------------------------------------------------------------
def mscnn_kernel(x_ref,
                 t1_ref, b1_ref,
                 t2a_ref, b2a_ref, tfa_ref, bfa_ref,
                 t2b_ref, b2b_ref, tfb_ref, bfb_ref,
                 wo_ref, bo_ref,
                 out_ref):
    x = x_ref[...].astype(BF16)                                   # (BT, 16)

    # conv1 of BOTH scales fused into one K=16 matmul (they share the operand).
    h = jnp.dot(x, t1_ref[...], preferred_element_type=F32) + b1_ref[...]
    h = jnp.maximum(h, 0.0)                                       # (BT, 1152)
    h1a = h[:, :W1A]          # scale 1: 12 positions x 32 ch (128-aligned cut)
    h1b = h[:, W1A:]          # scale 2: 12 positions x 64 ch

    def scale_tail(h1, c1, c2, t2, b2, tf, bf):
        w1 = h1.shape[1]                                          # 12*c1
        # MaxPool1d(2,2): full-width max against a left-rotate by c1 lanes
        # (pltpu.roll follows jnp.roll; positive shift w1-c1 == rotate left by
        # c1).  Pooled position p lives at lane 2*p*c1 + ch; odd-position lanes
        # hold garbage that the zero rows of t2 annihilate.
        m1 = jnp.maximum(h1, pltpu.roll(h1, shift=w1 - c1, axis=1))
        h2 = jnp.dot(m1.astype(BF16), t2, preferred_element_type=F32) + b2
        h2 = jnp.maximum(h2, 0.0)                                 # (BT, 6*c2)
        w2 = h2.shape[1]
        m2 = jnp.maximum(h2, pltpu.roll(h2, shift=w2 - c2, axis=1))
        # fc1 fused into one matmul (weight permuted to this lane layout).
        f = jnp.dot(m2.astype(BF16), tf, preferred_element_type=F32) + bf
        return jnp.maximum(f, 0.0)                                # (BT, 128)

    f1 = scale_tail(h1a, C1A, C2A, t2a_ref[...], b2a_ref[...],
                    tfa_ref[...], bfa_ref[...])
    f2 = scale_tail(h1b, C1B, C2B, t2b_ref[...], b2b_ref[...],
                    tfb_ref[...], bfb_ref[...])

    # fc2 head: concat(f1, f2) @ wo  ==  f1 @ wo[:128] + f2 @ wo[128:].
    wo = wo_ref[...]                                              # (256, 128)
    y = (jnp.dot(f1.astype(BF16), wo[:128, :], preferred_element_type=F32)
         + jnp.dot(f2.astype(BF16), wo[128:, :], preferred_element_type=F32)
         + bo_ref[...])                                           # (BT, 128)
    out_ref[...] = y          # lane-dense slab; only column 0 is real


# ----------------------------------------------------------------------------
# Wrapper: structured-weight construction + pallas_call
# ----------------------------------------------------------------------------
def _toeplitz_conv1(w):
    """Conv1d(1->Cout, k, pad=k//2) over all L_IN positions as one matmul.
    Matmul input is the pad-2 buffer (BT, 16); output lane l*Cout + c is conv
    output position l, channel c.  w: PyTorch (Cout, 1, K)."""
    cout, _, k = w.shape
    off = 2 - k // 2                 # where tap 0 lands in the pad-2 buffer
    t = jnp.zeros((L_PAD, L_IN * cout), F32)
    for l in range(L_IN):
        for tap in range(k):
            t = t.at[l + tap + off, l * cout:(l + 1) * cout].set(w[:, 0, tap])
    return t


def _banded_conv2(w, n_out=6):
    """Conv1d(Cin->Cout, k, pad=k//2) on the pooled full-width slab as one
    matmul.  Input lane 2*p*Cin + cin holds pooled position p (odd-position
    lanes are garbage -> zero rows).  Output lane q*Cout + cout is conv output
    position q.  w: PyTorch (Cout, Cin, K)."""
    cout, cin, k = w.shape
    pad = k // 2
    t = jnp.zeros((2 * n_out * cin, n_out * cout), F32)
    for q in range(n_out):
        for tap in range(k):
            p = q + tap - pad
            if 0 <= p < n_out:
                t = t.at[2 * p * cin:(2 * p + 1) * cin,
                         q * cout:(q + 1) * cout].set(w[:, :, tap].T)
    return t


def _fc1_weight(w, cin, n_pos=3):
    """PyTorch Linear weight (128, cin*n_pos) (channel-major flatten index
    c*n_pos + p) permuted to consume the pooled full-width lane layout
    2*p*cin + c (odd-position lanes -> zero rows)."""
    out_f = w.shape[0]
    wr = w.reshape(out_f, cin, n_pos)
    t = jnp.zeros((2 * n_pos * cin, out_f), F32)
    for p in range(n_pos):
        t = t.at[2 * p * cin:(2 * p + 1) * cin, :].set(wr[:, :, p].T)
    return t


def _round_up(n, m):
    return ((n + m - 1) // m) * m


def _full_spec(shape):
    nd = len(shape)
    return pl.BlockSpec(shape, lambda g, _nd=nd: (0,) * _nd)


def _choose_bt(B, b_tile):
    """Batch tile: large to amortize per-grid-step overhead on single-TC
    v5e/v6e, but keep grid >= 2 whenever the batch allows so the "parallel"
    batch axis actually shards across v7x's two TensorCores."""
    bt = min(b_tile, _round_up(B, 8))
    if B > bt:
        return bt                           # already >= 2 grid steps
    if B >= 16:
        return _round_up((B + 1) // 2, 8)   # split into two tiles (megacore)
    return bt


def mscnn_forward(x_ncw, pt_params, b_tile=512):
    """x_ncw: (B, 1, 12) float32 (PyTorch NCW). Returns (B, 1) float32."""
    (c1a_w, c1a_b, c2a_w, c2a_b, f1a_w, f1a_b,
     c1b_w, c1b_b, c2b_w, c2b_b, f1b_w, f1b_b,
     fc2_w, fc2_b) = pt_params

    B = x_ncw.shape[0]
    assert x_ncw.shape[1] == 1 and x_ncw.shape[2] == L_IN

    bt = _choose_bt(B, b_tile)
    bp = _round_up(B, bt)
    grid = (bp // bt,)

    # Input: drop the size-1 channel dim, pad batch to bp, pad length by 2 on
    # each side -> (bp, 16), lane-dense.
    x2 = x_ncw.reshape(B, L_IN).astype(F32)
    x_pad = jnp.pad(x2, ((0, bp - B), (2, 2)))

    # Structured weights (built once in plain JAX); matmul operands in bf16,
    # biases in f32.
    t1a = _toeplitz_conv1(c1a_w.astype(F32))                      # (16, 384)
    t1b = _toeplitz_conv1(c1b_w.astype(F32))                      # (16, 768)
    t1 = jnp.concatenate([t1a, t1b], axis=1).astype(BF16)         # (16, 1152)
    b1 = jnp.concatenate(
        [jnp.tile(c1a_b.reshape(1, C1A).astype(F32), (1, L_IN)),
         jnp.tile(c1b_b.reshape(1, C1B).astype(F32), (1, L_IN))], axis=1)

    t2a = _banded_conv2(c2a_w.astype(F32)).astype(BF16)           # (384, 384)
    b2a = jnp.tile(c2a_b.reshape(1, C2A).astype(F32), (1, 6))     # (1, 384)
    tfa = _fc1_weight(f1a_w.astype(F32), C2A).astype(BF16)        # (384, 128)
    bfa = f1a_b.reshape(1, 128).astype(F32)

    t2b = _banded_conv2(c2b_w.astype(F32)).astype(BF16)           # (768, 768)
    b2b = jnp.tile(c2b_b.reshape(1, C2B).astype(F32), (1, 6))     # (1, 768)
    tfb = _fc1_weight(f1b_w.astype(F32), C2B).astype(BF16)        # (768, 128)
    bfb = f1b_b.reshape(1, 128).astype(F32)

    # Head: lane-dense (256, 128) weight; only column 0 is real (unmasked
    # 128-lane store beats a masked 1-lane store; revisit only for B ~ 1e6).
    wo = (jnp.zeros((256, 128), F32)
          .at[:, 0].set(fc2_w[0].astype(F32))).astype(BF16)
    bo = jnp.broadcast_to(fc2_b.reshape(1, 1).astype(F32), (1, 128))

    weights = (t1, b1, t2a, b2a, tfa, bfa, t2b, b2b, tfb, bfb, wo, bo)

    # Weight BlockSpecs are constant-index; the default double buffer only
    # wastes ~2 MiB (bf16 weights ~1.9 MiB total), so we skip Buffered(1).
    in_specs = [pl.BlockSpec((bt, L_PAD), lambda g: (g, 0))]
    in_specs += [_full_spec(w.shape) for w in weights]

    out = pl.pallas_call(
        mscnn_kernel,
        out_shape=jax.ShapeDtypeStruct((bp, 128), F32),
        grid_spec=pltpu.PrefetchScalarGridSpec(
            num_scalar_prefetch=0,
            grid=grid,
            in_specs=in_specs,
            out_specs=pl.BlockSpec((bt, 128), lambda g: (g, 0)),
        ),
        compiler_params=pltpu.CompilerParams(
            dimension_semantics=("parallel",),   # batch tiles shard across TCs
            vmem_limit_bytes=48 * 1024 * 1024,   # safe on v5e/v6e/v7x
        ),
    )(x_pad, *weights)
    return out[:B, :1]


# ----------------------------------------------------------------------------
# Pure-JAX reference (mirrors the PyTorch forward) for validation.
# ----------------------------------------------------------------------------
def mscnn_reference(x, pt_params):
    (c1a_w, c1a_b, c2a_w, c2a_b, f1a_w, f1a_b,
     c1b_w, c1b_b, c2b_w, c2b_b, f1b_w, f1b_b,
     fc2_w, fc2_b) = pt_params

    def conv1d(v, w, b, pad):
        y = jax.lax.conv_general_dilated(
            v, w, window_strides=(1,), padding=[(pad, pad)],
            dimension_numbers=("NCH", "OIH", "NCH"))
        return y + b[None, :, None]

    def pool(v):
        b_, c, l = v.shape
        return jnp.max(v.reshape(b_, c, l // 2, 2), axis=-1)

    relu = lambda v: jnp.maximum(v, 0.0)

    s1 = relu(conv1d(x, c1a_w, c1a_b, 1))
    s1 = pool(s1)
    s1 = relu(conv1d(s1, c2a_w, c2a_b, 1))
    s1 = pool(s1)
    s1 = s1.reshape(s1.shape[0], -1)
    s1 = relu(s1 @ f1a_w.T + f1a_b)

    s2 = relu(conv1d(x, c1b_w, c1b_b, 2))
    s2 = pool(s2)
    s2 = relu(conv1d(s2, c2b_w, c2b_b, 2))
    s2 = pool(s2)
    s2 = s2.reshape(s2.shape[0], -1)
    s2 = relu(s2 @ f1b_w.T + f1b_b)

    comb = jnp.concatenate([s1, s2], axis=1)
    return comb @ fc2_w.T + fc2_b


def init_params(key):
    shapes = [
        (32, 1, 3), (32,),        # conv1_scale1
        (64, 32, 3), (64,),       # conv2_scale1
        (128, 192), (128,),       # fc1_scale1
        (64, 1, 5), (64,),        # conv1_scale2
        (128, 64, 5), (128,),     # conv2_scale2
        (128, 384), (128,),       # fc1_scale2
        (1, 256), (1,),           # fc2
    ]
    keys = jax.random.split(key, len(shapes))
    return tuple(0.1 * jax.random.normal(k, s, dtype=F32)
                 for k, s in zip(keys, shapes))


if __name__ == "__main__":
    key = jax.random.PRNGKey(0)
    k_x, k_p = jax.random.split(key)
    B = 128                                        # small batch, 2 grid tiles
    x = jax.random.normal(k_x, (B, 1, L_IN), dtype=F32)
    params = init_params(k_p)

    y = jax.block_until_ready(mscnn_forward(x, params))
    y_ref = jax.block_until_ready(mscnn_reference(x, params))

    assert y.shape == (B, 1)
    err = float(jnp.max(jnp.abs(y - y_ref)))
    # bf16 matmul operands with f32 accumulation -> loosened tolerance.
    assert jnp.allclose(y, y_ref, rtol=3e-2, atol=3e-2), err

    print("KERNEL_OK")
</pallas_src>

<mosaic_0001>
module attributes {stable_mosaic.version = 11 : i64} {
  func.func @mscnn_kernel(%arg0: i32, %arg1: memref<64x16xf32, #tpu.memory_space<vmem>>, %arg2: memref<16x1152xbf16, #tpu.memory_space<vmem>>, %arg3: memref<1x1152xf32, #tpu.memory_space<vmem>>, %arg4: memref<384x384xbf16, #tpu.memory_space<vmem>>, %arg5: memref<1x384xf32, #tpu.memory_space<vmem>>, %arg6: memref<384x128xbf16, #tpu.memory_space<vmem>>, %arg7: memref<1x128xf32, #tpu.memory_space<vmem>>, %arg8: memref<768x768xbf16, #tpu.memory_space<vmem>>, %arg9: memref<1x768xf32, #tpu.memory_space<vmem>>, %arg10: memref<768x128xbf16, #tpu.memory_space<vmem>>, %arg11: memref<1x128xf32, #tpu.memory_space<vmem>>, %arg12: memref<256x128xbf16, #tpu.memory_space<vmem>>, %arg13: memref<1x128xf32, #tpu.memory_space<vmem>>, %arg14: memref<64x128xf32, #tpu.memory_space<vmem>>) attributes {dimension_semantics = [#tpu.dimension_semantics<parallel>], iteration_bounds = array<i64: 2>, scalar_prefetch = 0 : i64, scratch_operands = 0 : i64, tpu.core_type = #tpu.core_type<tc>, window_params = [{transform_indices = @transform_0, window_bounds = array<i64: 64, 16>}, {pipeline_mode = #tpu.pipeline_mode<synchronous>, transform_indices = @transform_1, window_bounds = array<i64: 16, 1152>}, {pipeline_mode = #tpu.pipeline_mode<synchronous>, transform_indices = @transform_2, window_bounds = array<i64: 1, 1152>}, {pipeline_mode = #tpu.pipeline_mode<synchronous>, transform_indices = @transform_3, window_bounds = array<i64: 384, 384>}, {pipeline_mode = #tpu.pipeline_mode<synchronous>, transform_indices = @transform_4, window_bounds = array<i64: 1, 384>}, {pipeline_mode = #tpu.pipeline_mode<synchronous>, transform_indices = @transform_5, window_bounds = array<i64: 384, 128>}, {pipeline_mode = #tpu.pipeline_mode<synchronous>, transform_indices = @transform_6, window_bounds = array<i64: 1, 128>}, {pipeline_mode = #tpu.pipeline_mode<synchronous>, transform_indices = @transform_7, window_bounds = array<i64: 768, 768>}, {pipeline_mode = #tpu.pipeline_mode<synchronous>, transform_indices = @transform_8, window_bounds = array<i64: 1, 768>}, {pipeline_mode = #tpu.pipeline_mode<synchronous>, transform_indices = @transform_9, window_bounds = array<i64: 768, 128>}, {pipeline_mode = #tpu.pipeline_mode<synchronous>, transform_indices = @transform_10, window_bounds = array<i64: 1, 128>}, {pipeline_mode = #tpu.pipeline_mode<synchronous>, transform_indices = @transform_11, window_bounds = array<i64: 256, 128>}, {pipeline_mode = #tpu.pipeline_mode<synchronous>, transform_indices = @transform_12, window_bounds = array<i64: 1, 128>}, {transform_indices = @transform_13, window_bounds = array<i64: 64, 128>}]} {
    %c0 = arith.constant 0 : index
    %c0_0 = arith.constant 0 : index
    %0 = vector.load %arg1[%c0, %c0_0] : memref<64x16xf32, #tpu.memory_space<vmem>>, vector<64x16xf32>
    %1 = arith.truncf %0 : vector<64x16xf32> to vector<64x16xbf16>
    %c0_1 = arith.constant 0 : index
    %c0_2 = arith.constant 0 : index
    %2 = vector.load %arg2[%c0_1, %c0_2] : memref<16x1152xbf16, #tpu.memory_space<vmem>>, vector<16x1152xbf16>
    %cst = arith.constant dense<0.000000e+00> : vector<64x1152xf32>
    %3 = tpu.matmul %1, %2, %cst {dimension_numbers = #tpu.dot_dimension_numbers<[1], [0], [0], [1], [0, 0, 1, 1], [], []>} : vector<64x16xbf16>, vector<16x1152xbf16>, vector<64x1152xf32> -> vector<64x1152xf32>
    %c0_3 = arith.constant 0 : index
    %c0_4 = arith.constant 0 : index
    %4 = vector.load %arg3[%c0_3, %c0_4] : memref<1x1152xf32, #tpu.memory_space<vmem>>, vector<1x1152xf32>
    %5 = vector.broadcast %4 : vector<1x1152xf32> to vector<64x1152xf32>
    %6 = arith.addf %3, %5 : vector<64x1152xf32>
    %cst_5 = arith.constant 0.000000e+00 : f32
    %7 = vector.broadcast %cst_5 : f32 to vector<64x1152xf32>
    %8 = arith.maximumf %6, %7 : vector<64x1152xf32>
    %9 = vector.extract_strided_slice %8 {offsets = [0, 0], sizes = [64, 384], strides = [1, 1]} : vector<64x1152xf32> to vector<64x384xf32>
    %10 = vector.extract_strided_slice %8 {offsets = [0, 384], sizes = [64, 768], strides = [1, 1]} : vector<64x1152xf32> to vector<64x768xf32>
    %c0_6 = arith.constant 0 : index
    %c0_7 = arith.constant 0 : index
    %11 = vector.load %arg4[%c0_6, %c0_7] : memref<384x384xbf16, #tpu.memory_space<vmem>>, vector<384x384xbf16>
    %c0_8 = arith.constant 0 : index
    %c0_9 = arith.constant 0 : index
    %12 = vector.load %arg5[%c0_8, %c0_9] : memref<1x384xf32, #tpu.memory_space<vmem>>, vector<1x384xf32>
    %c0_10 = arith.constant 0 : index
    %c0_11 = arith.constant 0 : index
    %13 = vector.load %arg6[%c0_10, %c0_11] : memref<384x128xbf16, #tpu.memory_space<vmem>>, vector<384x128xbf16>
    %c0_12 = arith.constant 0 : index
    %c0_13 = arith.constant 0 : index
    %14 = vector.load %arg7[%c0_12, %c0_13] : memref<1x128xf32, #tpu.memory_space<vmem>>, vector<1x128xf32>
    %c352_i32 = arith.constant 352 : i32
    %15 = tpu.dynamic_rotate %9 by %c352_i32 dim 1 : vector<64x384xf32>, i32 -> vector<64x384xf32>
    %16 = arith.maximumf %9, %15 : vector<64x384xf32>
    %17 = arith.truncf %16 : vector<64x384xf32> to vector<64x384xbf16>
    %cst_14 = arith.constant dense<0.000000e+00> : vector<64x384xf32>
    %18 = tpu.matmul %17, %11, %cst_14 {dimension_numbers = #tpu.dot_dimension_numbers<[1], [0], [0], [1], [0, 0, 1, 1], [], []>} : vector<64x384xbf16>, vector<384x384xbf16>, vector<64x384xf32> -> vector<64x384xf32>
    %19 = vector.broadcast %12 : vector<1x384xf32> to vector<64x384xf32>
    %20 = arith.addf %18, %19 : vector<64x384xf32>
    %cst_15 = arith.constant 0.000000e+00 : f32
    %21 = vector.broadcast %cst_15 : f32 to vector<64x384xf32>
    %22 = arith.maximumf %20, %21 : vector<64x384xf32>
    %c320_i32 = arith.constant 320 : i32
    %23 = tpu.dynamic_rotate %22 by %c320_i32 dim 1 : vector<64x384xf32>, i32 -> vector<64x384xf32>
    %24 = arith.maximumf %22, %23 : vector<64x384xf32>
    %25 = arith.truncf %24 : vector<64x384xf32> to vector<64x384xbf16>
    %cst_16 = arith.constant dense<0.000000e+00> : vector<64x128xf32>
    %26 = tpu.matmul %25, %13, %cst_16 {dimension_numbers = #tpu.dot_dimension_numbers<[1], [0], [0], [1], [0, 0, 1, 1], [], []>} : vector<64x384xbf16>, vector<384x128xbf16>, vector<64x128xf32> -> vector<64x128xf32>
    %27 = vector.broadcast %14 : vector<1x128xf32> to vector<64x128xf32>
    %28 = arith.addf %26, %27 : vector<64x128xf32>
    %cst_17 = arith.constant 0.000000e+00 : f32
    %29 = vector.broadcast %cst_17 : f32 to vector<64x128xf32>
    %30 = arith.maximumf %28, %29 : vector<64x128xf32>
    %c0_18 = arith.constant 0 : index
    %c0_19 = arith.constant 0 : index
    %31 = vector.load %arg8[%c0_18, %c0_19] : memref<768x768xbf16, #tpu.memory_space<vmem>>, vector<768x768xbf16>
    %c0_20 = arith.constant 0 : index
    %c0_21 = arith.constant 0 : index
    %32 = vector.load %arg9[%c0_20, %c0_21] : memref<1x768xf32, #tpu.memory_space<vmem>>, vector<1x768xf32>
    %c0_22 = arith.constant 0 : index
    %c0_23 = arith.constant 0 : index
    %33 = vector.load %arg10[%c0_22, %c0_23] : memref<768x128xbf16, #tpu.memory_space<vmem>>, vector<768x128xbf16>
    %c0_24 = arith.constant 0 : index
    %c0_25 = arith.constant 0 : index
    %34 = vector.load %arg11[%c0_24, %c0_25] : memref<1x128xf32, #tpu.memory_space<vmem>>, vector<1x128xf32>
    %c704_i32 = arith.constant 704 : i32
    %35 = tpu.dynamic_rotate %10 by %c704_i32 dim 1 : vector<64x768xf32>, i32 -> vector<64x768xf32>
    %36 = arith.maximumf %10, %35 : vector<64x768xf32>
    %37 = arith.truncf %36 : vector<64x768xf32> to vector<64x768xbf16>
    %cst_26 = arith.constant dense<0.000000e+00> : vector<64x768xf32>
    %38 = tpu.matmul %37, %31, %cst_26 {dimension_numbers = #tpu.dot_dimension_numbers<[1], [0], [0], [1], [0, 0, 1, 1], [], []>} : vector<64x768xbf16>, vector<768x768xbf16>, vector<64x768xf32> -> vector<64x768xf32>
    %39 = vector.broadcast %32 : vector<1x768xf32> to vector<64x768xf32>
    %40 = arith.addf %38, %39 : vector<64x768xf32>
    %cst_27 = arith.constant 0.000000e+00 : f32
    %41 = vector.broadcast %cst_27 : f32 to vector<64x768xf32>
    %42 = arith.maximumf %40, %41 : vector<64x768xf32>
    %c640_i32 = arith.constant 640 : i32
    %43 = tpu.dynamic_rotate %42 by %c640_i32 dim 1 : vector<64x768xf32>, i32 -> vector<64x768xf32>
    %44 = arith.maximumf %42, %43 : vector<64x768xf32>
    %45 = arith.truncf %44 : vector<64x768xf32> to vector<64x768xbf16>
    %cst_28 = arith.constant dense<0.000000e+00> : vector<64x128xf32>
    %46 = tpu.matmul %45, %33, %cst_28 {dimension_numbers = #tpu.dot_dimension_numbers<[1], [0], [0], [1], [0, 0, 1, 1], [], []>} : vector<64x768xbf16>, vector<768x128xbf16>, vector<64x128xf32> -> vector<64x128xf32>
    %47 = vector.broadcast %34 : vector<1x128xf32> to vector<64x128xf32>
    %48 = arith.addf %46, %47 : vector<64x128xf32>
    %cst_29 = arith.constant 0.000000e+00 : f32
    %49 = vector.broadcast %cst_29 : f32 to vector<64x128xf32>
    %50 = arith.maximumf %48, %49 : vector<64x128xf32>
    %c0_30 = arith.constant 0 : index
    %c0_31 = arith.constant 0 : index
    %51 = vector.load %arg12[%c0_30, %c0_31] : memref<256x128xbf16, #tpu.memory_space<vmem>>, vector<256x128xbf16>
    %52 = arith.truncf %30 : vector<64x128xf32> to vector<64x128xbf16>
    %53 = vector.extract_strided_slice %51 {offsets = [0, 0], sizes = [128, 128], strides = [1, 1]} : vector<256x128xbf16> to vector<128x128xbf16>
    %cst_32 = arith.constant dense<0.000000e+00> : vector<64x128xf32>
    %54 = tpu.matmul %52, %53, %cst_32 {dimension_numbers = #tpu.dot_dimension_numbers<[1], [0], [0], [1], [0, 0, 1, 1], [], []>} : vector<64x128xbf16>, vector<128x128xbf16>, vector<64x128xf32> -> vector<64x128xf32>
    %55 = arith.truncf %50 : vector<64x128xf32> to vector<64x128xbf16>
    %56 = vector.extract_strided_slice %51 {offsets = [128, 0], sizes = [128, 128], strides = [1, 1]} : vector<256x128xbf16> to vector<128x128xbf16>
    %cst_33 = arith.constant dense<0.000000e+00> : vector<64x128xf32>
    %57 = tpu.matmul %55, %56, %cst_33 {dimension_numbers = #tpu.dot_dimension_numbers<[1], [0], [0], [1], [0, 0, 1, 1], [], []>} : vector<64x128xbf16>, vector<128x128xbf16>, vector<64x128xf32> -> vector<64x128xf32>
    %58 = arith.addf %54, %57 : vector<64x128xf32>
    %c0_34 = arith.constant 0 : index
    %c0_35 = arith.constant 0 : index
    %59 = vector.load %arg13[%c0_34, %c0_35] : memref<1x128xf32, #tpu.memory_space<vmem>>, vector<1x128xf32>
    %60 = vector.broadcast %59 : vector<1x128xf32> to vector<64x128xf32>
    %61 = arith.addf %58, %60 : vector<64x128xf32>
    %c0_36 = arith.constant 0 : index
    %c0_37 = arith.constant 0 : index
    %62 = vector.load %arg14[%c0_36, %c0_37] : memref<64x128xf32, #tpu.memory_space<vmem>>, vector<64x128xf32>
    tpu.vector_store %arg14[%c0_36, %c0_37], %61 {strides = array<i32>} : memref<64x128xf32, #tpu.memory_space<vmem>>, vector<64x128xf32>,
    return
  }
  func.func @transform_0(%arg0: i32) -> (i32, i32) {
    %c0_i32 = arith.constant 0 : i32
    %c0_i32_0 = arith.constant 0 : i32
    return %arg0, %c0_i32 : i32, i32
  }
  func.func @transform_1(%arg0: i32) -> (i32, i32) {
    %c0_i32 = arith.constant 0 : i32
    %c0_i32_0 = arith.constant 0 : i32
    %c0_i32_1 = arith.constant 0 : i32
    return %c0_i32, %c0_i32_0 : i32, i32
  }
  func.func @transform_2(%arg0: i32) -> (i32, i32) {
    %c0_i32 = arith.constant 0 : i32
    %c0_i32_0 = arith.constant 0 : i32
    %c0_i32_1 = arith.constant 0 : i32
    return %c0_i32, %c0_i32_0 : i32, i32
  }
  func.func @transform_3(%arg0: i32) -> (i32, i32) {
    %c0_i32 = arith.constant 0 : i32
    %c0_i32_0 = arith.constant 0 : i32
    %c0_i32_1 = arith.constant 0 : i32
    return %c0_i32, %c0_i32_0 : i32, i32
  }
  func.func @transform_4(%arg0: i32) -> (i32, i32) {
    %c0_i32 = arith.constant 0 : i32
    %c0_i32_0 = arith.constant 0 : i32
    %c0_i32_1 = arith.constant 0 : i32
    return %c0_i32, %c0_i32_0 : i32, i32
  }
  func.func @transform_5(%arg0: i32) -> (i32, i32) {
    %c0_i32 = arith.constant 0 : i32
    %c0_i32_0 = arith.constant 0 : i32
    %c0_i32_1 = arith.constant 0 : i32
    return %c0_i32, %c0_i32_0 : i32, i32
  }
  func.func @transform_6(%arg0: i32) -> (i32, i32) {
    %c0_i32 = arith.constant 0 : i32
    %c0_i32_0 = arith.constant 0 : i32
    %c0_i32_1 = arith.constant 0 : i32
    return %c0_i32, %c0_i32_0 : i32, i32
  }
  func.func @transform_7(%arg0: i32) -> (i32, i32) {
    %c0_i32 = arith.constant 0 : i32
    %c0_i32_0 = arith.constant 0 : i32
    %c0_i32_1 = arith.constant 0 : i32
    return %c0_i32, %c0_i32_0 : i32, i32
  }
  func.func @transform_8(%arg0: i32) -> (i32, i32) {
    %c0_i32 = arith.constant 0 : i32
    %c0_i32_0 = arith.constant 0 : i32
    %c0_i32_1 = arith.constant 0 : i32
    return %c0_i32, %c0_i32_0 : i32, i32
  }
  func.func @transform_9(%arg0: i32) -> (i32, i32) {
    %c0_i32 = arith.constant 0 : i32
    %c0_i32_0 = arith.constant 0 : i32
    %c0_i32_1 = arith.constant 0 : i32
    return %c0_i32, %c0_i32_0 : i32, i32
  }
  func.func @transform_10(%arg0: i32) -> (i32, i32) {
    %c0_i32 = arith.constant 0 : i32
    %c0_i32_0 = arith.constant 0 : i32
    %c0_i32_1 = arith.constant 0 : i32
    return %c0_i32, %c0_i32_0 : i32, i32
  }
  func.func @transform_11(%arg0: i32) -> (i32, i32) {
    %c0_i32 = arith.constant 0 : i32
    %c0_i32_0 = arith.constant 0 : i32
    %c0_i32_1 = arith.constant 0 : i32
    return %c0_i32, %c0_i32_0 : i32, i32
  }
  func.func @transform_12(%arg0: i32) -> (i32, i32) {
    %c0_i32 = arith.constant 0 : i32
    %c0_i32_0 = arith.constant 0 : i32
    %c0_i32_1 = arith.constant 0 : i32
    return %c0_i32, %c0_i32_0 : i32, i32
  }
  func.func @transform_13(%arg0: i32) -> (i32, i32) {
    %c0_i32 = arith.constant 0 : i32
    %c0_i32_0 = arith.constant 0 : i32
    return %arg0, %c0_i32 : i32, i32
  }
}

</mosaic_0001>

<bundles_post_ra>
// kernel: tpu_custom_call.1
= control target key start
LH: loop header
LB: loop body
LE: loop exit
PB: predicated region body
PF: predicated region fallthrough
CT: control target
= control target key end

     0   :  { %s11394_s0 = inlined_call_operand.vmem [shape: f32[128,16], index: 0, kind: input, shape index: {}]   ;;  %s11395_s1 = inlined_call_operand.hbm [shape: bf16[16,1152], index: 1, kind: input, shape index: {}]   ;;  %s11396_s2 = inlined_call_operand.hbm [shape: f32[1,1152], index: 2, kind: input, shape index: {}]   ;;  %s11397_s3 = inlined_call_operand.hbm [shape: bf16[384,384], index: 3, kind: input, shape index: {}]   ;;  %s11398_s4 = inlined_call_operand.hbm [shape: f32[1,384], index: 4, kind: input, shape index: {}]   ;;  %s11399_s5 = inlined_call_operand.hbm [shape: bf16[384,128], index: 5, kind: input, shape index: {}]   ;;  %s11400_s6 = inlined_call_operand.hbm [shape: f32[1,128], index: 6, kind: input, shape index: {}]   ;;  %s11401_s7 = inlined_call_operand.hbm [shape: bf16[768,768], index: 7, kind: input, shape index: {}]   ;;  %s11402_s8 = inlined_call_operand.hbm [shape: f32[1,768], index: 8, kind: input, shape index: {}]   ;;  %s11403_s9 = inlined_call_operand.hbm [shape: bf16[768,128], index: 9, kind: input, shape index: {}]   ;;  %s11404_s10 = inlined_call_operand.hbm [shape: f32[1,128], index: 10, kind: input, shape index: {}]   ;;  %s11405_s11 = inlined_call_operand.hbm [shape: bf16[256,128], index: 11, kind: input, shape index: {}]   ;;  %s11406_s12 = inlined_call_operand.hbm [shape: f32[1,128], index: 12, kind: input, shape index: {}]   ;;  %s11407_s13 = inlined_call_operand.hbm [shape: f32[128,128], index: 13, kind: output, shape index: {}]  }
   0x1   :  { %11555 = sst [smem:[#allocation76_spill]] %s11395_s1 }
   0x2   :  { %11556 = sst [smem:[#allocation77_spill]] %s11396_s2 }
   0x3   :  { %11557 = sst [smem:[#allocation78_spill]] %s11397_s3 }
   0x4   :  { %11558 = sst [smem:[#allocation79_spill]] %s11398_s4 }
   0x5   :  { %11559 = sst [smem:[#allocation80_spill]] %s11407_s13 }
   0x6   :  { %18 = vsyncpa [#allocation3], 0 }
   0x7   :  { %19 = vsyncpa [#allocation6], 0 }
   0x8   :  { %20 = vsyncpa [#allocation9], 0 }
   0x9   :  { %21 = vsyncpa [#allocation12], 0 }
   0xa   :  { %22 = vsyncpa [#allocation15], 0 }
   0xb   :  { %23 = vsyncpa [#allocation18], 0 }
   0xc   :  { %24 = vsyncpa [#allocation21], 0 }
   0xd   :  { %25 = vsyncpa [#allocation4], 0 }
   0xe   :  { %27 = vsyncpa [#allocation4 + $0x1], 0  ;;  %s8978_s25 = smov 0   ;;  %s8980_s26 = smov 0  }
   0xf   :  { %s8982_s27 = smov 0   ;;  %s8984_s28 = smov 0  }
  0x10 LB: > { %11560 = sst [smem:[#allocation31_spill]] %s8868_s25  ;;  %s8999_s29 = sadd.s32 4294967295, %s8880_s28   ;;  %s8880_s28 = sphi %s8984_s28, %s11884_s28   ;;  %s8876_s27 = sphi %s8982_s27, %s11886_s27   ;;  %s8872_s26 = sphi %s8980_s26, %s11888_s26   ;;  %s8868_s25 = sphi %s8978_s25, %s11887_s25  }
  0x11   : > { %11561 = sst [smem:[#allocation32_spill]] %s8876_s27  ;;  %s6348_s30 = sadd.s32 4294967294, %s8880_s28  }
  0x12   : > { %11562 = sst [smem:[#allocation33_spill]] %s8880_s28  ;;  %s9003_s14 = sadd.s32 1, %s8880_s28  }
  0x13   : > { %11563 = sst [smem:[#allocation34_spill]] %s9003_s14  ;;  %s318_s15 = sadd.s32 1, %s8876_s27 }
  0x14   : > { %s315_s16 = ssub.s32 %s8880_s28, %s9003_s14  ;;  %p328_p0 = scmp.ne.s32.totalorder %s8876_s27, %s8872_s26 }
  0x15   : > { %p316_p1 = scmp.eq.s32.totalorder %s315_s16, 0  ;;  %p329_p2 = scmp.eq.s32.totalorder %s8999_s29, 1 }
  0x16   : > { %p334_p3 = scmp.ne.s32.totalorder %s8872_s26, %s8868_s25  ;;  %p335_p4 = scmp.eq.s32.totalorder %s6348_s30, 1 }
  0x17   : > { %s9014_s17 = scalar_select %p316_p1, %s8876_s27, %s318_s15  }
  0x18   : > { %p9016_p5 = por %p329_p2, %p328_p0  ;;  %p9020_p6 = por %p335_p4, %p334_p3 }
  0x19   : > { %11564 = sst [smem:[#allocation35_spill]] %s9014_s17  ;;  %p6349_p7 = scmp.ge.s32.totalorder %s8880_s28, 1 }
  0x1a   : > { %s11565_s18 = scalar_select %p9016_p5, 1, 0 }
  0x1b   : > { %s11566_s19 = scalar_select %p9020_p6, 1, 0 }
  0x1c   : > { %p342_p8 = scmp.lt.s32.totalorder %s8880_s28, 3  ;;  %p11413_p9 = scmp.eq.s32.totalorder %s8999_s29, 0 }
  0x1d   : > { %11567 = sst [smem:[#allocation36_spill]] %s11566_s19  ;;  %s8882_s21 = smov [#allocation5]  }
  0x1e   : > { %p9027_p10 = pnand %p6349_p7, %p342_p8  ;;  %s368_s22 = sshll.u32 %s8882_s21, 4  ;;  %s369_s22 = int_to_ptr.vmem [resolvable:$true] %s368_s22 }
  0x1f   : > { %s8883_s23 = smov [#allocation8]   ;;  %s8884_s15 = smov [#allocation11]  }
  0x20   : > { %s11568_s20 = scalar_select %p9027_p10, 1, 0 }
  0x21   : > { %p7461_p11 = pneg %p9027_p10  ;;  %s392_s24 = sshll.u32 %s8883_s23, 4  ;;  %s9039_s24 = int_to_ptr.vmem [resolvable:$true] %s392_s24 }
  0x22   : > { %s416_s16 = sshll.u32 %s8884_s15, 4  ;;  %s11570_s2 = sld [smem:[#allocation77_spill]]  ;;  %s9041_s16 = int_to_ptr.vmem [resolvable:$true] %s416_s16 }
  0x23   : > { %p9035_p12 = pnand %p11413_p9, %p7461_p11 }
  0x25   : > { %p9051_p0 = pneg %p9035_p12 }
  0x28   : > { %s8454_s21 = scalar_lea.hbm %s11570_s2, 144 }
  0x29   : > { %p8455_p13 = scmp.ne.s32.totalorder %s11570_s2, %s8454_s21  ;;  %p8461_p3 = scmp.lt.u32.totalorder %s8454_s21, %s11570_s2 }
  0x2b   : > { %p8457_p1 = pnand %p9051_p0, %p8455_p13 }
  0x2d   : > { %p8458_p2 = pneg %p8457_p1 }
  0x2f   : > { %p8463_p4 = pnand %p8461_p3, %p8458_p2 }
  0x31   : > { %8466 = shalt.err (!%p8463_p4)
}
  0x32   : > { %s8467_s27 = scalar_lea.vmem %s369_s22, 144  ;;  %s8474_s14 = scalar_lea.vmem %s369_s22, 160 }
  0x33   : > { %p8468_p7 = scmp.ne.s32.totalorder %s369_s22, %s8467_s27  ;;  %p8475_p9 = scmp.lt.s32.totalorder %s369_s22, %s369_s22 }
  0x34   : > { %p8476_p6 = scmp.lt.s32.totalorder %s8474_s14, %s8467_s27 }
  0x35   : > { %p8470_p8 = pnand %p8468_p7, %p9051_p0 }
  0x36   : > { %p8477_p5 = por %p8476_p6, %p8475_p9 }
  0x37   : > { %p8471_p11 = pneg %p8470_p8 }
  0x39   : > { %p8478_p10 = pnand %p8477_p5, %p8471_p11 }
  0x3b   : > { %8481 = shalt.err (!%p8478_p10)
}
  0x3c   : > { %7467 = dma.hbm_to_vmem [thread:$0]  (!%p9035_p12), %s11570_s2, 144, %s369_s22, [#allocation6]  }
  0x3d   : > { %s11572_s4 = sld [smem:[#allocation79_spill]] }
  0x43   : > { %s8482_s15 = scalar_lea.hbm %s11572_s4, 48 }
  0x44   : > { %p8483_p13 = scmp.ne.s32.totalorder %s11572_s4, %s8482_s15  ;;  %p8489_p5 = scmp.lt.u32.totalorder %s8482_s15, %s11572_s4 }
  0x46   : > { %p8485_p1 = pnand %p8483_p13, %p9051_p0 }
  0x48   : > { %p8486_p6 = pneg %p8485_p1 }
  0x4a   : > { %p8491_p9 = pnand %p8489_p5, %p8486_p6 }
  0x4c   : > { %8494 = shalt.err (!%p8491_p9)
}
  0x4d   : > { %s8495_s22 = scalar_lea.vmem %s9039_s24, 48  ;;  %s8502_s13 = scalar_lea.vmem %s9039_s24, 64 }
  0x4e   : > { %p8496_p10 = scmp.ne.s32.totalorder %s9039_s24, %s8495_s22  ;;  %p8503_p4 = scmp.lt.s32.totalorder %s9039_s24, %s9039_s24 }
  0x4f   : > { %p8504_p7 = scmp.lt.s32.totalorder %s8502_s13, %s8495_s22 }
  0x50   : > { %p8498_p2 = pnand %p8496_p10, %p9051_p0 }
  0x51   : > { %p8505_p8 = por %p8504_p7, %p8503_p4 }
  0x52   : > { %p8499_p3 = pneg %p8498_p2 }
  0x54   : > { %p8506_p11 = pnand %p8505_p8, %p8499_p3 }
  0x56   : > { %8509 = shalt.err (!%p8506_p11)
}
  0x57   : > { %7473 = dma.hbm_to_vmem [thread:$0]  (!%p9035_p12), %s11572_s4, 48, %s9039_s24, [#allocation9]  }
  0x58   : > { %s8510_s21 = scalar_lea.hbm %s11400_s6, 16 }
  0x59   : > { %p8511_p13 = scmp.ne.s32.totalorder %s11400_s6, %s8510_s21  ;;  %p8517_p5 = scmp.lt.u32.totalorder %s8510_s21, %s11400_s6 }
  0x5b   : > { %p8513_p1 = pnand %p8511_p13, %p9051_p0 }
  0x5d   : > { %p8514_p6 = pneg %p8513_p1 }
  0x5f   : > { %p8519_p9 = pnand %p8517_p5, %p8514_p6 }
  0x61   : > { %8522 = shalt.err (!%p8519_p9)
}
  0x62   : > { %s8523_s24 = scalar_lea.vmem %s9041_s16, 16  ;;  %s8530_s13 = scalar_lea.vmem %s9041_s16, 32 }
  0x63   : > { %p8524_p10 = scmp.ne.s32.totalorder %s9041_s16, %s8523_s24  ;;  %p8531_p4 = scmp.lt.s32.totalorder %s9041_s16, %s9041_s16 }
  0x64   : > { %p8532_p7 = scmp.lt.s32.totalorder %s8530_s13, %s8523_s24 }
  0x65   : > { %p8526_p2 = pnand %p8524_p10, %p9051_p0 }
  0x66   : > { %p8533_p8 = por %p8532_p7, %p8531_p4 }
  0x67   : > { %p8527_p3 = pneg %p8526_p2 }
  0x69   : > { %p8534_p11 = pnand %p8533_p8, %p8527_p3 }
  0x6b   : > { %8537 = shalt.err (!%p8534_p11)
}
  0x6c   : > { %7479 = dma.hbm_to_vmem [thread:$0]  (!%p9035_p12), %s11400_s6, 16, %s9041_s16, [#allocation12]  }
  0x6d   : > { %s8885_s19 = smov [#allocation14]   ;;  %s8886_s21 = smov [#allocation17]  }
  0x6e   : > { %s440_s25 = sshll.u32 %s8885_s19, 4  ;;  %s464_s15 = sshll.u32 %s8886_s21, 4  ;;  %s441_s25 = int_to_ptr.vmem [resolvable:$true] %s440_s25  ;;  %s465_s15 = int_to_ptr.vmem [resolvable:$true] %s464_s15 }
  0x6f   : > { %s8538_s22 = scalar_lea.hbm %s11402_s8, 96 }
  0x70   : > { %p8539_p13 = scmp.ne.s32.totalorder %s11402_s8, %s8538_s22  ;;  %p8545_p5 = scmp.lt.u32.totalorder %s8538_s22, %s11402_s8 }
  0x72   : > { %p8541_p1 = pnand %p8539_p13, %p9051_p0 }
  0x74   : > { %p8542_p6 = pneg %p8541_p1 }
  0x76   : > { %p8547_p9 = pnand %p8545_p5, %p8542_p6 }
  0x78   : > { %8550 = shalt.err (!%p8547_p9)
}
  0x79   : > { %s8551_s16 = scalar_lea.vmem %s441_s25, 96  ;;  %p8559_p4 = scmp.lt.s32.totalorder %s441_s25, %s441_s25 }
  0x7a   : > { %p8552_p10 = scmp.ne.s32.totalorder %s441_s25, %s8551_s16  ;;  %p8560_p7 = scmp.lt.s32.totalorder %s8551_s16, %s8551_s16 }
  0x7c   : > { %p8554_p2 = pnand %p8552_p10, %p9051_p0  ;;  %p8561_p8 = por %p8560_p7, %p8559_p4 }
  0x7e   : > { %p8555_p3 = pneg %p8554_p2 }
  0x80   : > { %p8562_p11 = pnand %p8561_p8, %p8555_p3 }
  0x82   : > { %8565 = shalt.err (!%p8562_p11)
}
  0x83   : > { %7485 = dma.hbm_to_vmem [thread:$0]  (!%p9035_p12), %s11402_s8, 96, %s441_s25, [#allocation15]  }
  0x84   : > { %s8566_s27 = scalar_lea.hbm %s11404_s10, 16 }
  0x85   : > { %p8567_p13 = scmp.ne.s32.totalorder %s11404_s10, %s8566_s27  ;;  %p8573_p5 = scmp.lt.u32.totalorder %s8566_s27, %s11404_s10 }
  0x87   : > { %p8569_p1 = pnand %p8567_p13, %p9051_p0 }
  0x89   : > { %p8570_p6 = pneg %p8569_p1 }
  0x8b   : > { %p8575_p9 = pnand %p8573_p5, %p8570_p6 }
  0x8d   : > { %8578 = shalt.err (!%p8575_p9)
}
  0x8e   : > { %s8579_s28 = scalar_lea.vmem %s465_s15, 16  ;;  %s8586_s25 = scalar_lea.vmem %s465_s15, 32 }
  0x8f   : > { %p8580_p10 = scmp.ne.s32.totalorder %s465_s15, %s8579_s28  ;;  %p8587_p4 = scmp.lt.s32.totalorder %s465_s15, %s465_s15 }
  0x90   : > { %p8588_p7 = scmp.lt.s32.totalorder %s8586_s25, %s8579_s28 }
  0x91   : > { %p8582_p2 = pnand %p8580_p10, %p9051_p0 }
  0x92   : > { %p8589_p8 = por %p8588_p7, %p8587_p4 }
  0x93   : > { %p8583_p3 = pneg %p8582_p2 }
  0x95   : > { %p8590_p11 = pnand %p8589_p8, %p8583_p3 }
  0x97   : > { %8593 = shalt.err (!%p8590_p11)
}
  0x98   : > { %7491 = dma.hbm_to_vmem [thread:$0]  (!%p9035_p12), %s11404_s10, 16, %s465_s15, [#allocation18]  }
  0x99   : > { %s8887_s19 = smov [#allocation2]   ;;  %s11573_s1 = sld [smem:[#allocation76_spill]] }
  0x9a   : > { %s354_s2 = sshll.u32 %s8887_s19, 4  ;;  %s355_s2 = int_to_ptr.vmem [resolvable:$true] %s354_s2 }
  0x9f   : > { %s8594_s14 = scalar_lea.hbm %s11573_s1, 1152 }
  0xa0   : > { %p8595_p13 = scmp.ne.s32.totalorder %s11573_s1, %s8594_s14  ;;  %p8601_p5 = scmp.lt.u32.totalorder %s8594_s14, %s11573_s1 }
  0xa2   : > { %p8597_p1 = pnand %p8595_p13, %p9051_p0 }
  0xa4   : > { %p8598_p6 = pneg %p8597_p1 }
  0xa6   : > { %p8603_p9 = pnand %p8601_p5, %p8598_p6 }
  0xa8   : > { %8606 = shalt.err (!%p8603_p9)
}
  0xa9   : > { %s8607_s15 = scalar_lea.vmem %s355_s2, 1152  ;;  %p8615_p4 = scmp.lt.s32.totalorder %s355_s2, %s355_s2 }
  0xaa   : > { %p8608_p10 = scmp.ne.s32.totalorder %s355_s2, %s8607_s15  ;;  %p8616_p7 = scmp.lt.s32.totalorder %s8607_s15, %s8607_s15 }
  0xac   : > { %p8610_p2 = pnand %p8608_p10, %p9051_p0  ;;  %p8617_p8 = por %p8616_p7, %p8615_p4 }
  0xae   : > { %p8611_p3 = pneg %p8610_p2 }
  0xb0   : > { %p8618_p11 = pnand %p8617_p8, %p8611_p3 }
  0xb2   : > { %8621 = shalt.err (!%p8618_p11)
}
  0xb3   : > { %s8888_s25 = smov 576   ;;  %s8889_s16 = smov 36  }
  0xb4   : > { %7464 = dma.hbm_to_vmem [thread:$0]  (!%p9035_p12), %s11573_s1, 1152, %s355_s2, [#allocation3], %s8888_s25, %s8888_s25, %s8889_s16  }
  0xb5   : > { %s8890_s21 = smov [#allocation7]   ;;  %s11574_s3 = sld [smem:[#allocation78_spill]] }
  0xb6   : > { %s378_s27 = sshll.u32 %s8890_s21, 4  ;;  %s379_s27 = int_to_ptr.vmem [resolvable:$true] %s378_s27 }
  0xbb   : > { %s8622_s24 = scalar_lea.hbm %s11574_s3, 9216 }
  0xbc   : > { %p8623_p13 = scmp.ne.s32.totalorder %s11574_s3, %s8622_s24  ;;  %p8629_p5 = scmp.lt.u32.totalorder %s8622_s24, %s11574_s3 }
  0xbe   : > { %p8625_p1 = pnand %p8623_p13, %p9051_p0 }
  0xc0   : > { %p8626_p6 = pneg %p8625_p1 }
  0xc2   : > { %p8631_p9 = pnand %p8629_p5, %p8626_p6 }
  0xc4   : > { %8634 = shalt.err (!%p8631_p9)
}
  0xc5   : > { %s8635_s2 = scalar_lea.vmem %s379_s27, 9216  ;;  %p8643_p4 = scmp.lt.s32.totalorder %s379_s27, %s379_s27 }
  0xc6   : > { %p8636_p10 = scmp.ne.s32.totalorder %s379_s27, %s8635_s2  ;;  %p8644_p7 = scmp.lt.s32.totalorder %s8635_s2, %s8635_s2 }
  0xc8   : > { %p8638_p2 = pnand %p8636_p10, %p9051_p0  ;;  %p8645_p8 = por %p8644_p7, %p8643_p4 }
  0xca   : > { %p8639_p3 = pneg %p8638_p2 }
  0xcc   : > { %p8646_p11 = pnand %p8645_p8, %p8639_p3 }
  0xce   : > { %8649 = shalt.err (!%p8646_p11)
}
  0xcf   : > { %s8891_s25 = smov 192   ;;  %s8892_s16 = smov 12  }
  0xd0   : > { %7470 = dma.hbm_to_vmem [thread:$0]  (!%p9035_p12), %s11574_s3, 9216, %s379_s27, [#allocation6], %s8891_s25, %s8891_s25, %s8892_s16  }
  0xd1   : > { %s8893_s19 = smov [#allocation10]   ;;  %s8650_s24 = scalar_lea.hbm %s11399_s5, 3072 }
  0xd2   : > { %s402_s21 = sshll.u32 %s8893_s19, 4  ;;  %p8651_p13 = scmp.ne.s32.totalorder %s11399_s5, %s8650_s24  ;;  %s403_s21 = int_to_ptr.vmem [resolvable:$true] %s402_s21 }
  0xd3   : > { %p8657_p5 = scmp.lt.u32.totalorder %s8650_s24, %s11399_s5 }
  0xd4   : > { %p8653_p1 = pnand %p8651_p13, %p9051_p0 }
  0xd6   : > { %p8654_p6 = pneg %p8653_p1 }
  0xd8   : > { %p8659_p9 = pnand %p8657_p5, %p8654_p6 }
  0xda   : > { %8662 = shalt.err (!%p8659_p9)
}
  0xdb   : > { %s8663_s27 = scalar_lea.vmem %s403_s21, 3072  ;;  %p8671_p4 = scmp.lt.s32.totalorder %s403_s21, %s403_s21 }
  0xdc   : > { %p8664_p10 = scmp.ne.s32.totalorder %s403_s21, %s8663_s27  ;;  %p8672_p7 = scmp.lt.s32.totalorder %s8663_s27, %s8663_s27 }
  0xde   : > { %p8666_p2 = pnand %p8664_p10, %p9051_p0  ;;  %p8673_p8 = por %p8672_p7, %p8671_p4 }
  0xe0   : > { %p8667_p3 = pneg %p8666_p2 }
  0xe2   : > { %p8674_p11 = pnand %p8673_p8, %p8667_p3 }
  0xe4   : > { %8677 = shalt.err (!%p8674_p11)
}
  0xe5   : > { %s11418_s25 = smov 64   ;;  %s11420_s16 = smov 4  }
  0xe6   : > { %7476 = dma.hbm_to_vmem [thread:$0]  (!%p9035_p12), %s11399_s5, 3072, %s403_s21, [#allocation9], %s11418_s25, %s11418_s25, %s11420_s16  }
  0xe7   : > { %s8896_s19 = smov [#allocation13]   ;;  %s8678_s13 = scalar_lea.hbm %s11401_s7, 36864 }
  0xe8   : > { %s426_s14 = sshll.u32 %s8896_s19, 4  ;;  %p8679_p13 = scmp.ne.s32.totalorder %s11401_s7, %s8678_s13  ;;  %s427_s14 = int_to_ptr.vmem [resolvable:$true] %s426_s14 }
  0xe9   : > { %p8685_p5 = scmp.lt.u32.totalorder %s8678_s13, %s11401_s7 }
  0xea   : > { %p8681_p1 = pnand %p8679_p13, %p9051_p0 }
  0xec   : > { %p8682_p6 = pneg %p8681_p1 }
  0xee   : > { %p8687_p9 = pnand %p8685_p5, %p8682_p6 }
  0xf0   : > { %8690 = shalt.err (!%p8687_p9)
}
  0xf1   : > { %s8691_s21 = scalar_lea.vmem %s427_s14, 36864  ;;  %p8699_p4 = scmp.lt.s32.totalorder %s427_s14, %s427_s14 }
  0xf2   : > { %p8692_p10 = scmp.ne.s32.totalorder %s427_s14, %s8691_s21  ;;  %p8700_p7 = scmp.lt.s32.totalorder %s8691_s21, %s8691_s21 }
  0xf4   : > { %p8694_p2 = pnand %p8692_p10, %p9051_p0  ;;  %p8701_p8 = por %p8700_p7, %p8699_p4 }
  0xf6   : > { %p8695_p3 = pneg %p8694_p2 }
  0xf8   : > { %p8702_p11 = pnand %p8701_p8, %p8695_p3 }
  0xfa   : > { %8705 = shalt.err (!%p8702_p11)
}
  0xfb   : > { %s8897_s4 = smov 384   ;;  %s8898_s17 = smov 24  }
  0xfc   : > { %7482 = dma.hbm_to_vmem [thread:$0]  (!%p9035_p12), %s11401_s7, 36864, %s427_s14, [#allocation12], %s8897_s4, %s8897_s4, %s8898_s17  }
  0xfd   : > { %s8899_s24 = smov [#allocation16]   ;;  %s8900_s28 = smov [#allocation19]  }
  0xfe   : > { %s450_s13 = sshll.u32 %s8899_s24, 4  ;;  %s474_s15 = sshll.u32 %s8900_s28, 4  ;;  %s451_s13 = int_to_ptr.vmem [resolvable:$true] %s450_s13  ;;  %s475_s15 = int_to_ptr.vmem [resolvable:$true] %s474_s15 }
  0xff   : > { %s8706_s21 = scalar_lea.hbm %s11403_s9, 6144 }
 0x100   : > { %p8707_p13 = scmp.ne.s32.totalorder %s11403_s9, %s8706_s21  ;;  %p8713_p5 = scmp.lt.u32.totalorder %s8706_s21, %s11403_s9 }
 0x102   : > { %p8709_p1 = pnand %p8707_p13, %p9051_p0 }
 0x104   : > { %p8710_p6 = pneg %p8709_p1 }
 0x106   : > { %p8715_p9 = pnand %p8713_p5, %p8710_p6 }
 0x108   : > { %8718 = shalt.err (!%p8715_p9)
}
 0x109   : > { %s8719_s14 = scalar_lea.vmem %s451_s13, 6144  ;;  %p8727_p4 = scmp.lt.s32.totalorder %s451_s13, %s451_s13 }
 0x10a   : > { %p8720_p10 = scmp.ne.s32.totalorder %s451_s13, %s8719_s14  ;;  %p8728_p7 = scmp.lt.s32.totalorder %s8719_s14, %s8719_s14 }
 0x10c   : > { %p8722_p2 = pnand %p8720_p10, %p9051_p0  ;;  %p8729_p8 = por %p8728_p7, %p8727_p4 }
 0x10e   : > { %p8723_p3 = pneg %p8722_p2 }
 0x110   : > { %p8730_p11 = pnand %p8729_p8, %p8723_p3 }
 0x112   : > { %8733 = shalt.err (!%p8730_p11)
}
 0x113   : > { %s11575_s25 = smov 4   ;;  %s11576_s16 = smov 64  }
 0x114   : > { %7488 = dma.hbm_to_vmem [thread:$0]  (!%p9035_p12), %s11403_s9, 6144, %s451_s13, [#allocation15], %s11576_s16, %s11576_s16, %s11575_s25  }
 0x115   : > { %s8734_s19 = scalar_lea.hbm %s11405_s11, 2048 }
 0x116   : > { %p8735_p13 = scmp.ne.s32.totalorder %s11405_s11, %s8734_s19  ;;  %p8741_p5 = scmp.lt.u32.totalorder %s8734_s19, %s11405_s11 }
 0x118   : > { %p8737_p1 = pnand %p8735_p13, %p9051_p0 }
 0x11a   : > { %p8738_p6 = pneg %p8737_p1 }
 0x11c   : > { %p8743_p9 = pnand %p8741_p5, %p8738_p6 }
 0x11e   : > { %8746 = shalt.err (!%p8743_p9)
}
 0x11f   : > { %s8747_s27 = scalar_lea.vmem %s475_s15, 2048  ;;  %p8755_p4 = scmp.lt.s32.totalorder %s475_s15, %s475_s15 }
 0x120   : > { %p8748_p10 = scmp.ne.s32.totalorder %s475_s15, %s8747_s27  ;;  %p8756_p7 = scmp.lt.s32.totalorder %s8747_s27, %s8747_s27 }
 0x122   : > { %p8750_p2 = pnand %p8748_p10, %p9051_p0  ;;  %p8757_p8 = por %p8756_p7, %p8755_p4 }
 0x124   : > { %p8751_p3 = pneg %p8750_p2 }
 0x126   : > { %p8758_p11 = pnand %p8757_p8, %p8751_p3 }
 0x128   : > { %8761 = shalt.err (!%p8758_p11)
}
 0x129   : > { %7494 = dma.hbm_to_vmem [thread:$0]  (!%p9035_p12), %s11405_s11, 2048, %s475_s15, [#allocation18], %s11576_s16, %s11576_s16, %s11575_s25  }
 0x12a   : > { %s8901_s14 = smov [#allocation20]   ;;  %s8762_s17 = scalar_lea.hbm %s11406_s12, 16 }
 0x12b   : > { %s488_s1 = sshll.u32 %s8901_s14, 4  ;;  %p8763_p13 = scmp.ne.s32.totalorder %s11406_s12, %s8762_s17  ;;  %s489_s1 = int_to_ptr.vmem [resolvable:$true] %s488_s1 }
 0x12c   : > { %p8769_p5 = scmp.lt.u32.totalorder %s8762_s17, %s11406_s12 }
 0x12d   : > { %p8765_p1 = pnand %p8763_p13, %p9051_p0 }
 0x12f   : > { %p8766_p6 = pneg %p8765_p1 }
 0x131   : > { %p8771_p9 = pnand %p8769_p5, %p8766_p6 }
 0x133   : > { %8774 = shalt.err (!%p8771_p9)
}
 0x134   : > { %s8775_s15 = scalar_lea.vmem %s489_s1, 16  ;;  %s8782_s25 = scalar_lea.vmem %s489_s1, 32 }
 0x135   : > { %p8776_p10 = scmp.ne.s32.totalorder %s489_s1, %s8775_s15  ;;  %p8783_p4 = scmp.lt.s32.totalorder %s489_s1, %s489_s1 }
 0x136   : > { %p8784_p7 = scmp.lt.s32.totalorder %s8782_s25, %s8775_s15 }
 0x137   : > { %p8778_p2 = pnand %p8776_p10, %p9051_p0 }
 0x138   : > { %p8785_p8 = por %p8784_p7, %p8783_p4 }
 0x139   : > { %p8779_p3 = pneg %p8778_p2 }
 0x13b   : > { %p8786_p11 = pnand %p8785_p8, %p8779_p3 }
 0x13d   : > { %8789 = shalt.err (!%p8786_p11)
}
 0x13e   : > { %7497 = dma.hbm_to_vmem [thread:$0]  (!%p9035_p12), %s11406_s12, 16, %s489_s1, [#allocation21]  }
 0x13f   : > { %p11577_p13 = scmp.ne.s32.totalorder %s11568_s20, 0 }
 0x141   : > { %510 = sbr.rel (%p11577_p13) target bundleno = 2254 (0x8ce), region = 72 }
 0x148   : > { %p11578_p1 = scmp.eq.s32.totalorder %s8999_s29, 0 }
 0x14a   : > { %8835 = dma.done.wait (%p11578_p1), [#allocation3], 1152   ;;  %p11579_p0 = pmov %p11578_p1 }
 0x14c   : > { %8837 = vsyncadd (%p11579_p0), [#allocation3], 4294966144  ;;  %p11580_p6 = pmov %p11579_p0 }
 0x14d   : > { %p11581_p5 = pmov %p11579_p0 }
 0x14e   : > { %8839 = dma.done.wait (%p11580_p6), [#allocation6], 9360  }
 0x14f   : > { %8841 = vsyncadd (%p11581_p5), [#allocation6], 4294957936  ;;  %p11582_p9 = pmov %p11579_p0 }
 0x150   : > { %p11583_p12 = pmov %p11579_p0 }
 0x151   : > { %8843 = dma.done.wait (%p11582_p9), [#allocation9], 3120  }
 0x152   : > { %8845 = vsyncadd (%p11583_p12), [#allocation9], 4294964176  ;;  %p11584_p10 = pmov %p11579_p0 }
 0x153   : > { %p11585_p2 = pmov %p11579_p0 }
 0x154   : > { %8847 = dma.done.wait (%p11584_p10), [#allocation12], 36880  }
 0x155   : > { %8849 = vsyncadd (%p11585_p2), [#allocation12], 4294930416  ;;  %p11586_p3 = pmov %p11579_p0 }
 0x156   : > { %p11587_p4 = pmov %p11579_p0 }
 0x157   : > { %8851 = dma.done.wait (%p11586_p3), [#allocation15], 6240  }
 0x158   : > { %8853 = vsyncadd (%p11587_p4), [#allocation15], 4294961056  ;;  %p11588_p7 = pmov %p11579_p0 }
 0x159   : > { %p11589_p8 = pmov %p11579_p0 }
 0x15a   : > { %8855 = dma.done.wait (%p11588_p7), [#allocation18], 2064  }
 0x15b   : > { %8857 = vsyncadd (%p11589_p8), [#allocation18], 4294965232  ;;  %p11590_p11 = pmov %p11579_p0 }
 0x15c   : > { %p11591_p13 = pmov %p11579_p0 }
 0x15d   : > { %8859 = dma.done.wait (%p11590_p11), [#allocation21], 16  }
 0x15e   : > { %8861 = vsyncadd (%p11591_p13), [#allocation21], 4294967280  ;;  %s6377_s20 = sshll.u32 %s8999_s29, 3  ;;  %v11422_v0 = vmov 0   ;;  %v7824_v1 = vld [vmem:[#allocation2 + $0x4] ss:$36 sps:$4 sm:$0xff]   ;;  %v632_v38 = vlaneseq }
 0x15f   : > { %768 = vmatprep.mubr.bf16.mxu0 %v11422_v0  ;;  %778 = vmatprep.mubr.bf16.mxu1 %v11422_v0  ;;  %p599_p1 = scmp.lt.s32.totalorder %s6377_s20, 15  ;;  %v7826_v2 = vld [vmem:[#allocation2] ss:$36 sps:$4 sm:$0xff]   ;;  %vm723_vm0 = vcmask 130048   ;;  %v7827_v9 = vld [vmem:[#allocation2 + $0x8] ss:$36 sps:$4 sm:$0xff]  }
 0x160   : > { %736 = vmatprep.subr.bf16.mxu0 %v7824_v1  ;;  %7225 = vmatprep.subr.bf16.mxu1 %v7824_v1  ;;  %v7829_v10 = vld [vmem:[#allocation2 + $0xc] ss:$36 sps:$4 sm:$0xff]   ;;  %v7830_v17 = vld [vmem:[#allocation2 + $0x18] ss:$36 sps:$4 sm:$0xff]   ;;  %v7839_v22 = vld [vmem:[#allocation2 + $0x20] ss:$36 sps:$4 sm:$0xff]  }
 0x161   : > { %s11890_s20 = smov (!%p599_p1, %s6377_s20), 15  ;;  %737 = vmatpush1.bf16.msra.mxu0 %v7826_v2  ;;  %7226 = vmatpush1.bf16.msra.mxu1 %v7826_v2  ;;  %v7832_v18 = vld [vmem:[#allocation2 + $0x1c] ss:$36 sps:$4 sm:$0xff]   ;;  %v7833_v19 = vld [vmem:[#allocation2 + $0x10] ss:$36 sps:$4 sm:$0xff]   ;;  %v9385_v39 = vshrl.u32 %v632_v38, 7 }
 0x162   : > { %s6378_s30 = sshll.u32 %s11890_s20, 3  ;;  %809 = vmatprep.subr.bf16.mxu1 %v7829_v10  ;;  %v7835_v20 = vld [vmem:[#allocation2 + $0x14] ss:$36 sps:$4 sm:$0xff]   ;;  %v7843_v27 = vld [vmem:[#allocation7 + $0x30] ss:$12 sps:$4 sm:$0xff]   ;;  %s8903_s21 = smov 96  }
 0x163   : > { %s602_s13 = scalar_lea.vmem %s11394_s0, %s6378_s30  ;;  %v7838_v21 = vld [vmem:[#allocation7 + $0x4] ss:$12 sps:$4 sm:$0xff]   ;;  %882 = vmatprep.subr.bf16.mxu0 %v7835_v20  ;;  %v7836_v23 = vld [vmem:[#allocation7] ss:$12 sps:$4 sm:$0xff]   ;;  %v7842_v24 = vld [vmem:[#allocation7 + $0x1c] ss:$12 sps:$4 sm:$0xff]  }
 0x164   : > { %v606_v3 = vld [vmem:[%s602_s13] sm:$0xff]  ;;  %v607_v4 = vld [vmem:[%s602_s13 + $0x8] sm:$0xff]  ;;  %v608_v6 = vld [vmem:[%s602_s13 + $0x10] sm:$0xff]  ;;  %11592 = vst [vmem:[#allocation37_spill] sm:$0xff] %v9385_v39  ;;  %v9388_v42 = vsub.s32 0, %v9385_v39  ;;  %v9393_v46 = vsub.s32 1, %v9385_v39 }
 0x165   : > { %v9322_v5 = vpack.c.bf16 %v607_v4, %v606_v3  ;;  %v609_v7 = vld [vmem:[%s602_s13 + $0x18] sm:$0xff]  ;;  %v610_v11 = vld [vmem:[%s602_s13 + $0x20] sm:$0xff]  ;;  %v611_v12 = vld [vmem:[%s602_s13 + $0x28] sm:$0xff]  ;;  %s8904_s14 = smov 64   ;;  %s595_s1 = sand.u32 1, %s8872_s26  }
 0x166   : > { %v9324_v8 = vpack.c.bf16 %v609_v7, %v608_v6  ;;  %v9332_v13 = vpack.c.bf16 %v611_v12, %v610_v11  ;;  %v612_v14 = vld [vmem:[%s602_s13 + $0x30] sm:$0xff]  ;;  %v613_v15 = vld [vmem:[%s602_s13 + $0x38] sm:$0xff]  ;;  %11593 = vst [vmem:[#allocation38_spill] sm:$0xff] %v9388_v42  ;;  %v9390_v45 = vld [vmem:[#allocation5] sm:$0xff]  ;;  %s6376_s3 = sshll.u32 %s595_s1, 6  ;;  %s6865_s19 = sshll.u32 %s8999_s29, 10 }
 0x167   : > { %6389 = vmatmul.mubr.msk.bf16.vlgmr.msra.gmra.mrb[0].mxu0 %vm723_vm0, %v9322_v5  ;;  %v9337_v16 = vpack.c.bf16 %v613_v15, %v612_v14  ;;  %v7840_v25 = vld [vmem:[#allocation7 + $0x18] ss:$12 sps:$4 sm:$0xff]   ;;  %v7845_v26 = vld [vmem:[#allocation7 + $0x34] ss:$12 sps:$4 sm:$0xff]   ;;  %v7854_v32 = vld [vmem:[#allocation7 + $0x7c] ss:$12 sps:$4 sm:$0xff]   ;;  %v9397_v49 = vrot.slane %v9390_v45, %v9388_v42  ;;  %v9401_v54 = vrot.slane %v9390_v45, %v9393_v46 }
 0x168   : > { %6390 = vmatmul.mubr.msk.bf16.vlgmr.msra.gmra.mrb[0].mxu1 %vm723_vm0, %v9324_v8  ;;  %914 = vmatprep.mubr.bf16.mxu0 %v11422_v0  ;;  %v7848_v28 = vld [vmem:[#allocation7 + $0x4c] ss:$12 sps:$4 sm:$0xff]   ;;  %v7846_v29 = vld [vmem:[#allocation7 + $0x48] ss:$12 sps:$4 sm:$0xff]   ;;  %v7851_v30 = vld [vmem:[#allocation7 + $0x64] ss:$12 sps:$4 sm:$0xff]  }
 0x169   : > { %810 = vmatpush1.bf16.msra.mxu1 %v7827_v9  ;;  %788 = vmatprep.mubr.bf16.mxu1 %v11422_v0  ;;  %v7849_v31 = vld [vmem:[#allocation7 + $0x60] ss:$12 sps:$4 sm:$0xff]   ;;  %v7852_v33 = vld [vmem:[#allocation7 + $0x78] ss:$12 sps:$4 sm:$0xff]   ;;  %v7855_v35 = vld [vmem:[#allocation7 + $0x90] ss:$12 sps:$4 sm:$0xff]  }
 0x16a   : > { %955 = vmatprep.subr.bf16.mxu1 %v7832_v18  ;;  %883 = vmatpush1.bf16.msra.mxu0 %v7833_v19  ;;  %v7857_v34 = vld [vmem:[#allocation7 + $0x94] ss:$12 sps:$4 sm:$0xff]   ;;  %v7860_v36 = vld [vmem:[#allocation7 + $0xac] ss:$12 sps:$4 sm:$0xff]   ;;  %v7863_v40 = vld [vmem:[#allocation7 + $0xc4] ss:$12 sps:$4 sm:$0xff]  }
 0x16b   : > { %7119 = vmatprep.subr.bf16.mxu0 %v7839_v22  ;;  %v7858_v37 = vld [vmem:[#allocation7 + $0xa8] ss:$12 sps:$4 sm:$0xff]   ;;  %v7861_v43 = vld [vmem:[#allocation7 + $0xc0] ss:$12 sps:$4 sm:$0xff]   ;;  %11594 = vst [vmem:[#allocation39_spill] sm:$0xff] %v9393_v46  ;;  %s597_s4 = scalar_lea.vmem [#allocation22], %s6376_s3 }
 0x16c   : > { %v7864_v41 = vld [vmem:[#allocation7 + $0xc8] ss:$12 sps:$4 sm:$0xff]   ;;  %v7869_v48 = vld [vmem:[#allocation7 + $0xe0] ss:$12 sps:$4 sm:$0xff]   ;;  %v7866_v50 = vld [vmem:[#allocation7 + $0xd8] ss:$12 sps:$4 sm:$0xff]  }
 0x16d   : > { %v7865_v44 = vld [vmem:[#allocation7 + $0x8] ss:$12 sps:$4 sm:$0xff]   ;;  %v7870_v51 = vld [vmem:[#allocation7 + $0x20] ss:$12 sps:$4 sm:$0xff]   ;;  %v7874_v62 = vld [vmem:[#allocation7 + $0xf8] ss:$12 sps:$4 sm:$0xff]  }
 0x16e   : > { %v7868_v47 = vld [vmem:[#allocation7 + $0xdc] ss:$12 sps:$4 sm:$0xff]   ;;  %v7873_v61 = vld [vmem:[#allocation7 + $0xf4] ss:$12 sps:$4 sm:$0xff]   ;;  %s6169_s17 = sshll.u32 %s597_s4, 4  ;;  %s11877_s28 = sld [smem:[#allocation80_spill]]  ;;  %s11344_s17 = int_to_ptr.vmem [resolvable:$true] %s6169_s17 }
 0x16f   : > { %6397 = vmatmul.mubr.msk.bf16.vlgmr.msra.gmra.mrb[4].mxu0 %vm723_vm0, %v9322_v5  ;;  %v7871_v4 = vld [vmem:[#allocation7 + $0xf0] ss:$12 sps:$4 sm:$0xff]   ;;  %v7876_v12 = vld [vmem:[#allocation7 + $0x108] ss:$12 sps:$4 sm:$0xff]   ;;  %s11353_s29 = scalar_lea.sflag [#allocation4], %s595_s1  ;;  %s8790_s16 = scalar_lea.vmem %s11344_s17, 1024 }
 0x170   : > { %6391 = vmatmul.mubr.msk.bf16.gmra.mrb[4].mxu1 %vm723_vm0, %v9332_v13  ;;  %7120 = vmatpush3.bf16.msra.mxu0 %v7839_v22  ;;  %v7880_v18 = vld [vmem:[#allocation7 + $0x50] ss:$12 sps:$4 sm:$0xff]   ;;  %v7884_v22 = vld [vmem:[#allocation7 + $0x128] ss:$12 sps:$4 sm:$0xff]   ;;  %p8791_p0 = scmp.ne.s32.totalorder %s11344_s17, %s8790_s16  ;;  %p11879_p6 = scmp.ne.s32.totalorder %s11565_s18, 0 }
 0x171   : > { %798 = vmatprep.mubr.bf16.mxu1 %v11422_v0  ;;  %924 = vmatprep.mubr.bf16.mxu0 %v11422_v0  ;;  %s8905_s2 = smov [#allocation22]  }
 0x172   : > { %6871 = vmatprep.subr.bf16.mxu0 %v7864_v41  ;;  %p8792_p5 = pnand %p8791_p0, %p11879_p6  ;;  %s8794_s20 = sshll.u32 %s8905_s2, 4  ;;  %s8795_s20 = int_to_ptr.vmem [resolvable:$false] %s8794_s20 }
 0x173   : > { %s8796_s30 = scalar_lea.vmem %s8795_s20, 2048  ;;  %p8797_p12 = scmp.lt.s32.totalorder %s11344_s17, %s8795_s20 }
 0x174   : > { %s11878_s15 = smov %s11877_s28  ;;  %s11349_s25 = scalar_lea.hbm %s11877_s28, %s6865_s19 }
 0x175   : > { %p8793_p9 = pneg %p8792_p5  ;;  %p8798_p10 = scmp.lt.s32.totalorder %s8796_s30, %s8790_s16 }
 0x177   : > { %6398 = vmatmul.mubr.msk.bf16.gmra.mrb[8].mxu0 %vm723_vm0, %v9324_v8  ;;  %p8799_p2 = por %p8798_p10, %p8797_p12 }
 0x178   : > { %6392 = vmatmul.mubr.msk.bf16.gmra.mrb[8].mxu1 %vm723_vm0, %v9337_v16  ;;  %934 = vmatprep.mubr.bf16.mxu0 %v11422_v0 }
 0x179   : > { %841 = vmatprep.mubr.bf16.mxu1 %v11422_v0  ;;  %p8800_p3 = pnand %p8799_p2, %p8793_p9 }
 0x17f   : > { %6399 = vmatmul.mubr.msk.bf16.gmra.mrb[12].mxu0 %vm723_vm0, %v9332_v13 }
 0x180   : > { %6393 = vmatmul.mubr.msk.bf16.vlgmr.msra.gmra.mrb[12].mxu1 %vm723_vm0, %v9322_v5  ;;  %944 = vmatprep.mubr.bf16.mxu0 %v11422_v0 }
 0x181   : > { %851 = vmatprep.mubr.bf16.mxu1 %v11422_v0  ;;  %956 = vmatpush1.bf16.msra.mxu1 %v7830_v17  ;;  %v7879_v17 = vld [vmem:[#allocation7 + $0x110] ss:$12 sps:$4 sm:$0xff]  }
 0x182   : > { %1822 = vmatprep.subr.bf16.mxu1 %v7838_v21  ;;  %v7883_v21 = vld [vmem:[#allocation7 + $0x124] ss:$12 sps:$4 sm:$0xff]  }
 0x187   : > { %6400 = vmatmul.mubr.msk.bf16.gmra.mrb[16].mxu0 %vm723_vm0, %v9337_v16 }
 0x188   : > { %6394 = vmatmul.mubr.msk.bf16.gmra.mrb[16].mxu1 %vm723_vm0, %v9324_v8  ;;  %7121 = vmatprep.mubr.msk.bf16.mxu0 %vm723_vm0, %v9322_v5 }
 0x189   : > { %861 = vmatprep.mubr.bf16.mxu1 %v11422_v0 }
 0x18f   : > { %7122 = vmatmul.mubr.msk.bf16.vlgmr.msra.gmra.mrb[20].mxu0 %vm723_vm0, %v9324_v8 }
 0x190   : > { %6395 = vmatmul.mubr.msk.bf16.gmra.mrb[20].mxu1 %vm723_vm0, %v9332_v13  ;;  %7125 = vmatprep.mubr.msk.bf16.mxu0 %vm723_vm0, %v9332_v13 }
 0x191   : > { %871 = vmatprep.mubr.bf16.mxu1 %v11422_v0  ;;  %6872 = vmatpush3.bf16.msra.mxu0 %v7865_v44 }
 0x192   : > { %6873 = vmatprep.subr.bf16.mxu0 %v7869_v48  ;;  %v7894_v48 = vld [vmem:[#allocation7 + $0x158] ss:$12 sps:$4 sm:$0xff]  }
 0x195   : > { %6874 = vmatpush3.bf16.msra.mxu0 %v7870_v51  ;;  %v7891_v51 = vld [vmem:[#allocation7 + $0x150] ss:$12 sps:$4 sm:$0xff]  }
 0x196   : > { %6875 = vmatprep.subr.bf16.mxu0 %v7874_v62 }
 0x197   : > { %7126 = vmatmul.mubr.msk.bf16.gmra.mrb[24].mxu0 %vm723_vm0, %v9337_v16 }
 0x198   : > { %6396 = vmatmul.mubr.msk.bf16.gmra.mrb[24].mxu1 %vm723_vm0, %v9337_v16 }
 0x199   : > { %987 = vmatprep.mubr.bf16.mxu1 %v11422_v0 }
 0x1a0   : > { %6401 = vmatmul.mubr.msk.bf16.vlgmr.msra.gmra.mrb[28].mxu1 %vm723_vm0, %v9322_v5 }
 0x1a1   : > { %1823 = vmatpush1.bf16.msra.mxu1 %v7836_v23  ;;  %997 = vmatprep.mubr.bf16.mxu1 %v11422_v0 }
 0x1a2   : > { %1824 = vmatprep.subr.bf16.mxu1 %v7842_v24 }
 0x1a5   : > { %1825 = vmatpush1.bf16.msra.mxu1 %v7840_v25 }
 0x1a6   : > { %1826 = vmatprep.subr.bf16.mxu1 %v7845_v26 }
 0x1a8   : > { %6402 = vmatmul.mubr.msk.bf16.gmra.mrb[32].mxu1 %vm723_vm0, %v9324_v8  ;;  %v7875_v8 = vld [vmem:[#allocation7 + $0x38] ss:$12 sps:$4 sm:$0xff]  }
 0x1a9   : > { %1827 = vmatpush1.bf16.msra.mxu1 %v7843_v27  ;;  %1007 = vmatprep.mubr.bf16.mxu1 %v11422_v0  ;;  %v7881_v27 = vld [vmem:[#allocation7 + $0x120] ss:$12 sps:$4 sm:$0xff]  }
 0x1aa   : > { %1828 = vmatprep.subr.bf16.mxu1 %v7848_v28  ;;  %6876 = vmatpush3.bf16.msra.mxu0 %v7875_v8  ;;  %v9479_v8 = vld [vmem:[#allocation7 + $0x188] ss:$12 sps:$4 sm:$0xff]  }
 0x1ab   : > { %6877 = vmatprep.subr.bf16.mxu0 %v7879_v17 }
 0x1ad   : > { %1829 = vmatpush1.bf16.msra.mxu1 %v7846_v29 }
 0x1ae   : > { %1830 = vmatprep.subr.bf16.mxu1 %v7851_v30  ;;  %6878 = vmatpush3.bf16.msra.mxu0 %v7880_v18 }
 0x1af   : > { %6879 = vmatprep.subr.bf16.mxu0 %v7884_v22 }
 0x1b0   : > { %6403 = vmatmul.mubr.msk.bf16.gmra.mrb[36].mxu1 %vm723_vm0, %v9332_v13  ;;  %v7878_v13 = vld [vmem:[#allocation7 + $0x10c] ss:$12 sps:$4 sm:$0xff]  }
 0x1b1   : > { %1831 = vmatpush1.bf16.msra.mxu1 %v7849_v31  ;;  %1017 = vmatprep.mubr.bf16.mxu1 %v11422_v0  ;;  %v7885_v31 = vld [vmem:[#allocation7 + $0x68] ss:$12 sps:$4 sm:$0xff]  }
 0x1b2   : > { %1832 = vmatprep.subr.bf16.mxu1 %v7854_v32  ;;  %v7888_v32 = vld [vmem:[#allocation7 + $0x13c] ss:$12 sps:$4 sm:$0xff]   ;;  %6880 = vmatpush3.bf16.msra.mxu0 %v7885_v31 }
 0x1b5   : > { %1833 = vmatpush1.bf16.msra.mxu1 %v7852_v33  ;;  %v7889_v33 = vld [vmem:[#allocation7 + $0x140] ss:$12 sps:$4 sm:$0xff]  }
 0x1b6   : > { %1834 = vmatprep.subr.bf16.mxu1 %v7857_v34  ;;  %6881 = vmatprep.subr.bf16.mxu0 %v7889_v33 }
 0x1b8   : > { %6404 = vmatmul.mubr.msk.bf16.gmra.mrb[40].mxu1 %vm723_vm0, %v9337_v16 }
 0x1b9   : > { %1835 = vmatpush1.bf16.msra.mxu1 %v7855_v35  ;;  %v7886_v35 = vld [vmem:[#allocation7 + $0x138] ss:$12 sps:$4 sm:$0xff]  }
 0x1ba   : > { %1836 = vmatprep.subr.bf16.mxu1 %v7860_v36 }
 0x1bd   : > { %1837 = vmatpush1.bf16.msra.mxu1 %v7858_v37  ;;  %v7890_v37 = vld [vmem:[#allocation7 + $0x80] ss:$12 sps:$4 sm:$0xff]  }
 0x1be   : > { %1838 = vmatprep.subr.bf16.mxu1 %v7863_v40  ;;  %6882 = vmatpush3.bf16.msra.mxu0 %v7890_v37 }
 0x1bf   : > { %6883 = vmatprep.subr.bf16.mxu0 %v7894_v48 }
 0x1c1   : > { %1839 = vmatpush1.bf16.msra.mxu1 %v7861_v43  ;;  %v9466_v43 = vsub.s32 2, %v9385_v39 }
 0x1c2   : > { %1840 = vmatprep.subr.bf16.mxu1 %v7868_v47  ;;  %v7893_v47 = vld [vmem:[#allocation7 + $0x154] ss:$12 sps:$4 sm:$0xff]  }
 0x1c3   : > { %11595 = vst [vmem:[#allocation40_spill] sm:$0xff] %v9466_v43 }
 0x1c5   : > { %1841 = vmatpush1.bf16.msra.mxu1 %v7866_v50 }
 0x1c6   : > { %1842 = vmatprep.subr.bf16.mxu1 %v7873_v61 }
 0x1c9   : > { %1843 = vmatpush1.bf16.msra.mxu1 %v7871_v4  ;;  %v7903_v4 = vld [vmem:[#allocation7 + $0x184] ss:$12 sps:$4 sm:$0xff]  }
 0x1ca   : > { %1844 = vmatprep.subr.bf16.mxu1 %v7878_v13 }
 0x1cd   : > { %1845 = vmatpush1.bf16.msra.mxu1 %v7876_v12 }
 0x1ce   : > { %1846 = vmatprep.subr.bf16.mxu1 %v7883_v21 }
 0x1d1   : > { %1847 = vmatpush1.bf16.msra.mxu1 %v7881_v27 }
 0x1d2   : > { %1848 = vmatprep.subr.bf16.mxu1 %v7888_v32 }
 0x1d5   : > { %1849 = vmatpush1.bf16.msra.mxu1 %v7886_v35 }
 0x1d6   : > { %1850 = vmatprep.subr.bf16.mxu1 %v7893_v47 }
 0x1d9   : > { %1851 = vmatpush1.bf16.msra.mxu1 %v7891_v51 }
 0x23a   : > { %v770_v52 = vpop.f32.mrb[0].mxu0 }
 0x23b   : > { %v780_v53 = vpop.f32.mrb[0].mxu1  ;;  %v9404_v55 = vadd.f32 %v770_v52, %v9397_v49  ;;  %v772_v56 = vpop.f32.mrb[1].mxu0  ;;  %v7895_v52 = vld [vmem:[#allocation7 + $0x98] ss:$12 sps:$4 sm:$0xff]  }
 0x23c   : > { %v782_v57 = vpop.f32.mrb[1].mxu1  ;;  %v9407_v58 = vadd.f32 %v772_v56, %v9401_v54  ;;  %v774_v59 = vpop.f32.mrb[2].mxu0  ;;  %v9440_v23 = vadd.f32 %v780_v53, %v9397_v49  ;;  %v9472_v53 = vrot.slane %v9390_v45, %v9466_v43  ;;  %v7896_v56 = vld [vmem:[#allocation7 + $0x168] ss:$12 sps:$4 sm:$0xff]   ;;  %6884 = vmatpush3.bf16.msra.mxu0 %v7895_v52 }
 0x23d   : > { %v784_v60 = vpop.f32.mrb[2].mxu1  ;;  %v1093_v63 = vmax.f32 %v9404_v55, 0.0  ;;  %v9411_v1 = vadd.f32 %v774_v59, %v9397_v49  ;;  %v776_v2 = vpop.f32.mrb[3].mxu0  ;;  %v9421_v9 = vadd.f32 %v782_v57, %v9401_v54  ;;  %v7898_v57 = vld [vmem:[#allocation7 + $0x16c] ss:$12 sps:$4 sm:$0xff]  }
 0x23e   : > { %v786_v3 = vpop.f32.mrb[3].mxu1  ;;  %v1094_v5 = vmax.f32 %v9407_v58, 0.0  ;;  %v9415_v6 = vadd.f32 %v776_v2, %v9401_v54  ;;  %v9426_v14 = vadd.f32 %v784_v60, %v9397_v49  ;;  %v11445_v34 = vmax.f32 %v9440_v23, 0.0  ;;  %v7899_v59 = vld [vmem:[#allocation7 + $0x170] ss:$12 sps:$4 sm:$0xff]   ;;  %1852 = vmatprep.subr.bf16.mxu1 %v7898_v57 }
 0x23f   : > { %v9418_v7 = vadd.f32 %v786_v3, %v9401_v54  ;;  %v1102_v10 = vmax.f32 %v9411_v1, 0.0  ;;  %v11443_v24 = vmax.f32 %v9421_v9, 0.0  ;;  %v7900_v60 = vld [vmem:[#allocation7 + $0xb0] ss:$12 sps:$4 sm:$0xff]   ;;  %6885 = vmatprep.subr.bf16.mxu0 %v7899_v59  ;;  %1853 = vmatpush1.bf16.msra.mxu1 %v7896_v56 }
 0x240   : > { %v1103_v11 = vmax.f32 %v9415_v6, 0.0  ;;  %v11444_v28 = vmax.f32 %v9426_v14, 0.0  ;;  %6886 = vmatpush3.bf16.msra.mxu0 %v7900_v60  ;;  %1895 = vmatprep.subr.bf16.mxu1 %v7903_v4 }
 0x241   : > { %v11442_v15 = vmax.f32 %v9418_v7, 0.0  ;;  %v7594_v16 = vpack.i.bf16 %v1102_v10, %v1093_v63  ;;  %7129 = vmatprep.subr.bf16.mxu0 %v9479_v8 }
 0x242   : > { %v7584_v20 = vpack.i.bf16 %v1103_v11, %v1094_v5  ;;  %v7609_v36 = vpack.i.bf16 %v11444_v28, %v11445_v34 }
 0x243   : > { %v9433_v19 = vpop.f32.mrb[4].mxu1  ;;  %7595 = vrot.lane.b32.xlu1 %v7594_v16, %s8903_s21  ;;  %v7599_v29 = vpack.i.bf16 %v11442_v15, %v11443_v24 }
 0x244   : > { %v9443_v25 = vpop.f32.mrb[5].mxu1  ;;  %7585 = vrot.lane.b32.xlu0 %v7584_v20, %s8903_s21 }
 0x245   : > { %v9446_v26 = vpop.f32.mrb[6].mxu1  ;;  %v9509_v32 = vadd.f32 %v9443_v25, %v9401_v54  ;;  %v9524_v25 = vadd.f32 %v9433_v19, %v9397_v49 }
 0x246   : > { %v796_v30 = vpop.f32.mrb[7].mxu1 }
 0x247   : > { %7600 = vrot.lane.b32.xlu1 %v7599_v29, %s8903_s21  ;;  %v9500_v27 = vadd.f32 %v796_v30, %v9401_v54  ;;  %v11437_v48 = vmax.f32 %v9509_v32, 0.0 }
 0x249   : > { %v11440_v30 = vmax.f32 %v9500_v27, 0.0 }
 0x24b   : > { %v9460_v40 = vpop.f32.mrb[8].mxu1  ;;  %7610 = vrot.lane.b32.xlu1 %v7609_v36, %s8903_s21  ;;  %v9515_v36 = vadd.f32 %v9446_v26, %v9397_v49  ;;  %v7614_v57 = vpack.i.bf16 %v11440_v30, %v11437_v48  ;;  %v9631_v48 = vpop.f32.mrb[4].mxu0 }
 0x24c   : > { %v9462_v41 = vpop.f32.mrb[9].mxu1 }
 0x24d   : > { %v9468_v44 = vpop.f32.mrb[10].mxu1  ;;  %v11436_v56 = vmax.f32 %v9515_v36, 0.0 }
 0x24e   : > { %v806_v50 = vpop.f32.mrb[11].mxu1 }
 0x24f   : > { %v9539_v19 = vadd.f32 %v806_v50, %v9401_v54 }
 0x253   : > { %v843_v61 = vpop.f32.mrb[12].mxu1 }
 0x254   : > { %v9475_v62 = vadd.f32 %v843_v61, %v9472_v53  ;;  %v9477_v2 = vpop.f32.mrb[13].mxu1  ;;  %v11438_v61 = vmax.f32 %v9524_v25, 0.0 }
 0x255   : > { %v847_v3 = vpop.f32.mrb[14].mxu1 }
 0x256   : > { %v9482_v45 = vadd.f32 %v847_v3, %v9472_v53  ;;  %v9484_v12 = vpop.f32.mrb[15].mxu1  ;;  %v11429_v13 = vmax.f32 %v9475_v62, 0.0  ;;  %v9549_v3 = vadd.f32 %v9462_v41, %v9401_v54  ;;  %v7624_v50 = vpack.i.bf16 %v11436_v56, %v11438_v61 }
 0x258   : > { %v11428_v16 = vmax.f32 %v9482_v45, 0.0 }
 0x25a   : > { %v7589_v17 = vpack.i.bf16 %v11428_v16, %v11429_v13 }
 0x25b   : > { %v853_v18 = vpop.f32.mrb[16].mxu1 }
 0x25c   : > { %v9494_v20 = vadd.f32 %v853_v18, %v9472_v53  ;;  %v9496_v21 = vpop.f32.mrb[17].mxu1  ;;  %7590 = vrot.lane.b32.xlu0 %v7589_v17, %s8903_s21  ;;  %v9560_v18 = vadd.f32 %v9468_v44, %v9397_v49 }
 0x25d   : > { %v857_v22 = vpop.f32.mrb[18].mxu1 }
 0x25e   : > { %v9503_v29 = vadd.f32 %v857_v22, %v9472_v53  ;;  %v9505_v31 = vpop.f32.mrb[19].mxu1  ;;  %v11427_v33 = vmax.f32 %v9494_v20, 0.0  ;;  %v11434_v22 = vmax.f32 %v9539_v19, 0.0  ;;  %v11430_v0 = vmax.f32 %v9560_v18, 0.0 }
 0x260   : > { %v11426_v35 = vmax.f32 %v9503_v29, 0.0 }
 0x262   : > { %v7604_v37 = vpack.i.bf16 %v11426_v35, %v11427_v33  ;;  %v9606_v35 = vand.u32 127, %v632_v38 }
 0x263   : > { %v863_v47 = vpop.f32.mrb[20].mxu1 }
 0x264   : > { %v9528_v51 = vadd.f32 %v863_v47, %v9472_v53  ;;  %v9530_v52 = vpop.f32.mrb[21].mxu1  ;;  %7605 = vrot.lane.b32.xlu0 %v7604_v37, %s8903_s21  ;;  %v9569_v37 = vadd.f32 %v9460_v40, %v9397_v49  ;;  %v11435_v47 = vmax.f32 %v9549_v3, 0.0  ;;  %vm1361_vm1 = vcmp.lt.s32.totalorder %v9606_v35, 96 }
 0x265   : > { %v867_v26 = vpop.f32.mrb[22].mxu1  ;;  %vm2170_vm2 = vcmp.lt.s32.totalorder %v9606_v35, 64 }
 0x266   : > { %v9542_v59 = vadd.f32 %v867_v26, %v9472_v53  ;;  %v9544_v60 = vpop.f32.mrb[23].mxu1  ;;  %v11425_v4 = vmax.f32 %v9528_v51, 0.0  ;;  %v7629_v49 = vpack.i.bf16 %v11434_v22, %v11435_v47 }
 0x268   : > { %v11424_v17 = vmax.f32 %v9542_v59, 0.0  ;;  %7615 = vrot.lane.b32.xlu0 %v7614_v57, %s8903_s21 }
 0x26a   : > { %v7619_v54 = vpack.i.bf16 %v11424_v17, %v11425_v4 }
 0x26b   : > { %v873_v41 = vpop.f32.mrb[24].mxu1 }
 0x26c   : > { %v9573_v26 = vadd.f32 %v873_v41, %v9472_v53  ;;  %v9575_v57 = vpop.f32.mrb[25].mxu1  ;;  %7625 = vrot.lane.b32.xlu0 %v7624_v50, %s8903_s21  ;;  %7620 = vrot.lane.b32.xlu1 %v7619_v54, %s8903_s21  ;;  %v11431_v41 = vmax.f32 %v9569_v37, 0.0 }
 0x26d   : > { %11596 = vst [vmem:[#allocation41_spill] sm:$0xff] %v9575_v57  ;;  %v877_v44 = vpop.f32.mrb[26].mxu1 }
 0x26e   : > { %v9585_v40 = vadd.f32 %v877_v44, %v9472_v53  ;;  %v9587_v17 = vpop.f32.mrb[27].mxu1  ;;  %v11433_v4 = vmax.f32 %v9573_v26, 0.0  ;;  %v7639_v54 = vpack.i.bf16 %v11430_v0, %v11431_v41 }
 0x26f   : > { %11597 = vst [vmem:[#allocation42_spill] sm:$0xff] %v9587_v17 }
 0x270   : > { %v11432_v50 = vmax.f32 %v9585_v40, 0.0  ;;  %7630 = vrot.lane.b32.xlu1 %v7629_v49, %s8903_s21 }
 0x272   : > { %v7634_v53 = vpack.i.bf16 %v11432_v50, %v11433_v4 }
 0x274   : > { %7635 = vrot.lane.b32.xlu0 %v7634_v53, %s8903_s21  ;;  %7640 = vrot.lane.b32.xlu1 %v7639_v54, %s8903_s21  ;;  %v9613_v53 = vpop.f32.mrb[28].mxu1 }
 0x275   : > { %11598 = vst [vmem:[#allocation43_spill] sm:$0xff] %v9613_v53  ;;  %v9625_v22 = vpop.f32.mrb[29].mxu1 }
 0x276   : > { %11599 = vst [vmem:[#allocation44_spill] sm:$0xff] %v9625_v22  ;;  %v9629_v56 = vpop.f32.mrb[30].mxu1  ;;  %v7912_v22 = vld [vmem:[#allocation7 + $0x1b8] ss:$12 sps:$4 sm:$0xff]  }
 0x277   : > { %11600 = vst [vmem:[#allocation45_spill] sm:$0xff] %v9629_v56  ;;  %v9633_v61 = vpop.f32.mrb[31].mxu1 }
 0x278   : > { %11601 = vst [vmem:[#allocation46_spill] sm:$0xff] %v9633_v61 }
 0x2b5   : > { %v9603_v44 = vpop.permute.xlu1 %7595 }
 0x2b6   : > { %v7586_v49 = vpop.permute.xlu0 %7585  ;;  %v11441_v16 = vunpack.i.h.bf16 %v9603_v44  ;;  %v11439_v13 = vunpack.i.l.bf16 %v9603_v44 }
 0x2b7   : > { %v7588_v0 = vunpack.i.h.bf16 %v7586_v49  ;;  %v7587_v41 = vunpack.i.l.bf16 %v7586_v49 }
 0x2b9   : > { %v7601_v33 = vpop.permute.xlu1 %7600  ;;  %v1370_v38 = vsel %vm1361_vm1, %v11439_v13, %v7587_v41  ;;  %v1371_v54 = vsel %vm1361_vm1, %v11441_v16, %v7588_v0  ;;  %v9635_v13 = vpop.f32.mrb[5].mxu0 }
 0x2ba   : > { %v1386_v30 = vmax.f32 %v1093_v63, %v1370_v38  ;;  %v1389_v16 = vmax.f32 %v1102_v10, %v1371_v54  ;;  %v9649_v28 = vpop.f32.mrb[6].mxu0  ;;  %v7602_v38 = vunpack.i.l.bf16 %v7601_v33 }
 0x2bb   : > { %v9657_v10 = vpop.f32.mrb[7].mxu0 }
 0x2bc   : > { %v1410_v61 = vpack.c.bf16 %v1389_v16, %v1386_v30 }
 0x2bd   : > { %v9611_v50 = vpop.permute.xlu1 %7610 }
 0x2be   : > { %v11448_v55 = vunpack.i.l.bf16 %v9611_v50  ;;  %v11603_v58 = vunpack.i.h.bf16 %v9611_v50 }
 0x2c0   : > { %v1372_v34 = vsel %vm1361_vm1, %v11448_v55, %v7602_v38 }
 0x2ce   : > { %v9623_v4 = vpop.permute.xlu0 %7590 }
 0x2cf   : > { %v11447_v49 = vunpack.i.h.bf16 %v9623_v4  ;;  %v11446_v47 = vunpack.i.l.bf16 %v9623_v4 }
 0x2d1   : > { %v1362_v15 = vsel %vm1361_vm1, %v7587_v41, %v11446_v47  ;;  %v1363_v24 = vsel %vm1361_vm1, %v7588_v0, %v11447_v49  ;;  %v7603_v41 = vunpack.i.h.bf16 %v7601_v33  ;;  %v7901_v47 = vld [vmem:[#allocation7 + $0x180] ss:$12 sps:$4 sm:$0xff]   ;;  %v7907_v0 = vld [vmem:[#allocation7 + $0x19c] ss:$12 sps:$4 sm:$0xff]   ;;  %v9659_v49 = vpop.f32.mrb[32].mxu1 }
 0x2d2   : > { %v1387_v63 = vmax.f32 %v1094_v5, %v1362_v15  ;;  %v1390_v1 = vmax.f32 %v1103_v11, %v1363_v24  ;;  %11602 = vst [vmem:[#allocation47_spill] sm:$0xff] %v9659_v49  ;;  %v7908_v11 = vld [vmem:[#allocation7 + $0x1a0] ss:$12 sps:$4 sm:$0xff]   ;;  %v9671_v15 = vpop.f32.mrb[8].mxu0  ;;  %v9677_v30 = vpop.f32.mrb[33].mxu1 }
 0x2d3   : > { %v1373_v5 = vsel %vm1361_vm1, %v11603_v58, %v7603_v41  ;;  %v9675_v33 = vpop.f32.mrb[9].mxu0  ;;  %11604 = vst [vmem:[#allocation48_spill] sm:$0xff] %v9677_v30  ;;  %v7911_v49 = vld [vmem:[#allocation7 + $0x1b4] ss:$12 sps:$4 sm:$0xff]  }
 0x2d4   : > { %v1411_v54 = vpack.c.bf16 %v1390_v1, %v1387_v63  ;;  %v7905_v63 = vld [vmem:[#allocation7 + $0x198] ss:$12 sps:$4 sm:$0xff]   ;;  %v9680_v1 = vpop.f32.mrb[10].mxu0 }
 0x2d6   : > { %v9669_v6 = vpop.permute.xlu0 %7605  ;;  %1854 = vmatprep.mubr.bf16.mxu1 %v1411_v54  ;;  %2000 = vmatprep.mubr.bf16.mxu0 %v1411_v54  ;;  %v9682_v54 = vpop.f32.mrb[34].mxu1 }
 0x2d7   : > { %v11450_v24 = vunpack.i.h.bf16 %v9669_v6  ;;  %v11449_v16 = vunpack.i.l.bf16 %v9669_v6  ;;  %1855 = vmatmul.mubr.bf16.vlgmr.msra.gmra.mrb[44].mxu1 %v1410_v61  ;;  %2001 = vmatmul.mubr.bf16.vlgmr.msra.gmra.mrb[28].mxu0 %v1410_v61  ;;  %11605 = vst [vmem:[#allocation49_spill] sm:$0xff] %v9682_v54  ;;  %v9696_v54 = vpop.f32.mrb[11].mxu0  ;;  %v9698_v57 = vpop.f32.mrb[35].mxu1 }
 0x2d8   : > { %1896 = vmatpush1.bf16.msra.mxu1 %v7901_v47  ;;  %7130 = vmatpush3.bf16.msra.mxu0 %v9479_v8  ;;  %v11606_v47 = vmax.f32 %v9440_v23, 0.0  ;;  %v11607_v8 = vmax.f32 %v9426_v14, 0.0  ;;  %11608 = vst [vmem:[#allocation50_spill] sm:$0xff] %v9698_v57 }
 0x2d9   : > { %v1364_v58 = vsel %vm1361_vm1, %v7602_v38, %v11449_v16  ;;  %v1365_v61 = vsel %vm1361_vm1, %v7603_v41, %v11450_v24  ;;  %1897 = vmatprep.subr.bf16.mxu1 %v7907_v0  ;;  %7131 = vmatprep.subr.bf16.mxu0 %v7908_v11  ;;  %v11609_v38 = vmax.f32 %v9421_v9, 0.0  ;;  %v11610_v41 = vmax.f32 %v9418_v7, 0.0  ;;  %v7916_v7 = vld [vmem:[#allocation7 + $0x1d0] ss:$12 sps:$4 sm:$0xff]  }
 0x2da   : > { %v1392_v55 = vmax.f32 %v11606_v47, %v1372_v34  ;;  %v1395_v30 = vmax.f32 %v11607_v8, %v1373_v5  ;;  %v7616_v56 = vpop.permute.xlu0 %7615  ;;  %v7909_v34 = vld [vmem:[#allocation7 + $0x1b0] ss:$12 sps:$4 sm:$0xff]   ;;  %v7915_v5 = vld [vmem:[#allocation7 + $0x1cc] ss:$12 sps:$4 sm:$0xff]   ;;  %v9704_v47 = vpop.f32.mrb[36].mxu1 }
 0x2db   : > { %v1393_v16 = vmax.f32 %v11609_v38, %v1364_v58  ;;  %v1396_v0 = vmax.f32 %v11610_v41, %v1365_v61  ;;  %11611 = vst [vmem:[#allocation51_spill] sm:$0xff] %v9704_v47  ;;  %v7618_v8 = vunpack.i.h.bf16 %v7616_v56  ;;  %v7617_v24 = vunpack.i.l.bf16 %v7616_v56  ;;  %v9716_v56 = vpop.f32.mrb[37].mxu1  ;;  %v7919_v41 = vld [vmem:[#allocation7 + $0x1e4] ss:$12 sps:$4 sm:$0xff]  }
 0x2dc   : > { %1898 = vmatpush1.bf16.msra.mxu1 %v7905_v63  ;;  %7132 = vmatpush3.bf16.msra.mxu0 %v7908_v11  ;;  %v1413_v14 = vpack.c.bf16 %v1395_v30, %v1392_v55  ;;  %11612 = vst [vmem:[#allocation52_spill] sm:$0xff] %v9716_v56  ;;  %v7913_v30 = vld [vmem:[#allocation7 + $0x1c8] ss:$12 sps:$4 sm:$0xff]   ;;  %v9720_v58 = vpop.f32.mrb[38].mxu1 }
 0x2dd   : > { %v1414_v23 = vpack.c.bf16 %v1396_v0, %v1393_v16  ;;  %1899 = vmatprep.subr.bf16.mxu1 %v7911_v49  ;;  %7133 = vmatprep.subr.bf16.mxu0 %v7912_v22  ;;  %v9714_v16 = vpop.f32.mrb[12].mxu0  ;;  %11614 = vst [vmem:[#allocation54_spill] sm:$0xff] %v9720_v58  ;;  %v7920_v0 = vld [vmem:[#allocation7 + $0x1e8] ss:$12 sps:$4 sm:$0xff]   ;;  %v11617_v58 = vmax.f32 %v9524_v25, 0.0 }
 0x2de   : > { %v9706_v57 = vpop.permute.xlu0 %7625  ;;  %v9708_v53 = vpop.permute.xlu1 %7620 }
 0x2df   : > { %1864 = vmatprep.mubr.bf16.mxu1 %v1414_v23  ;;  %2008 = vmatprep.mubr.bf16.mxu0 %v1414_v23  ;;  %v11452_v9 = vunpack.i.h.bf16 %v9706_v57  ;;  %v11451_v11 = vunpack.i.l.bf16 %v9706_v57  ;;  %v11453_v55 = vunpack.i.h.bf16 %v9708_v53  ;;  %v11454_v49 = vunpack.i.l.bf16 %v9708_v53  ;;  %v9718_v63 = vpop.f32.mrb[13].mxu0 }
 0x2e0   : > { %1865 = vmatmul.mubr.bf16.gmra.mrb[48].mxu1 %v1413_v14  ;;  %2009 = vmatmul.mubr.bf16.gmra.mrb[32].mxu0 %v1413_v14  ;;  %11613 = vst [vmem:[#allocation53_spill] sm:$0xff] %v9718_v63  ;;  %v9734_v23 = vpop.f32.mrb[14].mxu0 }
 0x2e1   : > { %1900 = vmatpush1.bf16.msra.mxu1 %v7909_v34  ;;  %7134 = vmatpush3.bf16.msra.mxu0 %v7912_v22  ;;  %v1374_v61 = vsel %vm1361_vm1, %v11451_v11, %v7617_v24  ;;  %v1375_v38 = vsel %vm1361_vm1, %v11452_v9, %v7618_v8  ;;  %v1367_v22 = vsel %vm1361_vm1, %v7618_v8, %v11453_v55  ;;  %v9736_v34 = vpop.f32.mrb[39].mxu1  ;;  %v11616_v9 = vmax.f32 %v9500_v27, 0.0 }
 0x2e2   : > { %1901 = vmatprep.subr.bf16.mxu1 %v7915_v5  ;;  %11615 = vst [vmem:[#allocation55_spill] sm:$0xff] %v9736_v34  ;;  %v1366_v14 = vsel %vm1361_vm1, %v7617_v24, %v11454_v49  ;;  %v7631_v11 = vpop.permute.xlu1 %7630  ;;  %7135 = vmatprep.subr.bf16.mxu0 %v7916_v7  ;;  %v1398_v8 = vmax.f32 %v11617_v58, %v1374_v61  ;;  %v9746_v5 = vpop.f32.mrb[15].mxu0  ;;  %v11618_v55 = vmax.f32 %v9509_v32, 0.0  ;;  %v11619_v34 = vmax.f32 %v9515_v36, 0.0  ;;  %v7917_v49 = vld [vmem:[#allocation7 + $0x1e0] ss:$12 sps:$4 sm:$0xff]  }
 0x2e3   : > { %v1402_v56 = vmax.f32 %v11616_v9, %v1367_v22  ;;  %v9752_v27 = vpop.f32.mrb[40].mxu1  ;;  %v7633_v9 = vunpack.i.h.bf16 %v7631_v11  ;;  %v7632_v25 = vunpack.i.l.bf16 %v7631_v11  ;;  %v7923_v32 = vld [vmem:[#allocation7 + $0x1fc] ss:$12 sps:$4 sm:$0xff]   ;;  %v11622_v11 = vunpack.i.l.bf16 %v9603_v44 }
 0x2e4   : > { %v1399_v47 = vmax.f32 %v11618_v55, %v1366_v14  ;;  %v1401_v17 = vmax.f32 %v11619_v34, %v1375_v38  ;;  %11620 = vst [vmem:[#allocation56_spill] sm:$0xff] %v9752_v27  ;;  %v11623_v38 = vunpack.i.l.bf16 %v9623_v4  ;;  %v11626_v14 = vunpack.i.h.bf16 %v9623_v4  ;;  %v7921_v4 = vld [vmem:[#allocation7 + $0x1f8] ss:$12 sps:$4 sm:$0xff]  }
 0x2e5   : > { %1902 = vmatpush1.bf16.msra.mxu1 %v7913_v30  ;;  %7136 = vmatpush3.bf16.msra.mxu0 %v7916_v7  ;;  %v9764_v30 = vpop.f32.mrb[41].mxu1  ;;  %v11634_v27 = vmax.f32 %v9560_v18, 0.0  ;;  %v7932_v18 = vld [vmem:[#allocation7 + $0x230] ss:$12 sps:$4 sm:$0xff]  }
 0x2e6   : > { %v1417_v63 = vpack.c.bf16 %v1402_v56, %v1399_v47  ;;  %v1416_v24 = vpack.c.bf16 %v1401_v17, %v1398_v8  ;;  %1903 = vmatprep.subr.bf16.mxu1 %v7919_v41  ;;  %7137 = vmatprep.subr.bf16.mxu0 %v7920_v0  ;;  %v9754_v58 = vpop.permute.xlu0 %7635  ;;  %v9756_v61 = vpop.permute.xlu1 %7640  ;;  %v7924_v47 = vld [vmem:[#allocation7 + $0x200] ss:$12 sps:$4 sm:$0xff]   ;;  %11621 = vst [vmem:[#allocation57_spill] sm:$0xff] %v9764_v30 }
 0x2e7   : > { %v11456_v55 = vunpack.i.h.bf16 %v9754_v58  ;;  %v11455_v36 = vunpack.i.l.bf16 %v9754_v58  ;;  %v11457_v17 = vunpack.i.l.bf16 %v9756_v61  ;;  %v9762_v56 = vpop.f32.mrb[16].mxu0  ;;  %v1378_v22 = vsel %vm1361_vm1, %v11623_v38, %v11622_v11  ;;  %v9774_v34 = vpop.f32.mrb[42].mxu1  ;;  %v7927_v30 = vld [vmem:[#allocation7 + $0x214] ss:$12 sps:$4 sm:$0xff]  }
 0x2e8   : > { %1874 = vmatprep.mubr.bf16.mxu1 %v1417_v63  ;;  %2016 = vmatprep.mubr.bf16.mxu0 %v1417_v63  ;;  %v9772_v41 = vpop.f32.mrb[17].mxu0  ;;  %11624 = vst [vmem:[#allocation58_spill] sm:$0xff] %v9774_v34  ;;  %v11625_v63 = vunpack.i.h.bf16 %v9603_v44  ;;  %v9796_v38 = vpop.f32.mrb[43].mxu1 }
 0x2e9   : > { %1875 = vmatmul.mubr.bf16.gmra.mrb[52].mxu1 %v1416_v24  ;;  %2017 = vmatmul.mubr.bf16.gmra.mrb[36].mxu0 %v1416_v24  ;;  %v1368_v7 = vsel %vm1361_vm1, %v7632_v25, %v11455_v36  ;;  %v1369_v24 = vsel %vm1361_vm1, %v7633_v9, %v11456_v55  ;;  %v1376_v44 = vsel %vm1361_vm1, %v11457_v17, %v7632_v25  ;;  %v9794_v11 = vpop.f32.mrb[18].mxu0  ;;  %v11630_v36 = vmax.f32 %v9549_v3, 0.0 }
 0x2ea   : > { %v1379_v8 = vsel %vm1361_vm1, %v11626_v14, %v11625_v63  ;;  %1904 = vmatpush1.bf16.msra.mxu1 %v7917_v49  ;;  %11627 = vst [vmem:[#allocation59_spill] sm:$0xff] %v9794_v11  ;;  %11628 = vst [vmem:[#allocation60_spill] sm:$0xff] %v9796_v38  ;;  %v11629_v63 = vunpack.i.h.bf16 %v9756_v61  ;;  %7138 = vmatpush3.bf16.msra.mxu0 %v7920_v0  ;;  %v9804_v34 = vpop.f32.mrb[19].mxu0  ;;  %v11632_v49 = vmax.f32 %v9539_v19, 0.0  ;;  %v11633_v17 = vmax.f32 %v9569_v37, 0.0 }
 0x2eb   : > { %1905 = vmatprep.subr.bf16.mxu1 %v7923_v32  ;;  %v1405_v55 = vmax.f32 %v11630_v36, %v1368_v7  ;;  %11631 = vst [vmem:[#allocation61_spill] sm:$0xff] %v9804_v34  ;;  %7139 = vmatprep.subr.bf16.mxu0 %v7924_v47  ;;  %v11636_v32 = vmax.f32 %v9482_v45, 0.0  ;;  %v7928_v34 = vld [vmem:[#allocation7 + $0x218] ss:$12 sps:$4 sm:$0xff]   ;;  %v9816_v19 = vpop.f32.mrb[20].mxu0  ;;  %v11638_v45 = vunpack.i.l.bf16 %v9669_v6 }
 0x2ec   : > { %v1377_v14 = vsel %vm1361_vm1, %v11629_v63, %v7633_v9  ;;  %v1408_v25 = vmax.f32 %v11632_v49, %v1369_v24  ;;  %v1404_v38 = vmax.f32 %v11633_v17, %v1376_v44  ;;  %v11635_v9 = vmax.f32 %v9475_v62, 0.0  ;;  %v7925_v63 = vld [vmem:[#allocation7 + $0x210] ss:$12 sps:$4 sm:$0xff]   ;;  %v7931_v37 = vld [vmem:[#allocation7 + $0x22c] ss:$12 sps:$4 sm:$0xff]  }
 0x2ed   : > { %v1407_v11 = vmax.f32 %v11634_v27, %v1377_v14  ;;  %v1391_v3 = vmax.f32 %v11636_v32, %v1379_v8  ;;  %v9818_v27 = vpop.f32.mrb[21].mxu0  ;;  %v11637_v62 = vunpack.i.l.bf16 %v9611_v50  ;;  %v11639_v17 = vunpack.i.h.bf16 %v9611_v50 }
 0x2ee   : > { %v1388_v0 = vmax.f32 %v11635_v9, %v1378_v22  ;;  %1906 = vmatpush1.bf16.msra.mxu1 %v7921_v4  ;;  %v1420_v36 = vpack.c.bf16 %v1408_v25, %v1405_v55  ;;  %7140 = vmatpush3.bf16.msra.mxu0 %v7924_v47  ;;  %v11640_v47 = vunpack.i.h.bf16 %v9669_v6  ;;  %v9832_v8 = vpop.f32.mrb[22].mxu0  ;;  %v11641_v24 = vunpack.i.h.bf16 %v9706_v57 }
 0x2ef   : > { %v1419_v7 = vpack.c.bf16 %v1407_v11, %v1404_v38  ;;  %1907 = vmatprep.subr.bf16.mxu1 %v7927_v30  ;;  %v1380_v55 = vsel %vm1361_vm1, %v11638_v45, %v11637_v62  ;;  %v11642_v44 = vunpack.i.h.bf16 %v9708_v53  ;;  %v11643_v11 = vunpack.i.l.bf16 %v9706_v57  ;;  %7141 = vmatprep.subr.bf16.mxu0 %v7928_v34  ;;  %v7929_v38 = vld [vmem:[#allocation7 + $0x228] ss:$12 sps:$4 sm:$0xff]   ;;  %v9846_v14 = vpop.f32.mrb[23].mxu0 }
 0x2f0   : > { %1884 = vmatprep.mubr.bf16.mxu1 %v1420_v36  ;;  %2024 = vmatprep.mubr.bf16.mxu0 %v1420_v36  ;;  %v1381_v30 = vsel %vm1361_vm1, %v11640_v47, %v11639_v17  ;;  %v1412_v22 = vpack.c.bf16 %v1391_v3, %v1388_v0  ;;  %v11644_v50 = vunpack.i.l.bf16 %v9708_v53  ;;  %v11645_v49 = vmax.f32 %v9494_v20, 0.0 }
 0x2f1   : > { %1885 = vmatmul.mubr.bf16.gmra.mrb[56].mxu1 %v1419_v7  ;;  %2025 = vmatmul.mubr.bf16.gmra.mrb[40].mxu0 %v1419_v7  ;;  %v1383_v4 = vsel %vm1361_vm1, %v11642_v44, %v11641_v24  ;;  %v11646_v9 = vmax.f32 %v9503_v29, 0.0  ;;  %v11647_v57 = vmov 0   ;;  %v11648_v53 = vmax.f32 %v9528_v51, 0.0  ;;  %v7934_v24 = vld [vmem:[#allocation10] sm:$0xff]   ;;  %v7935_v44 = vld [vmem:[#allocation10 + $0x48] sm:$0xff]  }
 0x2f2   : > { %v1382_v6 = vsel %vm1361_vm1, %v11644_v50, %v11643_v11  ;;  %1908 = vmatpush1.bf16.msra.mxu1 %v7925_v63  ;;  %7142 = vmatpush3.bf16.msra.mxu0 %v7928_v34  ;;  %v1394_v25 = vmax.f32 %v11645_v49, %v1380_v55  ;;  %v11649_v3 = vmax.f32 %v9542_v59, 0.0  ;;  %v9857_v34 = vpop.f32.mrb[24].mxu0  ;;  %v11650_v29 = vunpack.i.h.bf16 %v9756_v61  ;;  %v7941_v11 = vld [vmem:[#allocation10 + $0x88] sm:$0xff]   ;;  %v7944_v50 = vld [vmem:[#allocation10 + $0x90] sm:$0xff]  }
 0x2f3   : > { %7145 = vmatprep.mubr.bf16.mxu0 %v1412_v22  ;;  %v1397_v0 = vmax.f32 %v11646_v9, %v1381_v30  ;;  %1909 = vmatprep.subr.bf16.mxu1 %v7931_v37  ;;  %v1400_v32 = vmax.f32 %v11648_v53, %v1382_v6  ;;  %v9859_v20 = vpop.f32.mrb[25].mxu0  ;;  %v11651_v63 = vunpack.i.h.bf16 %v9754_v58  ;;  %v11652_v51 = vunpack.i.l.bf16 %v9756_v61  ;;  %v7939_v6 = vld [vmem:[#allocation10 + $0x10] sm:$0xff]   ;;  %v7942_v53 = vld [vmem:[#allocation10 + $0x18] sm:$0xff]  }
 0x2f4   : > { %7143 = vmatprep.subr.bf16.mxu0 %v7932_v18  ;;  %1927 = vmatprep.mubr.bf16.mxu1 %v11647_v57  ;;  %v1403_v36 = vmax.f32 %v11649_v3, %v1383_v4  ;;  %v11653_v62 = vunpack.i.l.bf16 %v9754_v58  ;;  %v9873_v45 = vpop.f32.mrb[26].mxu0  ;;  %v11654_v17 = vmax.f32 %v9573_v26, 0.0  ;;  %v11655_v61 = vmax.f32 %v9585_v40, 0.0  ;;  %v7938_v4 = vld [vmem:[#allocation10 + $0x80] sm:$0xff]   ;;  %v7936_v26 = vld [vmem:[#allocation10 + $0x8] sm:$0xff]   ;;  %v7937_v40 = vld [vmem:[#allocation10 + $0x50] sm:$0xff]  }
 0x2f5   : > { %v1415_v7 = vpack.c.bf16 %v1397_v0, %v1394_v25  ;;  %v1385_v37 = vsel %vm1361_vm1, %v11651_v63, %v11650_v29  ;;  %v9876_v55 = vpop.f32.mrb[27].mxu0  ;;  %v7947_v25 = vld [vmem:[#allocation10 + $0x98] sm:$0xff]   ;;  %v7943_v3 = vld [vmem:[#allocation10 + $0x60] sm:$0xff]   ;;  %v7946_v29 = vld [vmem:[#allocation10 + $0x68] sm:$0xff]  }
 0x2f6   : > { %1910 = vmatpush1.bf16.msra.mxu1 %v7929_v38  ;;  %7144 = vmatpush3.bf16.msra.mxu0 %v7932_v18  ;;  %v1384_v59 = vsel %vm1361_vm1, %v11653_v62, %v11652_v51  ;;  %v1418_v18 = vpack.c.bf16 %v1403_v36, %v1400_v32  ;;  %v1409_v30 = vmax.f32 %v11655_v61, %v1385_v37  ;;  %v7940_v38 = vld [vmem:[#allocation10 + $0x58] sm:$0xff]  }
 0x2f7   : > { %v1406_v47 = vmax.f32 %v11654_v17, %v1384_v59  ;;  %7153 = vmatprep.subr.bf16.mxu1 %v7938_v4  ;;  %v7948_v59 = vld [vmem:[#allocation10 + $0x28] sm:$0xff]  }
 0x2f9   : > { %1928 = vmatmul.mubr.bf16.vlgmr.msra.gmra.mrb[44].mxu1 %v1412_v22  ;;  %7146 = vmatmul.mubr.bf16.vlgmr.msra.gmra.mrb[44].mxu0 %v1415_v7  ;;  %v1421_v58 = vpack.c.bf16 %v1409_v30, %v1406_v47  ;;  %v7933_v22 = vld [vmem:[#allocation10 + $0x40] sm:$0xff]  }
 0x2fa   : > { %1937 = vmatprep.mubr.bf16.mxu1 %v11647_v57  ;;  %7149 = vmatprep.mubr.bf16.mxu0 %v1418_v18 }
 0x2fb   : > { %6923 = vmatprep.subr.bf16.mxu0 %v7933_v22  ;;  %7154 = vmatpush3.bf16.msra.mxu1 %v7938_v4 }
 0x2fc   : > { %6924 = vmatpush3.bf16.msra.mxu0 %v7934_v24  ;;  %7155 = vmatprep.subr.bf16.mxu1 %v7941_v11 }
 0x2fd   : > { %6925 = vmatprep.subr.bf16.mxu0 %v7935_v44 }
 0x2ff   : > { %7156 = vmatpush3.bf16.msra.mxu1 %v7941_v11 }
 0x300   : > { %6926 = vmatpush3.bf16.msra.mxu0 %v7936_v26  ;;  %7157 = vmatprep.subr.bf16.mxu1 %v7944_v50 }
 0x301   : > { %1938 = vmatmul.mubr.bf16.gmra.mrb[48].mxu1 %v1415_v7  ;;  %7150 = vmatmul.mubr.bf16.gmra.mrb[48].mxu0 %v1421_v58  ;;  %v7945_v7 = vld [vmem:[#allocation10 + $0x20] sm:$0xff]  }
 0x302   : > { %1947 = vmatprep.mubr.bf16.mxu1 %v11647_v57  ;;  %6927 = vmatprep.subr.bf16.mxu0 %v7937_v40  ;;  %v1261_v40 = vld [vmem:[#allocation8] sm:$0x7] }
 0x303   : > { %7158 = vmatpush3.bf16.msra.mxu1 %v7944_v50 }
 0x304   : > { %6928 = vmatpush3.bf16.msra.mxu0 %v7939_v6  ;;  %7159 = vmatprep.subr.bf16.mxu1 %v7947_v25 }
 0x305   : > { %6929 = vmatprep.subr.bf16.mxu0 %v7940_v38  ;;  %v9887_v38 = vrot.slane %v1261_v40, %v9466_v43 }
 0x307   : > { %7160 = vmatpush3.bf16.msra.mxu1 %v7947_v25  ;;  %v7949_v25 = vld [vmem:[#allocation10 + $0x70] sm:$0xff]  }
 0x308   : > { %6930 = vmatpush3.bf16.msra.mxu0 %v7942_v53 }
 0x309   : > { %1948 = vmatmul.mubr.bf16.gmra.mrb[52].mxu1 %v1418_v18  ;;  %6931 = vmatprep.subr.bf16.mxu0 %v7943_v3 }
 0x30a   : > { %1957 = vmatprep.mubr.bf16.mxu1 %v11647_v57 }
 0x30c   : > { %6932 = vmatpush3.bf16.msra.mxu0 %v7945_v7 }
 0x30d   : > { %6933 = vmatprep.subr.bf16.mxu0 %v7946_v29 }
 0x310   : > { %6934 = vmatpush3.bf16.msra.mxu0 %v7948_v59 }
 0x311   : > { %1958 = vmatmul.mubr.bf16.gmra.mrb[56].mxu1 %v1421_v58  ;;  %6935 = vmatprep.subr.bf16.mxu0 %v7949_v25 }
 0x3aa   : > { %v6887_v49 = vpop.f32.mrb[28].mxu0 }
 0x3ab   : > { %v6888_v9 = vpop.f32.mrb[29].mxu0 }
 0x3ac   : > { %v6889_v0 = vadd.f32 %v6888_v9, %v6887_v49  ;;  %v6890_v57 = vpop.f32.mrb[30].mxu0  ;;  %v9890_v49 = vrot.slane %v1261_v40, %v9393_v46  ;;  %v7950_v9 = vld [vmem:[#allocation10 + $0xa0] sm:$0xff]  }
 0x3ad   : > { %v6891_v32 = vpop.f32.mrb[31].mxu0  ;;  %7161 = vmatprep.subr.bf16.mxu1 %v7950_v9 }
 0x3ae   : > { %v6892_v36 = vadd.f32 %v6891_v32, %v6890_v57  ;;  %v7951_v57 = vld [vmem:[#allocation10 + $0x30] sm:$0xff]   ;;  %v2003_v29 = vadd.f32 %v6889_v0, %v9887_v38  ;;  %7162 = vmatpush3.bf16.msra.mxu1 %v7950_v9 }
 0x3af   : > { %6936 = vmatpush3.bf16.msra.mxu0 %v7951_v57 }
 0x3b3   : > { %v6893_v63 = vpop.f32.mrb[32].mxu0 }
 0x3b4   : > { %v6894_v37 = vpop.f32.mrb[33].mxu0 }
 0x3b5   : > { %v6895_v51 = vadd.f32 %v6894_v37, %v6893_v63  ;;  %v6896_v62 = vpop.f32.mrb[34].mxu0  ;;  %v9895_v63 = vrot.slane %v1261_v40, %v9388_v42  ;;  %v11661_v42 = vsub.s32 3, %v9385_v39 }
 0x3b6   : > { %v6897_v18 = vpop.f32.mrb[35].mxu0 }
 0x3b7   : > { %v6898_v17 = vadd.f32 %v6897_v18, %v6896_v62  ;;  %v2011_v32 = vadd.f32 %v6895_v51, %v9887_v38 }
 0x3b9   : > { %v2014_v51 = vadd.f32 %v6898_v17, %v9887_v38 }
 0x3bc   : > { %v6899_v47 = vpop.f32.mrb[36].mxu0 }
 0x3bd   : > { %v6900_v61 = vpop.f32.mrb[37].mxu0 }
 0x3be   : > { %v6901_v30 = vadd.f32 %v6900_v61, %v6899_v47  ;;  %v6902_v58 = vpop.f32.mrb[38].mxu0  ;;  %v7952_v47 = vld [vmem:[#allocation10 + $0x78] sm:$0xff]   ;;  %v7953_v61 = vld [vmem:[#allocation10 + $0xa8] sm:$0xff]  }
 0x3bf   : > { %v6903_v22 = vpop.f32.mrb[39].mxu0  ;;  %6937 = vmatprep.subr.bf16.mxu0 %v7952_v47  ;;  %7163 = vmatprep.subr.bf16.mxu1 %v7953_v61 }
 0x3c0   : > { %v9884_v24 = vadd.f32 %v6903_v22, %v6902_v58  ;;  %7164 = vmatpush3.bf16.msra.mxu1 %v7953_v61 }
 0x3c4   : > { %v6905_v44 = vpop.f32.mrb[40].mxu0 }
 0x3c5   : > { %v6906_v4 = vpop.f32.mrb[41].mxu0 }
 0x3c6   : > { %v6907_v11 = vadd.f32 %v6906_v4, %v6905_v44  ;;  %v6908_v26 = vpop.f32.mrb[42].mxu0  ;;  %v2006_v44 = vadd.f32 %v6892_v36, %v9887_v38  ;;  %v7954_v4 = vld [vmem:[#allocation10 + $0x38] sm:$0xff]  }
 0x3c7   : > { %v6909_v50 = vpop.f32.mrb[43].mxu0  ;;  %6938 = vmatpush3.bf16.msra.mxu0 %v7954_v4 }
 0x3c8   : > { %v6910_v6 = vadd.f32 %v6909_v50, %v6908_v26 }
 0x3cc   : > { %v1929_v53 = vpop.f32.mrb[44].mxu1  ;;  %v7147_v3 = vpop.f32.mrb[44].mxu0 }
 0x3cd   : > { %v1931_v7 = vpop.f32.mrb[45].mxu1  ;;  %v9897_v37 = vadd.f32 %v7147_v3, %v2011_v32  ;;  %v2067_v59 = vpop.f32.mrb[45].mxu0  ;;  %v9917_v9 = vadd.f32 %v1929_v53, %v9895_v63  ;;  %v2027_v53 = vadd.f32 %v6907_v11, %v9887_v38  ;;  %v2030_v11 = vadd.f32 %v6910_v6, %v9887_v38 }
 0x3ce   : > { %v9900_v62 = vadd.f32 %v1931_v7, %v9890_v49  ;;  %v1933_v18 = vpop.f32.mrb[46].mxu1  ;;  %v9903_v58 = vadd.f32 %v2067_v59, %v2003_v29  ;;  %v7148_v22 = vpop.f32.mrb[46].mxu0  ;;  %v7955_v7 = vld [vmem:[#allocation10 + $0xb0] sm:$0xff]   ;;  %v7958_v29 = vld [vmem:[#allocation13 + $0x4] ss:$24 sps:$4 sm:$0xff]  }
 0x3cf   : > { %v1935_v0 = vpop.f32.mrb[47].mxu1  ;;  %v9907_v26 = vadd.f32 %v1933_v18, %v9895_v63  ;;  %v9909_v40 = vadd.f32 %v7148_v22, %v2014_v51  ;;  %v2070_v25 = vpop.f32.mrb[47].mxu0  ;;  %7165 = vmatprep.subr.bf16.mxu1 %v7955_v7  ;;  %4592 = vmatprep.subr.bf16.mxu0 %v7958_v29 }
 0x3d0   : > { %v9912_v50 = vadd.f32 %v1935_v0, %v9890_v49  ;;  %v9914_v17 = vadd.f32 %v2070_v25, %v2006_v44  ;;  %v11459_v36 = vmax.f32 %v9900_v62, 0.0  ;;  %v11461_v32 = vmax.f32 %v9903_v58, 0.0  ;;  %7166 = vmatpush3.bf16.msra.mxu1 %v7955_v7 }
 0x3d1   : > { %v11467_v59 = vmax.f32 %v9907_v26, 0.0  ;;  %v2019_v0 = vadd.f32 %v6901_v30, %v9887_v38  ;;  %v11462_v44 = vmax.f32 %v9917_v9, 0.0 }
 0x3d2   : > { %v11458_v57 = vmax.f32 %v9912_v50, 0.0  ;;  %v11460_v3 = vmax.f32 %v9914_v17, 0.0 }
 0x3d3   : > { %v7654_v6 = vpack.i.bf16 %v11467_v59, %v11462_v44 }
 0x3d4   : > { %v7644_v18 = vpack.i.bf16 %v11458_v57, %v11459_v36  ;;  %v1939_v51 = vpop.f32.mrb[48].mxu1  ;;  %v7649_v47 = vpack.i.bf16 %v11460_v3, %v11461_v32  ;;  %v7151_v61 = vpop.f32.mrb[48].mxu0  ;;  %v11463_v3 = vmax.f32 %v9909_v40, 0.0 }
 0x3d5   : > { %v1941_v22 = vpop.f32.mrb[49].mxu1  ;;  %v9935_v4 = vadd.f32 %v7151_v61, %v2027_v53  ;;  %v2083_v57 = vpop.f32.mrb[49].mxu0  ;;  %v2022_v61 = vadd.f32 %v9884_v24, %v9887_v38  ;;  %v11464_v24 = vmax.f32 %v9897_v37, 0.0  ;;  %v9964_v38 = vadd.f32 %v1939_v51, %v9895_v63 }
 0x3d6   : > { %v9938_v25 = vadd.f32 %v1941_v22, %v9890_v49  ;;  %v1943_v36 = vpop.f32.mrb[50].mxu1  ;;  %7645 = vrot.lane.b32.xlu0 %v7644_v18, %s8904_s14  ;;  %v9943_v30 = vadd.f32 %v2083_v57, %v2019_v0  ;;  %v7152_v29 = vpop.f32.mrb[50].mxu0  ;;  %7650 = vrot.lane.b32.xlu1 %v7649_v47, %s8904_s14  ;;  %v7959_v22 = vld [vmem:[#allocation10 + $0xb8] sm:$0xff]  }
 0x3d7   : > { %v1945_v53 = vpop.f32.mrb[51].mxu1  ;;  %v9952_v32 = vadd.f32 %v7152_v29, %v2030_v11  ;;  %v9955_v7 = vadd.f32 %v1943_v36, %v9895_v63  ;;  %v2086_v18 = vpop.f32.mrb[51].mxu0  ;;  %7167 = vmatprep.subr.bf16.mxu1 %v7959_v22  ;;  %v7659_v36 = vpack.i.bf16 %v11463_v3, %v11464_v24  ;;  %v11470_v44 = vmax.f32 %v9964_v38, 0.0 }
 0x3d8   : > { %11656 = vst [vmem:[#allocation62_spill] sm:$0xff] %v9943_v30  ;;  %v9958_v57 = vadd.f32 %v1945_v53, %v9890_v49  ;;  %v9960_v47 = vadd.f32 %v2086_v18, %v2022_v61  ;;  %v11466_v0 = vmax.f32 %v9938_v25, 0.0  ;;  %7168 = vmatpush3.bf16.msra.mxu1 %v7959_v22  ;;  %v7968_v61 = vld [vmem:[#allocation13 + $0xc] ss:$24 sps:$4 sm:$0xff]  }
 0x3d9   : > { %11657 = vst [vmem:[#allocation63_spill] sm:$0xff] %v9955_v7  ;;  %v11469_v29 = vmax.f32 %v9955_v7, 0.0  ;;  %4811 = vmatprep.subr.bf16.mxu1 %v7968_v61 }
 0x3da   : > { %11658 = vst [vmem:[#allocation64_spill] sm:$0xff] %v9960_v47  ;;  %v11465_v11 = vmax.f32 %v9958_v57, 0.0  ;;  %7655 = vrot.lane.b32.xlu0 %v7654_v6, %s8904_s14 }
 0x3dc   : > { %v7664_v51 = vpack.i.bf16 %v11465_v11, %v11466_v0  ;;  %v1949_v53 = vpop.f32.mrb[52].mxu1  ;;  %v7669_v11 = vpack.i.bf16 %v11469_v29, %v11470_v44  ;;  %v11475_v0 = vmax.f32 %v9960_v47, 0.0  ;;  %v10004_v29 = vld [vmem:[#allocation5] sm:$0xff] }
 0x3dd   : > { %v1951_v18 = vpop.f32.mrb[53].mxu1  ;;  %v9999_v3 = vadd.f32 %v1949_v53, %v9895_v63 }
 0x3de   : > { %v9980_v6 = vadd.f32 %v1951_v18, %v9890_v49  ;;  %v1953_v22 = vpop.f32.mrb[54].mxu1  ;;  %7665 = vrot.lane.b32.xlu1 %v7664_v51, %s8904_s14  ;;  %7660 = vrot.lane.b32.xlu0 %v7659_v36, %s8904_s14  ;;  %v11476_v36 = vmax.f32 %v9943_v30, 0.0  ;;  %v11482_v51 = vmax.f32 %v9935_v4, 0.0 }
 0x3df   : > { %v1955_v24 = vpop.f32.mrb[55].mxu1  ;;  %v9991_v59 = vadd.f32 %v1953_v22, %v9895_v63  ;;  %11659 = vst [vmem:[#allocation65_spill] sm:$0xff] %v9999_v3  ;;  %v11660_v22 = vsub.s32 4, %v9385_v39  ;;  %v11481_v44 = vmax.f32 %v9999_v3, 0.0 }
 0x3e0   : > { %v9994_v18 = vadd.f32 %v1955_v24, %v9890_v49  ;;  %v11478_v61 = vmax.f32 %v9980_v6, 0.0  ;;  %v7674_v53 = vpack.i.bf16 %v11475_v0, %v11476_v36 }
 0x3e1   : > { %v10009_v24 = vrot.slane %v10004_v29, %v11660_v22  ;;  %v10024_v22 = vrot.slane %v10004_v29, %v11661_v42 }
 0x3e2   : > { %v11477_v43 = vmax.f32 %v9994_v18, 0.0  ;;  %7670 = vrot.lane.b32.xlu1 %v7669_v11, %s8904_s14 }
 0x3e3   : > { %v10034_v36 = vadd.f32 %v9631_v48, %v10009_v24 }
 0x3e4   : > { %v7679_v11 = vpack.i.bf16 %v11477_v43, %v11478_v61  ;;  %v1959_v46 = vpop.f32.mrb[56].mxu1  ;;  %v11662_v43 = vsub.s32 5, %v9385_v39  ;;  %v10043_v61 = vadd.f32 %v9649_v28, %v10009_v24  ;;  %v10062_v28 = vadd.f32 %v9484_v12, %v10024_v22 }
 0x3e5   : > { %v1961_v7 = vpop.f32.mrb[57].mxu1  ;;  %v10066_v3 = vadd.f32 %v1959_v46, %v9895_v63  ;;  %v11667_v46 = vmax.f32 %v9952_v32, 0.0 }
 0x3e6   : > { %v10028_v30 = vadd.f32 %v1961_v7, %v9890_v49  ;;  %v1963_v0 = vpop.f32.mrb[58].mxu1  ;;  %7675 = vrot.lane.b32.xlu1 %v7674_v53, %s8904_s14  ;;  %7680 = vrot.lane.b32.xlu0 %v7679_v11, %s8904_s14  ;;  %v10039_v42 = vrot.slane %v10004_v29, %v11662_v43  ;;  %v11663_v53 = vmax.f32 %v9991_v59, 0.0  ;;  %v10058_v43 = vadd.f32 %v9477_v2, %v10024_v22 }
 0x3e7   : > { %v1965_v7 = vpop.f32.mrb[59].mxu1  ;;  %v10051_v48 = vadd.f32 %v1963_v0, %v9895_v63  ;;  %11664 = vst [vmem:[#allocation66_spill] sm:$0xff] %v10062_v28  ;;  %v7689_v63 = vpack.i.bf16 %v11667_v46, %v11482_v51  ;;  %v10099_v51 = vadd.f32 %v9671_v15, %v10009_v24  ;;  %v11672_v46 = vmax.f32 %v10062_v28, 0.0 }
 0x3e8   : > { %v7684_v11 = vpack.i.bf16 %v11663_v53, %v11481_v44  ;;  %v10054_v47 = vadd.f32 %v1965_v7, %v9890_v49  ;;  %v11484_v53 = vmax.f32 %v10028_v30, 0.0  ;;  %v10074_v2 = vadd.f32 %v9635_v13, %v10039_v42 }
 0x3e9   : > { %v10078_v12 = vadd.f32 %v9657_v10, %v10039_v42  ;;  %v11485_v44 = vmax.f32 %v10051_v48, 0.0  ;;  %v11486_v10 = vmax.f32 %v10066_v3, 0.0  ;;  %11668 = vst [vmem:[#allocation69_spill] sm:$0xff] %v10099_v51  ;;  %v11670_v49 = vmax.f32 %v10043_v61, 0.0 }
 0x3ea   : > { %v11483_v0 = vmax.f32 %v10054_v47, 0.0  ;;  %7685 = vrot.lane.b32.xlu0 %v7684_v11, %s8904_s14  ;;  %11665 = vst [vmem:[#allocation67_spill] sm:$0xff] %v10074_v2 }
 0x3eb   : > { %11666 = vst [vmem:[#allocation68_spill] sm:$0xff] %v10078_v12  ;;  %v7699_v15 = vpack.i.bf16 %v11485_v44, %v11486_v10  ;;  %v11492_v10 = vmax.f32 %v10099_v51, 0.0 }
 0x3ec   : > { %v7694_v11 = vpack.i.bf16 %v11483_v0, %v11484_v53  ;;  %v10103_v0 = vadd.f32 %v9675_v33, %v10039_v42  ;;  %v11669_v53 = vmax.f32 %v10034_v36, 0.0  ;;  %v11671_v33 = vmax.f32 %v10058_v43, 0.0 }
 0x3ee   : > { %7695 = vrot.lane.b32.xlu1 %v7694_v11, %s8904_s14  ;;  %7690 = vrot.lane.b32.xlu0 %v7689_v63, %s8904_s14  ;;  %v7704_v13 = vpack.i.bf16 %v11670_v49, %v11669_v53  ;;  %v10111_v63 = vadd.f32 %v9680_v1, %v10009_v24  ;;  %v10115_v11 = vadd.f32 %v9696_v54, %v10039_v42  ;;  %v11673_v54 = vmax.f32 %v10074_v2, 0.0 }
 0x3ef   : > { %v7714_v7 = vpack.i.bf16 %v11672_v46, %v11671_v33  ;;  %v10127_v53 = vadd.f32 %v9505_v31, %v10024_v22  ;;  %v10133_v1 = vadd.f32 %v9496_v21, %v10024_v22  ;;  %v11674_v49 = vmax.f32 %v10078_v12, 0.0 }
 0x3f0   : > { %v11491_v31 = vmax.f32 %v10111_v63, 0.0  ;;  %v10149_v21 = vadd.f32 %v9734_v23, %v10009_v24  ;;  %v658_v33 = vsub.s32 6, %v9385_v39  ;;  %v11679_v23 = vld [vmem:[#allocation53_spill] sm:$0xff]  ;;  %v10196_v2 = vadd.f32 %v9762_v56, %v10009_v24 }
 0x3f1   : > { %v7709_v44 = vpack.i.bf16 %v11674_v49, %v11673_v54  ;;  %v10154_v54 = vadd.f32 %v9530_v52, %v10024_v22  ;;  %v10158_v49 = vadd.f32 %v9544_v60, %v10024_v22  ;;  %v10166_v46 = vadd.f32 %v11679_v23, %v10039_v42 }
 0x3f2   : > { %7700 = vrot.lane.b32.xlu1 %v7699_v15, %s8904_s14  ;;  %7705 = vrot.lane.b32.xlu0 %v7704_v13, %s8904_s14  ;;  %v10145_v13 = vadd.f32 %v9714_v16, %v10009_v24  ;;  %11676 = vst [vmem:[#allocation71_spill] sm:$0xff] %v10149_v21  ;;  %v10170_v52 = vadd.f32 %v9746_v5, %v10039_v42  ;;  %v11684_v23 = vmax.f32 %v10133_v1, 0.0  ;;  %v11685_v12 = vmax.f32 %v10127_v53, 0.0 }
 0x3f3   : > { %11677 = vst [vmem:[#allocation72_spill] sm:$0xff] %v10154_v54  ;;  %11678 = vst [vmem:[#allocation73_spill] sm:$0xff] %v10158_v49  ;;  %v7719_v60 = vpack.i.bf16 %v11491_v31, %v11492_v10  ;;  %v11497_v28 = vmax.f32 %v10154_v54, 0.0  ;;  %v11496_v51 = vmax.f32 %v10158_v49, 0.0  ;;  %v662_v31 = vsub.s32 7, %v9385_v39  ;;  %v11701_v49 = vld [vmem:[#allocation44_spill] sm:$0xff] }
 0x3f4   : > { %11675 = vst [vmem:[#allocation70_spill] sm:$0xff] %v10145_v13  ;;  %11680 = vst [vmem:[#allocation53_spill] sm:$0xff] %v10166_v46  ;;  %v11495_v16 = vmax.f32 %v10145_v13, 0.0  ;;  %v7729_v5 = vpack.i.bf16 %v11685_v12, %v11684_v23  ;;  %v11687_v12 = vmax.f32 %v10149_v21, 0.0 }
 0x3f5   : > { %11681 = vst [vmem:[#allocation74_spill] sm:$0xff] %v10170_v52  ;;  %11686 = vst [vmem:[#allocation75_spill] sm:$0xff] %v10196_v2  ;;  %v7744_v56 = vpack.i.bf16 %v11496_v51, %v11497_v28  ;;  %v663_v39 = vrot.slane %v10004_v29, %v662_v31  ;;  %v11697_v51 = vmax.f32 %v10166_v46, 0.0  ;;  %v11699_v28 = vld [vmem:[#allocation41_spill] sm:$0xff] }
 0x3f6   : > { %7710 = vrot.lane.b32.xlu1 %v7709_v44, %s8904_s14  ;;  %7715 = vrot.lane.b32.xlu0 %v7714_v7, %s8904_s14  ;;  %v11682_v44 = vmax.f32 %v10103_v0, 0.0  ;;  %v11683_v7 = vmax.f32 %v10115_v11, 0.0  ;;  %v7734_v23 = vpack.i.bf16 %v11687_v12, %v11495_v16 }
 0x3f8   : > { %v7724_v15 = vpack.i.bf16 %v11683_v7, %v11682_v44  ;;  %v659_v44 = vrot.slane %v10004_v29, %v658_v33  ;;  %v11690_v7 = vld [vmem:[#allocation61_spill] sm:$0xff]  ;;  %v11698_v29 = vmax.f32 %v10170_v52, 0.0 }
 0x3f9   : > { %v10212_v10 = vadd.f32 %v11690_v7, %v10039_v42 }
 0x3fa   : > { %7720 = vrot.lane.b32.xlu1 %v7719_v60, %s8904_s14  ;;  %7725 = vrot.lane.b32.xlu0 %v7724_v15, %s8904_s14  ;;  %v10204_v60 = vadd.f32 %v9772_v41, %v10039_v42  ;;  %v11688_v15 = vld [vmem:[#allocation59_spill] sm:$0xff]  ;;  %v11691_v41 = vld [vmem:[#allocation42_spill] sm:$0xff]  ;;  %v11695_v42 = vld [vmem:[#allocation45_spill] sm:$0xff]  ;;  %v7739_v31 = vpack.i.bf16 %v11698_v29, %v11697_v51 }
 0x3fb   : > { %v10208_v33 = vadd.f32 %v11688_v15, %v10009_v24  ;;  %v10223_v12 = vadd.f32 %v11691_v41, %v10024_v22  ;;  %v11693_v24 = vld [vmem:[#allocation43_spill] sm:$0xff]  ;;  %v10229_v7 = vadd.f32 %v11695_v42, %v659_v44  ;;  %v10244_v42 = vadd.f32 %v11701_v49, %v663_v39  ;;  %v11702_v51 = vld [vmem:[#allocation46_spill] sm:$0xff]  ;;  %v11705_v41 = vld [vmem:[#allocation49_spill] sm:$0xff] }
 0x3fc   : > { %v10226_v15 = vadd.f32 %v11693_v24, %v659_v44  ;;  %v10241_v24 = vadd.f32 %v11699_v28, %v10024_v22  ;;  %v10250_v29 = vadd.f32 %v11702_v51, %v663_v39  ;;  %v10256_v54 = vadd.f32 %v11705_v41, %v659_v44  ;;  %v11711_v41 = vld [vmem:[#allocation48_spill] sm:$0xff]  ;;  %v11712_v22 = vld [vmem:[#allocation50_spill] sm:$0xff] }
 0x3fd   : > { %11689 = vst [vmem:[#allocation59_spill] sm:$0xff] %v10208_v33  ;;  %11692 = vst [vmem:[#allocation61_spill] sm:$0xff] %v10223_v12  ;;  %v11707_v49 = vmax.f32 %v10196_v2, 0.0  ;;  %v11709_v16 = vmax.f32 %v10204_v60, 0.0  ;;  %v11710_v51 = vmax.f32 %v10212_v10, 0.0  ;;  %v10271_v52 = vadd.f32 %v11711_v41, %v663_v39 }
 0x3fe   : > { %7730 = vrot.lane.b32.xlu1 %v7729_v5, %s8904_s14  ;;  %7735 = vrot.lane.b32.xlu0 %v7734_v23, %s8904_s14  ;;  %11694 = vst [vmem:[#allocation42_spill] sm:$0xff] %v10226_v15  ;;  %11696 = vst [vmem:[#allocation43_spill] sm:$0xff] %v10229_v7  ;;  %v11703_v5 = vld [vmem:[#allocation47_spill] sm:$0xff]  ;;  %v10274_v46 = vadd.f32 %v11712_v22, %v663_v39  ;;  %v11715_v41 = vmax.f32 %v10223_v12, 0.0  ;;  %v11716_v22 = vmax.f32 %v10226_v15, 0.0  ;;  %v11725_v12 = vld [vmem:[#allocation56_spill] sm:$0xff] }
 0x3ff   : > { %11700 = vst [vmem:[#allocation45_spill] sm:$0xff] %v10241_v24  ;;  %v10253_v23 = vadd.f32 %v11703_v5, %v659_v44  ;;  %11706 = vst [vmem:[#allocation44_spill] sm:$0xff] %v10256_v54  ;;  %v7754_v21 = vpack.i.bf16 %v11710_v51, %v11709_v16  ;;  %v11506_v5 = vmax.f32 %v10241_v24, 0.0  ;;  %v11713_v51 = vld [vmem:[#allocation51_spill] sm:$0xff]  ;;  %v10316_v24 = vadd.f32 %v11725_v12, %v659_v44 }
 0x400   : > { %v10282_v28 = vadd.f32 %v11713_v51, %v659_v44  ;;  %v11720_v51 = vmax.f32 %v10244_v42, 0.0  ;;  %v11724_v16 = vld [vmem:[#allocation55_spill] sm:$0xff] }
 0x401   : > { %11704 = vst [vmem:[#allocation41_spill] sm:$0xff] %v10253_v23  ;;  %v7759_v13 = vpack.i.bf16 %v11715_v41, %v11506_v5  ;;  %v6379_v5 = vld [vmem:[#allocation5 + $0x8] ss:$0 sm:$0xff]  ;;  %11726 = vst [vmem:[#allocation49_spill] sm:$0xff] %v10316_v24 }
 0x402   : > { %7740 = vrot.lane.b32.xlu1 %v7739_v31, %s8904_s14  ;;  %7745 = vrot.lane.b32.xlu0 %v7744_v56, %s8904_s14  ;;  %v11708_v31 = vmax.f32 %v10208_v33, 0.0  ;;  %11714 = vst [vmem:[#allocation46_spill] sm:$0xff] %v10282_v28 }
 0x404   : > { %v7749_v56 = vpack.i.bf16 %v11708_v31, %v11707_v49  ;;  %v11511_v49 = vmax.f32 %v10250_v29, 0.0  ;;  %v11723_v31 = vld [vmem:[#allocation52_spill] sm:$0xff] }
 0x405   : > { %v10309_v15 = vadd.f32 %v11723_v31, %v663_v39 }
 0x406   : > { %7750 = vrot.lane.b32.xlu1 %v7749_v56, %s8904_s14  ;;  %7755 = vrot.lane.b32.xlu0 %v7754_v21, %s8904_s14  ;;  %v11717_v56 = vmax.f32 %v10229_v7, 0.0  ;;  %v11718_v21 = vld [vmem:[#allocation54_spill] sm:$0xff]  ;;  %v7769_v41 = vpack.i.bf16 %v11511_v49, %v11720_v51  ;;  %v11721_v7 = vmax.f32 %v10253_v23, 0.0  ;;  %v10322_v23 = vadd.f32 %v6379_v5, %v9818_v27 }
 0x407   : > { %v10293_v2 = vadd.f32 %v11718_v21, %v659_v44  ;;  %v11514_v21 = vmax.f32 %v10282_v28, 0.0  ;;  %v11727_v51 = vld [vmem:[#allocation58_spill] sm:$0xff]  ;;  %v11518_v12 = vmax.f32 %v10309_v15, 0.0 }
 0x408   : > { %v7764_v33 = vpack.i.bf16 %v11717_v56, %v11716_v22  ;;  %v11722_v22 = vmax.f32 %v10256_v54, 0.0  ;;  %v10319_v49 = vadd.f32 %v11727_v51, %v659_v44  ;;  %v11733_v51 = vld [vmem:[#allocation60_spill] sm:$0xff] }
 0x409   : > { %11719 = vst [vmem:[#allocation47_spill] sm:$0xff] %v10293_v2  ;;  %v10338_v27 = vadd.f32 %v11733_v51, %v663_v39  ;;  %v11735_v54 = vmax.f32 %v10293_v2, 0.0 }
 0x40a   : > { %7760 = vrot.lane.b32.xlu1 %v7759_v13, %s8904_s14  ;;  %7765 = vrot.lane.b32.xlu0 %v7764_v33, %s8904_s14  ;;  %v7774_v56 = vpack.i.bf16 %v11722_v22, %v11721_v7  ;;  %v10313_v33 = vadd.f32 %v11724_v16, %v663_v39  ;;  %11728 = vst [vmem:[#allocation48_spill] sm:$0xff] %v10319_v49  ;;  %v11729_v7 = vmax.f32 %v10271_v52, 0.0  ;;  %v11730_v22 = vmax.f32 %v10274_v46, 0.0  ;;  %v11731_v13 = vld [vmem:[#allocation57_spill] sm:$0xff] }
 0x40b   : > { %v10331_v16 = vadd.f32 %v6379_v5, %v9846_v14  ;;  %v10335_v44 = vadd.f32 %v11731_v13, %v663_v39  ;;  %11734 = vst [vmem:[#allocation51_spill] sm:$0xff] %v10338_v27  ;;  %v11516_v14 = vmax.f32 %v10319_v49, 0.0  ;;  %v10351_v13 = vadd.f32 %v9832_v8, %v6379_v5 }
 0x40c   : > { %v7779_v31 = vpack.i.bf16 %v11730_v22, %v11729_v7  ;;  %v7784_v7 = vpack.i.bf16 %v11735_v54, %v11514_v21  ;;  %v10348_v22 = vadd.f32 %v9816_v19, %v6379_v5  ;;  %v11522_v39 = vmax.f32 %v10322_v23, 0.0 }
 0x40d   : > { %11732 = vst [vmem:[#allocation50_spill] sm:$0xff] %v10335_v44  ;;  %v11519_v54 = vmax.f32 %v10331_v16, 0.0  ;;  %v11520_v51 = vmax.f32 %v10351_v13, 0.0 }
 0x40e   : > { %7770 = vrot.lane.b32.xlu1 %v7769_v41, %s8904_s14  ;;  %7775 = vrot.lane.b32.xlu0 %v7774_v56, %s8904_s14  ;;  %v11515_v41 = vmax.f32 %v10313_v33, 0.0  ;;  %v11517_v56 = vmax.f32 %v10316_v24, 0.0  ;;  %v11521_v21 = vmax.f32 %v10348_v22, 0.0 }
 0x410   : > { %v7789_v19 = vpack.i.bf16 %v11515_v41, %v11518_v12  ;;  %v7794_v8 = vpack.i.bf16 %v11516_v14, %v11517_v56  ;;  %v7804_v41 = vpack.i.bf16 %v11519_v54, %v11522_v39  ;;  %v10382_v14 = vadd.f32 %v9857_v34, %v6379_v5 }
 0x411   : > { %v7809_v34 = vpack.i.bf16 %v11520_v51, %v11521_v21  ;;  %v11867_v35 = vld [vmem:[#allocation48_spill] sm:$0xff] }
 0x412   : > { %7780 = vrot.lane.b32.xlu1 %v7779_v31, %s8904_s14  ;;  %7785 = vrot.lane.b32.xlu0 %v7784_v7, %s8904_s14  ;;  %v10368_v31 = vadd.f32 %v6379_v5, %v9859_v20  ;;  %v10371_v7 = vadd.f32 %v6379_v5, %v9876_v55  ;;  %11736 = vst [vmem:[#allocation54_spill] sm:$0xff] %v10382_v14  ;;  %v11737_v20 = vmax.f32 %v10335_v44, 0.0  ;;  %v11738_v55 = vmax.f32 %v10338_v27, 0.0 }
 0x413   : > { %v11527_v54 = vmax.f32 %v10382_v14, 0.0 }
 0x414   : > { %v7799_v56 = vpack.i.bf16 %v11738_v55, %v11737_v20  ;;  %v11523_v12 = vmax.f32 %v10371_v7, 0.0 }
 0x416   : > { %7790 = vrot.lane.b32.xlu1 %v7789_v19, %s8904_s14  ;;  %7795 = vrot.lane.b32.xlu0 %v7794_v8, %s8904_s14  ;;  %v11524_v19 = vmax.f32 %v10368_v31, 0.0  ;;  %v10390_v8 = vadd.f32 %v9873_v45, %v6379_v5 }
 0x418   : > { %11739 = vst [vmem:[#allocation52_spill] sm:$0xff] %v10390_v8  ;;  %v11526_v20 = vmax.f32 %v10390_v8, 0.0  ;;  %v7814_v45 = vpack.i.bf16 %v11523_v12, %v11524_v19 }
 0x41a   : > { %7800 = vrot.lane.b32.xlu1 %v7799_v56, %s8904_s14  ;;  %7805 = vrot.lane.b32.xlu0 %v7804_v41, %s8904_s14  ;;  %v7819_v5 = vpack.i.bf16 %v11526_v20, %v11527_v54  ;;  %v11740_v20 = vmax.f32 %v9900_v62, 0.0  ;;  %v11741_v54 = vmax.f32 %v9912_v50, 0.0  ;;  %v11743_v62 = vmax.f32 %v9917_v9, 0.0 }
 0x41e   : > { %7810 = vrot.lane.b32.xlu1 %v7809_v34, %s8904_s14  ;;  %7815 = vrot.lane.b32.xlu0 %v7814_v45, %s8904_s14 }
 0x422   : > { %7820 = vrot.lane.b32.xlu1 %v7819_v5, %s8904_s14 }
 0x448   : > { %v7646_v41 = vpop.permute.xlu0 %7645  ;;  %v7651_v56 = vpop.permute.xlu1 %7650 }
 0x449   : > { %v7648_v55 = vunpack.i.h.bf16 %v7646_v41  ;;  %v7647_v51 = vunpack.i.l.bf16 %v7646_v41  ;;  %v7653_v21 = vunpack.i.h.bf16 %v7651_v56  ;;  %v7652_v39 = vunpack.i.l.bf16 %v7651_v56 }
 0x44b   : > { %v2172_v34 = vsel %vm2170_vm2, %v7648_v55, %v7653_v21  ;;  %v2171_v45 = vsel %vm2170_vm2, %v7647_v51, %v7652_v39 }
 0x44c   : > { %v7656_v12 = vpop.permute.xlu0 %7655  ;;  %v2196_v5 = vmax.f32 %v11740_v20, %v2171_v45  ;;  %v2199_v24 = vmax.f32 %v11741_v54, %v2172_v34 }
 0x44d   : > { %v7658_v19 = vunpack.i.h.bf16 %v7656_v12  ;;  %v7657_v49 = vunpack.i.l.bf16 %v7656_v12  ;;  %v11742_v12 = vmax.f32 %v9907_v26, 0.0 }
 0x44e   : > { %v2220_v54 = vpack.c.bf16 %v2199_v24, %v2196_v5 }
 0x44f   : > { %v2180_v41 = vsel %vm2170_vm2, %v7658_v19, %v7648_v55  ;;  %v2188_v56 = vsel %vm2170_vm2, %v7653_v21, %v7658_v19  ;;  %v2179_v2 = vsel %vm2170_vm2, %v7657_v49, %v7647_v51  ;;  %v2187_v28 = vsel %vm2170_vm2, %v7652_v39, %v7657_v49  ;;  %v7956_v51 = vld [vmem:[#allocation13] ss:$24 sps:$4 sm:$0xff]   ;;  %v7962_v39 = vld [vmem:[#allocation13 + $0x34] ss:$24 sps:$4 sm:$0xff]  }
 0x450   : > { %v2198_v27 = vmax.f32 %v11742_v12, %v2180_v41  ;;  %v2195_v20 = vmax.f32 %v11743_v62, %v2179_v2  ;;  %v7666_v50 = vpop.permute.xlu1 %7665  ;;  %v7661_v34 = vpop.permute.xlu0 %7660  ;;  %v11744_v55 = vmax.f32 %v9903_v58, 0.0  ;;  %2413 = vmatprep.mubr.bf16.mxu0 %v2220_v54  ;;  %v11745_v49 = vmax.f32 %v9914_v17, 0.0  ;;  %v7960_v17 = vld [vmem:[#allocation13 + $0x30] ss:$24 sps:$4 sm:$0xff]  }
 0x451   : > { %v7668_v44 = vunpack.i.h.bf16 %v7666_v50  ;;  %v7667_v21 = vunpack.i.l.bf16 %v7666_v50  ;;  %v7663_v19 = vunpack.i.h.bf16 %v7661_v34  ;;  %v7662_v8 = vunpack.i.l.bf16 %v7661_v34 }
 0x452   : > { %v2197_v45 = vmax.f32 %v11744_v55, %v2187_v28  ;;  %v2219_v14 = vpack.c.bf16 %v2198_v27, %v2195_v20  ;;  %v2200_v26 = vmax.f32 %v11745_v49, %v2188_v56  ;;  %v11746_v28 = vmax.f32 %v9938_v25, 0.0  ;;  %v7965_v20 = vld [vmem:[#allocation13 + $0x64] ss:$24 sps:$4 sm:$0xff]  }
 0x453   : > { %v2174_v9 = vsel %vm2170_vm2, %v7668_v44, %v7663_v19  ;;  %v2173_v2 = vsel %vm2170_vm2, %v7667_v21, %v7662_v8  ;;  %v11747_v41 = vmax.f32 %v9958_v57, 0.0  ;;  %v11748_v54 = vmax.f32 %v9897_v37, 0.0  ;;  %v7966_v37 = vld [vmem:[#allocation13 + $0x8] ss:$24 sps:$4 sm:$0xff]  }
 0x454   : > { %v7671_v24 = vpop.permute.xlu1 %7670  ;;  %2414 = vmatmul.mubr.bf16.vlgmr.msra.gmra.mrb[52].mxu0 %v2219_v14  ;;  %v2221_v58 = vpack.c.bf16 %v2200_v26, %v2197_v45  ;;  %v2202_v5 = vmax.f32 %v11746_v28, %v2173_v2  ;;  %v11749_v55 = vmax.f32 %v9909_v40, 0.0 }
 0x455   : > { %v2205_v27 = vmax.f32 %v11747_v41, %v2174_v9  ;;  %v7673_v12 = vunpack.i.h.bf16 %v7671_v24  ;;  %v7672_v62 = vunpack.i.l.bf16 %v7671_v24  ;;  %4593 = vmatpush1.bf16.msra.mxu0 %v7956_v51  ;;  %v7974_v41 = vld [vmem:[#allocation13 + $0x3c] ss:$24 sps:$4 sm:$0xff]  }
 0x456   : > { %7169 = vmatprep.mubr.bf16.mxu1 %v2221_v58  ;;  %4594 = vmatprep.subr.bf16.mxu0 %v7962_v39  ;;  %v11751_v39 = vld [vmem:[#allocation63_spill] sm:$0xff] }
 0x457   : > { %v2223_v56 = vpack.c.bf16 %v2205_v27, %v2202_v5  ;;  %v2182_v50 = vsel %vm2170_vm2, %v7673_v12, %v7668_v44  ;;  %v2181_v14 = vsel %vm2170_vm2, %v7672_v62, %v7667_v21  ;;  %v2189_v25 = vsel %vm2170_vm2, %v7662_v8, %v7672_v62  ;;  %v7971_v5 = vld [vmem:[#allocation13 + $0x94] ss:$24 sps:$4 sm:$0xff]  }
 0x458   : > { %v2190_v57 = vsel %vm2170_vm2, %v7663_v19, %v7673_v12  ;;  %v2203_v34 = vmax.f32 %v11748_v54, %v2189_v25  ;;  %v7676_v51 = vpop.permute.xlu1 %7675  ;;  %v7681_v49 = vpop.permute.xlu0 %7680  ;;  %v11750_v44 = vmax.f32 %v9964_v38, 0.0  ;;  %v11752_v21 = vmax.f32 %v11751_v39, 0.0  ;;  %v7963_v19 = vld [vmem:[#allocation13 + $0x60] ss:$24 sps:$4 sm:$0xff]   ;;  %v7969_v25 = vld [vmem:[#allocation13 + $0x90] ss:$24 sps:$4 sm:$0xff]  }
 0x459   : > { %v2206_v45 = vmax.f32 %v11749_v55, %v2190_v57  ;;  %2421 = vmatprep.mubr.bf16.mxu0 %v2223_v56  ;;  %v7678_v2 = vunpack.i.h.bf16 %v7676_v51  ;;  %v7677_v8 = vunpack.i.l.bf16 %v7676_v51  ;;  %v7683_v24 = vunpack.i.h.bf16 %v7681_v49  ;;  %4595 = vmatpush1.bf16.msra.mxu0 %v7960_v17  ;;  %v7972_v57 = vld [vmem:[#allocation13 + $0x38] ss:$24 sps:$4 sm:$0xff]   ;;  %v7980_v55 = vld [vmem:[#allocation13 + $0x6c] ss:$24 sps:$4 sm:$0xff]  }
 0x45a   : > { %v2201_v26 = vmax.f32 %v11750_v44, %v2181_v14  ;;  %v2204_v9 = vmax.f32 %v11752_v21, %v2182_v50  ;;  %v7682_v58 = vunpack.i.l.bf16 %v7681_v49  ;;  %4596 = vmatprep.subr.bf16.mxu0 %v7965_v20  ;;  %v11753_v62 = vmax.f32 %v9980_v6, 0.0 }
 0x45b   : > { %v2224_v28 = vpack.c.bf16 %v2206_v45, %v2203_v34  ;;  %v2176_v27 = vsel %vm2170_vm2, %v7683_v24, %v7678_v2  ;;  %v11754_v17 = vmax.f32 %v9994_v18, 0.0  ;;  %v7977_v34 = vld [vmem:[#allocation13 + $0xc4] ss:$24 sps:$4 sm:$0xff]  }
 0x45c   : > { %v2222_v40 = vpack.c.bf16 %v2204_v9, %v2201_v26  ;;  %v2175_v38 = vsel %vm2170_vm2, %v7682_v58, %v7677_v8  ;;  %v7686_v12 = vpop.permute.xlu0 %7685  ;;  %v11755_v26 = vld [vmem:[#allocation65_spill] sm:$0xff]  ;;  %v11757_v9 = vmax.f32 %v9991_v59, 0.0 }
 0x45d   : > { %7170 = vmatmul.mubr.bf16.vlgmr.msra.gmra.mrb[60].mxu1 %v2224_v28  ;;  %v2208_v56 = vmax.f32 %v11753_v62, %v2175_v38  ;;  %v2211_v50 = vmax.f32 %v11754_v17, %v2176_v27  ;;  %v7688_v14 = vunpack.i.h.bf16 %v7686_v12  ;;  %v7687_v20 = vunpack.i.l.bf16 %v7686_v12  ;;  %4597 = vmatpush1.bf16.msra.mxu0 %v7963_v19  ;;  %v7978_v12 = vld [vmem:[#allocation13 + $0x68] ss:$24 sps:$4 sm:$0xff]   ;;  %v7983_v59 = vld [vmem:[#allocation13 + $0xf4] ss:$24 sps:$4 sm:$0xff]  }
 0x45e   : > { %2422 = vmatmul.mubr.bf16.gmra.mrb[56].mxu0 %v2222_v40  ;;  %4812 = vmatpush1.bf16.msra.mxu1 %v7966_v37  ;;  %v11756_v39 = vmax.f32 %v11755_v26, 0.0  ;;  %v11758_v37 = vld [vmem:[#allocation62_spill] sm:$0xff]  ;;  %v11760_v40 = vld [vmem:[#allocation64_spill] sm:$0xff] }
 0x45f   : > { %4598 = vmatprep.subr.bf16.mxu0 %v7971_v5  ;;  %4813 = vmatprep.subr.bf16.mxu1 %v7974_v41  ;;  %v2226_v54 = vpack.c.bf16 %v2211_v50, %v2208_v56  ;;  %v2192_v45 = vsel %vm2170_vm2, %v7678_v2, %v7688_v14  ;;  %v2183_v6 = vsel %vm2170_vm2, %v7687_v20, %v7682_v58  ;;  %v11759_v2 = vmax.f32 %v11758_v37, 0.0  ;;  %v7986_v17 = vld [vmem:[#allocation13 + $0x9c] ss:$24 sps:$4 sm:$0xff]   ;;  %v7992_v26 = vld [vmem:[#allocation13 + $0xcc] ss:$24 sps:$4 sm:$0xff]  }
 0x460   : > { %v2184_v18 = vsel %vm2170_vm2, %v7688_v14, %v7683_v24  ;;  %v2191_v51 = vsel %vm2170_vm2, %v7677_v8, %v7687_v20  ;;  %v7696_v49 = vpop.permute.xlu1 %7695  ;;  %v7691_v44 = vpop.permute.xlu0 %7690  ;;  %v2207_v21 = vmax.f32 %v11756_v39, %v2183_v6  ;;  %v11761_v58 = vmax.f32 %v11760_v40, 0.0  ;;  %v7975_v8 = vld [vmem:[#allocation13 + $0xc0] ss:$24 sps:$4 sm:$0xff]  }
 0x461   : > { %2429 = vmatprep.mubr.bf16.mxu0 %v2226_v54  ;;  %v2210_v19 = vmax.f32 %v11757_v9, %v2184_v18  ;;  %v2209_v28 = vmax.f32 %v11759_v2, %v2191_v51  ;;  %v7698_v41 = vunpack.i.h.bf16 %v7696_v49  ;;  %v7697_v24 = vunpack.i.l.bf16 %v7696_v49  ;;  %4599 = vmatpush1.bf16.msra.mxu0 %v7969_v25  ;;  %v7981_v18 = vld [vmem:[#allocation13 + $0xf0] ss:$24 sps:$4 sm:$0xff]  }
 0x462   : > { %v2212_v5 = vmax.f32 %v11761_v58, %v2192_v45  ;;  %v7693_v27 = vunpack.i.h.bf16 %v7691_v44  ;;  %v7692_v38 = vunpack.i.l.bf16 %v7691_v44  ;;  %4814 = vmatpush1.bf16.msra.mxu1 %v7972_v57  ;;  %4600 = vmatprep.subr.bf16.mxu0 %v7977_v34  ;;  %v11762_v25 = vmax.f32 %v10028_v30, 0.0  ;;  %v7984_v51 = vld [vmem:[#allocation13 + $0x98] ss:$24 sps:$4 sm:$0xff]   ;;  %v7989_v44 = vld [vmem:[#allocation13 + $0x124] ss:$24 sps:$4 sm:$0xff]  }
 0x463   : > { %4815 = vmatprep.subr.bf16.mxu1 %v7980_v55  ;;  %v2225_v62 = vpack.c.bf16 %v2210_v19, %v2207_v21  ;;  %v11763_v34 = vmax.f32 %v10054_v47, 0.0  ;;  %v11764_v37 = vmax.f32 %v10066_v3, 0.0  ;;  %v11766_v58 = vmax.f32 %v9935_v4, 0.0  ;;  %v7987_v3 = vld [vmem:[#allocation13 + $0x120] ss:$24 sps:$4 sm:$0xff]  }
 0x464   : > { %v2227_v56 = vpack.c.bf16 %v2212_v5, %v2209_v28  ;;  %v2178_v50 = vsel %vm2170_vm2, %v7698_v41, %v7693_v27  ;;  %v2177_v14 = vsel %vm2170_vm2, %v7697_v24, %v7692_v38  ;;  %v7701_v20 = vpop.permute.xlu1 %7700  ;;  %v10489_v54 = vpop.permute.xlu0 %7705  ;;  %v11765_v28 = vmax.f32 %v10051_v48, 0.0 }
 0x465   : > { %v2214_v57 = vmax.f32 %v11762_v25, %v2177_v14  ;;  %v2217_v55 = vmax.f32 %v11763_v34, %v2178_v50  ;;  %v7703_v45 = vunpack.i.h.bf16 %v7701_v20  ;;  %v7702_v6 = vunpack.i.l.bf16 %v7701_v20  ;;  %4601 = vmatpush1.bf16.msra.mxu0 %v7975_v8  ;;  %v7993_v25 = vld [vmem:[#allocation13 + $0x150] ss:$24 sps:$4 sm:$0xff]  }
 0x466   : > { %2430 = vmatmul.mubr.bf16.gmra.mrb[60].mxu0 %v2225_v62  ;;  %7173 = vmatprep.mubr.bf16.mxu1 %v2227_v56  ;;  %v7990_v62 = vld [vmem:[#allocation13 + $0xc8] ss:$24 sps:$4 sm:$0xff]   ;;  %v7995_v56 = vld [vmem:[#allocation13 + $0x154] ss:$24 sps:$4 sm:$0xff]   ;;  %v11768_v20 = vmax.f32 %v10034_v36, 0.0  ;;  %v11769_v34 = vmax.f32 %v10043_v61, 0.0 }
 0x467   : > { %4816 = vmatpush1.bf16.msra.mxu1 %v7978_v12  ;;  %4602 = vmatprep.subr.bf16.mxu0 %v7983_v59  ;;  %v2229_v49 = vpack.c.bf16 %v2217_v55, %v2214_v57  ;;  %v2185_v39 = vsel %vm2170_vm2, %v7702_v6, %v7697_v24  ;;  %v2186_v30 = vsel %vm2170_vm2, %v7703_v45, %v7698_v41  ;;  %v11767_v41 = vmax.f32 %v9952_v32, 0.0  ;;  %v7998_v59 = vld [vmem:[#allocation13 + $0xfc] ss:$24 sps:$4 sm:$0xff]   ;;  %v7996_v57 = vld [vmem:[#allocation13 + $0xf8] ss:$24 sps:$4 sm:$0xff]  }
 0x468   : > { %4817 = vmatprep.subr.bf16.mxu1 %v7986_v17  ;;  %v2193_v47 = vsel %vm2170_vm2, %v7692_v38, %v7702_v6  ;;  %v2194_v21 = vsel %vm2170_vm2, %v7693_v27, %v7703_v45  ;;  %v10503_v9 = vpop.permute.xlu1 %7710  ;;  %v10505_v19 = vpop.permute.xlu0 %7715  ;;  %v2213_v2 = vmax.f32 %v11764_v37, %v2185_v39  ;;  %v2216_v40 = vmax.f32 %v11765_v28, %v2186_v30  ;;  %v8001_v45 = vld [vmem:[#allocation13 + $0x184] ss:$24 sps:$4 sm:$0xff]   ;;  %v7999_v36 = vld [vmem:[#allocation13 + $0x180] ss:$24 sps:$4 sm:$0xff]   ;;  %v8005_v37 = vld [vmem:[#allocation13 + $0x1b0] ss:$24 sps:$4 sm:$0xff]  }
 0x469   : > { %2437 = vmatprep.mubr.bf16.mxu0 %v2229_v49  ;;  %v2215_v5 = vmax.f32 %v11766_v58, %v2193_v47  ;;  %v2218_v24 = vmax.f32 %v11767_v41, %v2194_v21  ;;  %v7708_v38 = vunpack.i.h.bf16 %v10489_v54  ;;  %v7707_v27 = vunpack.i.l.bf16 %v10489_v54  ;;  %4603 = vmatpush1.bf16.msra.mxu0 %v7981_v18  ;;  %v8004_v6 = vld [vmem:[#allocation13 + $0x12c] ss:$24 sps:$4 sm:$0xff]   ;;  %v8010_v39 = vld [vmem:[#allocation13 + $0x15c] ss:$24 sps:$4 sm:$0xff]  }
 0x46a   : > { %v7713_v8 = vunpack.i.h.bf16 %v10503_v9  ;;  %v7712_v12 = vunpack.i.l.bf16 %v10503_v9  ;;  %4604 = vmatprep.subr.bf16.mxu0 %v7989_v44  ;;  %v2228_v48 = vpack.c.bf16 %v2216_v40, %v2213_v2  ;;  %v8002_v44 = vld [vmem:[#allocation13 + $0x128] ss:$24 sps:$4 sm:$0xff]   ;;  %v7718_v47 = vunpack.i.h.bf16 %v10505_v19  ;;  %v8008_v2 = vld [vmem:[#allocation13 + $0x158] ss:$24 sps:$4 sm:$0xff]   ;;  %v8013_v28 = vld [vmem:[#allocation13 + $0x1e4] ss:$24 sps:$4 sm:$0xff]  }
 0x46b   : > { %4818 = vmatpush1.bf16.msra.mxu1 %v7984_v51  ;;  %v2230_v4 = vpack.c.bf16 %v2218_v24, %v2215_v5  ;;  %v7717_v21 = vunpack.i.l.bf16 %v10505_v19  ;;  %v8016_v40 = vld [vmem:[#allocation13 + $0x18c] ss:$24 sps:$4 sm:$0xff]  }
 0x46c   : > { %4819 = vmatprep.subr.bf16.mxu1 %v7992_v26  ;;  %v3025_v32 = vsel %vm2170_vm2, %v7707_v27, %v7712_v12  ;;  %v3026_v17 = vsel %vm2170_vm2, %v7708_v38, %v7713_v8  ;;  %v10527_v50 = vpop.permute.xlu1 %7720  ;;  %v10529_v14 = vpop.permute.xlu0 %7725  ;;  %v8007_v26 = vld [vmem:[#allocation13 + $0x1b4] ss:$24 sps:$4 sm:$0xff]   ;;  %v3034_v24 = vsel %vm2170_vm2, %v7718_v47, %v7708_v38 }
 0x46d   : > { %7174 = vmatmul.mubr.bf16.gmra.mrb[64].mxu1 %v2230_v4  ;;  %v3050_v54 = vmax.f32 %v11768_v20, %v3025_v32  ;;  %4605 = vmatpush1.bf16.msra.mxu0 %v7987_v3  ;;  %v3056_v55 = vmax.f32 %v11769_v34, %v3026_v17  ;;  %v3033_v41 = vsel %vm2170_vm2, %v7717_v21, %v7707_v27  ;;  %v8011_v3 = vld [vmem:[#allocation13 + $0x1e0] ss:$24 sps:$4 sm:$0xff]   ;;  %v8022_v4 = vld [vmem:[#allocation13 + $0x1bc] ss:$24 sps:$4 sm:$0xff]   ;;  %v7723_v27 = vunpack.i.h.bf16 %v10527_v50 }
 0x46e   : > { %2438 = vmatmul.mubr.bf16.gmra.mrb[64].mxu0 %v2228_v48  ;;  %4606 = vmatprep.subr.bf16.mxu0 %v7995_v56  ;;  %v8019_v48 = vld [vmem:[#allocation13 + $0x214] ss:$24 sps:$4 sm:$0xff]   ;;  %v11770_v56 = vmax.f32 %v10058_v43, 0.0  ;;  %v7727_v34 = vunpack.i.l.bf16 %v10529_v14 }
 0x46f   : > { %4820 = vmatpush1.bf16.msra.mxu1 %v7990_v62  ;;  %v10539_v49 = vpack.c.bf16 %v3056_v55, %v3050_v54  ;;  %v8014_v62 = vld [vmem:[#allocation13 + $0x188] ss:$24 sps:$4 sm:$0xff]   ;;  %v11771_v32 = vld [vmem:[#allocation66_spill] sm:$0xff]  ;;  %v7722_v54 = vunpack.i.l.bf16 %v10527_v50 }
 0x470   : > { %4821 = vmatprep.subr.bf16.mxu1 %v7998_v59  ;;  %v10535_v18 = vpop.permute.xlu1 %7730  ;;  %v10537_v51 = vpop.permute.xlu0 %7735  ;;  %v3049_v59 = vmax.f32 %v11770_v56, %v3033_v41  ;;  %v11772_v17 = vmax.f32 %v11771_v32, 0.0  ;;  %v11775_v41 = vld [vmem:[#allocation67_spill] sm:$0xff] }
 0x471   : > { %4607 = vmatpush1.bf16.msra.mxu0 %v7993_v25  ;;  %4624 = vmatprep.mubr.bf16.mxu0 %v10539_v49  ;;  %v11542_v50 = vunpack.i.l.bf16 %v10535_v18  ;;  %v3027_v9 = vsel %vm2170_vm2, %v7722_v54, %v7727_v34  ;;  %v8023_v56 = vld [vmem:[#allocation13 + $0x240] ss:$24 sps:$4 sm:$0xff]  }
 0x472   : > { %4843 = vmatprep.mubr.bf16.mxu1 %v10539_v49  ;;  %4608 = vmatprep.subr.bf16.mxu0 %v8001_v45  ;;  %v3055_v20 = vmax.f32 %v11772_v17, %v3034_v24  ;;  %v8017_v45 = vld [vmem:[#allocation13 + $0x210] ss:$24 sps:$4 sm:$0xff]   ;;  %v11776_v24 = vmax.f32 %v11775_v41, 0.0  ;;  %v11779_v41 = vmax.f32 %v10111_v63, 0.0 }
 0x473   : > { %4822 = vmatpush1.bf16.msra.mxu1 %v7996_v57  ;;  %v7728_v57 = vunpack.i.h.bf16 %v10529_v14  ;;  %v3035_v32 = vsel %vm2170_vm2, %v11542_v50, %v7722_v54 }
 0x474   : > { %4823 = vmatprep.subr.bf16.mxu1 %v8004_v6  ;;  %v10543_v61 = vpop.permute.xlu1 %7740  ;;  %v10545_v30 = vpop.permute.xlu0 %7745  ;;  %v8020_v6 = vld [vmem:[#allocation13 + $0x1b8] ss:$24 sps:$4 sm:$0xff]  }
 0x475   : > { %4609 = vmatpush1.bf16.msra.mxu0 %v7999_v36  ;;  %v11541_v36 = vunpack.i.h.bf16 %v10535_v18  ;;  %v11549_v63 = vunpack.i.l.bf16 %v10545_v30 }
 0x476   : > { %4610 = vmatprep.subr.bf16.mxu0 %v8007_v26  ;;  %v8028_v26 = vld [vmem:[#allocation13 + $0x1ec] ss:$24 sps:$4 sm:$0xff]  }
 0x477   : > { %4824 = vmatpush1.bf16.msra.mxu1 %v8002_v44  ;;  %v8025_v44 = vld [vmem:[#allocation13 + $0x244] ss:$24 sps:$4 sm:$0xff]   ;;  %v3036_v17 = vsel %vm2170_vm2, %v11541_v36, %v7723_v27  ;;  %v8038_v36 = vld [vmem:[#allocation13 + $0x248] ss:$24 sps:$4 sm:$0xff]  }
 0x478   : > { %4825 = vmatprep.subr.bf16.mxu1 %v8010_v39  ;;  %v10549_v58 = vpop.permute.xlu1 %7750  ;;  %v10551_v5 = vpop.permute.xlu0 %7755 }
 0x479   : > { %4611 = vmatpush1.bf16.msra.mxu0 %v8005_v37  ;;  %v10589_v37 = vpack.c.bf16 %v3055_v20, %v3049_v59  ;;  %v8026_v59 = vld [vmem:[#allocation13 + $0x1e8] ss:$24 sps:$4 sm:$0xff]  }
 0x47a   : > { %4612 = vmatprep.subr.bf16.mxu0 %v8013_v28 }
 0x47b   : > { %4826 = vmatpush1.bf16.msra.mxu1 %v8008_v2  ;;  %v11773_v2 = vld [vmem:[#allocation68_spill] sm:$0xff] }
 0x47c   : > { %4827 = vmatprep.subr.bf16.mxu1 %v8016_v40  ;;  %v10567_v25 = vpop.permute.xlu1 %7760  ;;  %v10569_v38 = vpop.permute.xlu0 %7765  ;;  %v11774_v28 = vmax.f32 %v11773_v2, 0.0 }
 0x47d   : > { %v11536_v55 = vunpack.i.h.bf16 %v10569_v38  ;;  %v11538_v43 = vunpack.i.l.bf16 %v10569_v38  ;;  %4613 = vmatpush1.bf16.msra.mxu0 %v8011_v3 }
 0x47e   : > { %4614 = vmatprep.subr.bf16.mxu0 %v8019_v48 }
 0x47f   : > { %4828 = vmatpush1.bf16.msra.mxu1 %v8014_v62  ;;  %v3018_v14 = vsel %vm2170_vm2, %v7713_v8, %v11536_v55  ;;  %v3017_v39 = vsel %vm2170_vm2, %v7712_v12, %v11538_v43  ;;  %v3028_v8 = vsel %vm2170_vm2, %v7723_v27, %v7728_v57  ;;  %v7738_v55 = vunpack.i.h.bf16 %v10537_v51 }
 0x480   : > { %4829 = vmatprep.subr.bf16.mxu1 %v8022_v4  ;;  %v3057_v40 = vmax.f32 %v11774_v28, %v3018_v14  ;;  %v3051_v3 = vmax.f32 %v11776_v24, %v3017_v39  ;;  %v10595_v62 = vpop.permute.xlu1 %7770  ;;  %v10597_v48 = vpop.permute.xlu0 %7775  ;;  %v8031_v14 = vld [vmem:[#allocation13 + $0x274] ss:$24 sps:$4 sm:$0xff]   ;;  %v11780_v24 = vmax.f32 %v10103_v0, 0.0  ;;  %v8037_v0 = vld [vmem:[#allocation13 + $0x2a4] ss:$24 sps:$4 sm:$0xff]  }
 0x481   : > { %v11537_v12 = vunpack.i.h.bf16 %v10597_v48  ;;  %v11535_v4 = vunpack.i.l.bf16 %v10597_v48  ;;  %4615 = vmatpush1.bf16.msra.mxu0 %v8017_v45  ;;  %v8034_v39 = vld [vmem:[#allocation13 + $0x21c] ss:$24 sps:$4 sm:$0xff]   ;;  %v7743_v45 = vunpack.i.h.bf16 %v10543_v61 }
 0x482   : > { %v10613_v20 = vpack.c.bf16 %v3057_v40, %v3051_v3  ;;  %4616 = vmatprep.subr.bf16.mxu0 %v8025_v44 }
 0x483   : > { %4830 = vmatpush1.bf16.msra.mxu1 %v8020_v6  ;;  %v7742_v6 = vunpack.i.l.bf16 %v10543_v61  ;;  %v3019_v54 = vsel %vm2170_vm2, %v7727_v34, %v11535_v4  ;;  %v3020_v27 = vsel %vm2170_vm2, %v7728_v57, %v11537_v12  ;;  %v3068_v61 = vmax.f32 %v11779_v41, %v3028_v8  ;;  %v8040_v8 = vld [vmem:[#allocation13 + $0x24c] ss:$24 sps:$4 sm:$0xff]  }
 0x484   : > { %4831 = vmatprep.subr.bf16.mxu1 %v8028_v26  ;;  %v10625_v2 = vpop.permute.xlu1 %7780  ;;  %v10627_v44 = vpop.permute.xlu0 %7785  ;;  %v11777_v26 = vld [vmem:[#allocation69_spill] sm:$0xff]  ;;  %v3063_v3 = vmax.f32 %v11780_v24, %v3019_v54  ;;  %v11781_v34 = vmax.f32 %v10115_v11, 0.0  ;;  %v7737_v57 = vunpack.i.l.bf16 %v10537_v51  ;;  %v11782_v11 = vmax.f32 %v10133_v1, 0.0 }
 0x485   : > { %v11778_v28 = vmax.f32 %v11777_v26, 0.0  ;;  %v11539_v12 = vunpack.i.h.bf16 %v10627_v44  ;;  %v11540_v43 = vunpack.i.l.bf16 %v10627_v44  ;;  %4617 = vmatpush1.bf16.msra.mxu0 %v8023_v56  ;;  %v8032_v26 = vld [vmem:[#allocation13 + $0x218] ss:$24 sps:$4 sm:$0xff]  }
 0x486   : > { %v3069_v4 = vmax.f32 %v11781_v34, %v3020_v27  ;;  %4618 = vmatprep.subr.bf16.mxu0 %v8031_v14  ;;  %v3061_v54 = vmax.f32 %v11782_v11, %v3035_v32  ;;  %v11783_v27 = vmax.f32 %v10127_v53, 0.0  ;;  %v3029_v56 = vsel %vm2170_vm2, %v7737_v57, %v7742_v6 }
 0x487   : > { %v3062_v40 = vmax.f32 %v11778_v28, %v3027_v9  ;;  %4832 = vmatpush1.bf16.msra.mxu1 %v8026_v59  ;;  %v8029_v9 = vld [vmem:[#allocation13 + $0x270] ss:$24 sps:$4 sm:$0xff]   ;;  %v3030_v59 = vsel %vm2170_vm2, %v7738_v55, %v7743_v45  ;;  %v3022_v14 = vsel %vm2170_vm2, %v7743_v45, %v11539_v12  ;;  %v3021_v1 = vsel %vm2170_vm2, %v7742_v6, %v11540_v43  ;;  %v8035_v43 = vld [vmem:[#allocation13 + $0x2a0] ss:$24 sps:$4 sm:$0xff]  }
 0x488   : > { %4833 = vmatprep.subr.bf16.mxu1 %v8034_v39  ;;  %v3067_v51 = vmax.f32 %v11783_v27, %v3036_v17  ;;  %v10646_v28 = vpack.c.bf16 %v3069_v4, %v3063_v3  ;;  %v11548_v53 = vunpack.i.h.bf16 %v10545_v30  ;;  %v10661_v4 = vpop.permute.xlu1 %7790  ;;  %v10663_v32 = vpop.permute.xlu0 %7795  ;;  %v11784_v39 = vld [vmem:[#allocation53_spill] sm:$0xff]  ;;  %v11786_v3 = vld [vmem:[#allocation74_spill] sm:$0xff]  ;;  %v11546_v45 = vunpack.i.h.bf16 %v10551_v5 }
 0x489   : > { %v10665_v17 = vpack.c.bf16 %v3068_v61, %v3062_v40  ;;  %v11785_v41 = vmax.f32 %v11784_v39, 0.0  ;;  %v11787_v34 = vmax.f32 %v11786_v3, 0.0  ;;  %v11545_v27 = vunpack.i.l.bf16 %v10551_v5  ;;  %4619 = vmatpush1.bf16.msra.mxu0 %v8029_v9  ;;  %v8043_v40 = vld [vmem:[#allocation13 + $0x2d4] ss:$24 sps:$4 sm:$0xff]  }
 0x48a   : > { %v11543_v6 = vunpack.i.h.bf16 %v10663_v32  ;;  %v11544_v12 = vunpack.i.l.bf16 %v10663_v32  ;;  %4620 = vmatprep.subr.bf16.mxu0 %v8037_v0  ;;  %v8046_v61 = vld [vmem:[#allocation13 + $0x27c] ss:$24 sps:$4 sm:$0xff]   ;;  %v10685_v9 = vsel %vm2170_vm2, %v11549_v63, %v7737_v57  ;;  %v10705_v57 = vsel %vm2170_vm2, %v11548_v53, %v7738_v55  ;;  %v8041_v55 = vld [vmem:[#allocation13 + $0x2d0] ss:$24 sps:$4 sm:$0xff]   ;;  %v8047_v63 = vld [vmem:[#allocation13 + $0x300] ss:$24 sps:$4 sm:$0xff]  }
 0x48b   : > { %v3075_v24 = vmax.f32 %v11785_v41, %v3021_v1  ;;  %v3081_v11 = vmax.f32 %v11787_v34, %v3022_v14  ;;  %4834 = vmatpush1.bf16.msra.mxu1 %v8032_v26  ;;  %v11788_v1 = vld [vmem:[#allocation70_spill] sm:$0xff]  ;;  %v11790_v14 = vld [vmem:[#allocation71_spill] sm:$0xff] }
 0x48c   : > { %4835 = vmatprep.subr.bf16.mxu1 %v8040_v8  ;;  %v11789_v39 = vmax.f32 %v11788_v1, 0.0  ;;  %v11791_v3 = vmax.f32 %v11790_v14, 0.0  ;;  %v3023_v26 = vsel %vm2170_vm2, %v11545_v27, %v11544_v12  ;;  %v3024_v0 = vsel %vm2170_vm2, %v11546_v45, %v11543_v6  ;;  %v8044_v12 = vld [vmem:[#allocation13 + $0x278] ss:$24 sps:$4 sm:$0xff]  }
 0x48d   : > { %v10679_v50 = vpack.c.bf16 %v3081_v11, %v3075_v24  ;;  %v10699_v8 = vpack.c.bf16 %v3067_v51, %v3061_v54  ;;  %v7806_v24 = vpop.permute.xlu0 %7805  ;;  %v11792_v11 = vmax.f32 %v10204_v60, 0.0  ;;  %v11547_v54 = vunpack.i.h.bf16 %v10595_v62  ;;  %4621 = vmatpush1.bf16.msra.mxu0 %v8035_v43  ;;  %v8049_v60 = vld [vmem:[#allocation13 + $0x304] ss:$24 sps:$4 sm:$0xff]  }
 0x48e   : > { %v3074_v41 = vmax.f32 %v11789_v39, %v3029_v56  ;;  %v3080_v34 = vmax.f32 %v11791_v3, %v3030_v59  ;;  %v10708_v59 = vpop.permute.xlu1 %7800  ;;  %v11793_v39 = vmax.f32 %v10212_v10, 0.0  ;;  %v11550_v51 = vunpack.i.l.bf16 %v10595_v62  ;;  %4622 = vmatprep.subr.bf16.mxu0 %v8043_v40 }
 0x48f   : > { %v3087_v1 = vmax.f32 %v11792_v11, %v3023_v26  ;;  %v7808_v3 = vunpack.i.h.bf16 %v7806_v24  ;;  %v7807_v6 = vunpack.i.l.bf16 %v7806_v24  ;;  %4836 = vmatpush1.bf16.msra.mxu1 %v8038_v36  ;;  %v8052_v26 = vld [vmem:[#allocation13 + $0x2ac] ss:$24 sps:$4 sm:$0xff]   ;;  %v11552_v11 = vunpack.i.h.bf16 %v10625_v2 }
 0x490   : > { %v3093_v14 = vmax.f32 %v11793_v39, %v3024_v0  ;;  %4837 = vmatprep.subr.bf16.mxu1 %v8046_v61  ;;  %v10718_v10 = vpack.c.bf16 %v3080_v34, %v3074_v41  ;;  %v11553_v24 = vunpack.i.l.bf16 %v10625_v2  ;;  %v11551_v61 = vunpack.i.l.bf16 %v10661_v4 }
 0x491   : > { %v3002_v43 = vsel %vm2170_vm2, %v11547_v54, %v7808_v3  ;;  %v3001_v36 = vsel %vm2170_vm2, %v11550_v51, %v7807_v6  ;;  %v11794_v41 = vmax.f32 %v10250_v29, 0.0  ;;  %v7816_v45 = vpop.permute.xlu0 %7815  ;;  %4623 = vmatpush1.bf16.msra.mxu0 %v8041_v55  ;;  %v7803_v51 = vunpack.i.h.bf16 %v10708_v59 }
 0x492   : > { %v10720_v0 = vpack.c.bf16 %v3093_v14, %v3087_v1  ;;  %v11795_v1 = vmax.f32 %v10244_v42, 0.0  ;;  %v7811_v14 = vpop.permute.xlu1 %7810  ;;  %v7818_v54 = vunpack.i.h.bf16 %v7816_v45  ;;  %v7817_v53 = vunpack.i.l.bf16 %v7816_v45  ;;  %4665 = vmatprep.subr.bf16.mxu0 %v8049_v60 }
 0x493   : > { %v3059_v34 = vmax.f32 %v11794_v41, %v3002_v43  ;;  %v7813_v27 = vunpack.i.h.bf16 %v7811_v14  ;;  %v7812_v56 = vunpack.i.l.bf16 %v7811_v14  ;;  %4838 = vmatpush1.bf16.msra.mxu1 %v8044_v12  ;;  %v7802_v40 = vunpack.i.l.bf16 %v10708_v59  ;;  %v8050_v43 = vld [vmem:[#allocation13 + $0x2a8] ss:$24 sps:$4 sm:$0xff]   ;;  %v8169_v59 = vld [vmem:[#allocation13 + $0x6c4] ss:$24 sps:$4 sm:$0xff]  }
 0x494   : > { %v3053_v39 = vmax.f32 %v11795_v1, %v3001_v36  ;;  %v3041_v29 = vsel %vm2170_vm2, %v7807_v6, %v7717_v21  ;;  %4839 = vmatprep.subr.bf16.mxu1 %v8052_v26  ;;  %v8055_v36 = vld [vmem:[#allocation13 + $0x334] ss:$24 sps:$4 sm:$0xff]   ;;  %v3042_v12 = vsel %vm2170_vm2, %v7808_v3, %v7718_v47  ;;  %v11796_v55 = vunpack.i.l.bf16 %v10535_v18  ;;  %4625 = vmatmul.mubr.bf16.vlgmr.msra.gmra.mrb[68].mxu0 %v10589_v37 }
 0x495   : > { %v3003_v45 = vsel %vm2170_vm2, %v11553_v24, %v7812_v56  ;;  %v11797_v6 = vunpack.i.h.bf16 %v10535_v18  ;;  %v8058_v26 = vld [vmem:[#allocation13 + $0x2dc] ss:$24 sps:$4 sm:$0xff]   ;;  %v3004_v19 = vsel %vm2170_vm2, %v11552_v11, %v7813_v27  ;;  %v11798_v47 = vunpack.i.h.bf16 %v10661_v4  ;;  %4634 = vmatprep.mubr.bf16.mxu0 %v10665_v17  ;;  %4666 = vmatpush1.bf16.msra.mxu0 %v8047_v63 }
 0x496   : > { %v10744_v42 = vpack.c.bf16 %v3059_v34, %v3053_v39  ;;  %v3043_v21 = vsel %vm2170_vm2, %v7812_v56, %v11796_v55  ;;  %v3005_v56 = vsel %vm2170_vm2, %v11551_v61, %v7817_v53  ;;  %v11799_v18 = vunpack.i.l.bf16 %v10545_v30  ;;  %v7821_v34 = vpop.permute.xlu1 %7820  ;;  %v8053_v55 = vld [vmem:[#allocation13 + $0x330] ss:$24 sps:$4 sm:$0xff]   ;;  %4667 = vmatprep.subr.bf16.mxu0 %v8055_v36 }
 0x497   : > { %v3044_v60 = vsel %vm2170_vm2, %v7813_v27, %v11797_v6  ;;  %v3006_v3 = vsel %vm2170_vm2, %v11798_v47, %v7818_v54  ;;  %v11800_v27 = vunpack.i.h.bf16 %v10545_v30  ;;  %v7823_v39 = vunpack.i.h.bf16 %v7821_v34  ;;  %4840 = vmatpush1.bf16.msra.mxu1 %v8050_v43  ;;  %v8064_v43 = vld [vmem:[#allocation13 + $0x30c] ss:$24 sps:$4 sm:$0xff]  }
 0x498   : > { %v3045_v41 = vsel %vm2170_vm2, %v7817_v53, %v11799_v18  ;;  %v7822_v14 = vunpack.i.l.bf16 %v7821_v34  ;;  %v11801_v6 = vmax.f32 %v10322_v23, 0.0  ;;  %v7752_v61 = vunpack.i.l.bf16 %v10549_v58  ;;  %v8056_v53 = vld [vmem:[#allocation13 + $0x2d8] ss:$24 sps:$4 sm:$0xff]   ;;  %v8061_v18 = vld [vmem:[#allocation13 + $0x364] ss:$24 sps:$4 sm:$0xff]   ;;  %4841 = vmatprep.subr.bf16.mxu1 %v8058_v26 }
 0x499   : > { %v3046_v1 = vsel %vm2170_vm2, %v7818_v54, %v11800_v27  ;;  %v11802_v30 = vmax.f32 %v10331_v16, 0.0  ;;  %v11803_v54 = vmax.f32 %v10348_v22, 0.0  ;;  %v11804_v34 = vmax.f32 %v10351_v13, 0.0  ;;  %4668 = vmatpush1.bf16.msra.mxu0 %v8053_v55  ;;  %v11815_v55 = vld [vmem:[#allocation52_spill] sm:$0xff] }
 0x49a   : > { %v3054_v47 = vmax.f32 %v11801_v6, %v3041_v29  ;;  %v3007_v23 = vsel %vm2170_vm2, %v7802_v40, %v7822_v14  ;;  %v3008_v63 = vsel %vm2170_vm2, %v7803_v51, %v7823_v39  ;;  %v11805_v29 = vunpack.i.l.bf16 %v10567_v25  ;;  %4669 = vmatprep.subr.bf16.mxu0 %v8061_v18 }
 0x49b   : > { %v3060_v11 = vmax.f32 %v11802_v30, %v3042_v12  ;;  %v3066_v27 = vmax.f32 %v11803_v54, %v3043_v21  ;;  %v3072_v24 = vmax.f32 %v11804_v34, %v3044_v60  ;;  %v11806_v22 = vunpack.i.h.bf16 %v10567_v25  ;;  %4842 = vmatpush1.bf16.msra.mxu1 %v8056_v53  ;;  %v11819_v53 = vld [vmem:[#allocation51_spill] sm:$0xff] }
 0x49c   : > { %v3047_v16 = vsel %vm2170_vm2, %v7822_v14, %v11805_v29  ;;  %v11807_v21 = vmax.f32 %v10271_v52, 0.0  ;;  %v11808_v6 = vmax.f32 %v10274_v46, 0.0  ;;  %v11809_v14 = vmax.f32 %v10368_v31, 0.0  ;;  %v11813_v46 = vld [vmem:[#allocation54_spill] sm:$0xff]  ;;  %4884 = vmatprep.subr.bf16.mxu1 %v8064_v43  ;;  %4635 = vmatmul.mubr.bf16.gmra.mrb[72].mxu0 %v10699_v8 }
 0x49d   : > { %v3048_v13 = vsel %vm2170_vm2, %v7823_v39, %v11806_v22  ;;  %v10809_v36 = vpack.c.bf16 %v3060_v11, %v3054_v47  ;;  %v10811_v12 = vpack.c.bf16 %v3072_v24, %v3066_v27  ;;  %v11810_v34 = vmax.f32 %v10371_v7, 0.0  ;;  %v8059_v47 = vld [vmem:[#allocation13 + $0x360] ss:$24 sps:$4 sm:$0xff]   ;;  %v8067_v7 = vld [vmem:[#allocation13 + $0x394] ss:$24 sps:$4 sm:$0xff]   ;;  %4644 = vmatprep.mubr.bf16.mxu0 %v10718_v10 }
 0x49e   : > { %v3065_v60 = vmax.f32 %v11807_v21, %v3003_v45  ;;  %v3071_v30 = vmax.f32 %v11808_v6, %v3004_v19  ;;  %v3078_v54 = vmax.f32 %v11809_v14, %v3045_v41  ;;  %v11811_v26 = vmax.f32 %v10309_v15, 0.0  ;;  %v8062_v27 = vld [vmem:[#allocation13 + $0x308] ss:$24 sps:$4 sm:$0xff]   ;;  %v8070_v6 = vld [vmem:[#allocation13 + $0x33c] ss:$24 sps:$4 sm:$0xff]   ;;  %4844 = vmatmul.mubr.bf16.vlgmr.msra.gmra.mrb[68].mxu1 %v10589_v37  ;;  %4670 = vmatpush1.bf16.msra.mxu0 %v8059_v47 }
 0x49f   : > { %v3084_v29 = vmax.f32 %v11810_v34, %v3046_v1  ;;  %v11812_v11 = vmax.f32 %v10313_v33, 0.0  ;;  %v11814_v45 = vmax.f32 %v11813_v46, 0.0  ;;  %v11816_v31 = vmax.f32 %v11815_v55, 0.0  ;;  %v11817_v33 = vld [vmem:[#allocation50_spill] sm:$0xff]  ;;  %4853 = vmatprep.mubr.bf16.mxu1 %v10665_v17  ;;  %v11826_v34 = vld [vmem:[#allocation73_spill] sm:$0xff]  ;;  %4885 = vmatpush1.bf16.msra.mxu1 %v8062_v27 }
 0x4a0   : > { %v3077_v39 = vmax.f32 %v11811_v26, %v3005_v56  ;;  %v10825_v52 = vpack.c.bf16 %v3071_v30, %v3065_v60  ;;  %v11820_v18 = vmax.f32 %v11819_v53, 0.0  ;;  %v11821_v21 = vunpack.i.h.bf16 %v10551_v5  ;;  %4671 = vmatprep.subr.bf16.mxu0 %v8067_v7  ;;  %4886 = vmatprep.subr.bf16.mxu1 %v8070_v6 }
 0x4a1   : > { %v3083_v24 = vmax.f32 %v11812_v11, %v3006_v3  ;;  %v3090_v19 = vmax.f32 %v11814_v45, %v3047_v16  ;;  %v3096_v41 = vmax.f32 %v11816_v31, %v3048_v13  ;;  %v10831_v1 = vpack.c.bf16 %v3084_v29, %v3078_v54  ;;  %v8073_v11 = vld [vmem:[#allocation13 + $0x3c4] ss:$24 sps:$4 sm:$0xff]  }
 0x4a2   : > { %v11818_v3 = vmax.f32 %v11817_v33, 0.0  ;;  %v3095_v22 = vmax.f32 %v11820_v18, %v3008_v63  ;;  %v11822_v16 = vunpack.i.h.bf16 %v10549_v58  ;;  %v11823_v43 = vunpack.i.l.bf16 %v10551_v5  ;;  %v8065_v63 = vld [vmem:[#allocation13 + $0x390] ss:$24 sps:$4 sm:$0xff]   ;;  %v8076_v31 = vld [vmem:[#allocation13 + $0x36c] ss:$24 sps:$4 sm:$0xff]  }
 0x4a3   : > { %v10833_v15 = vpack.c.bf16 %v3083_v24, %v3077_v39  ;;  %v10850_v30 = vpack.c.bf16 %v3096_v41, %v3090_v19  ;;  %v11824_v5 = vld [vmem:[#allocation72_spill] sm:$0xff]  ;;  %v11827_v29 = vmax.f32 %v11826_v34, 0.0  ;;  %v8068_v39 = vld [vmem:[#allocation13 + $0x338] ss:$24 sps:$4 sm:$0xff]   ;;  %4672 = vmatpush1.bf16.msra.mxu0 %v8065_v63  ;;  %v11832_v33 = vunpack.i.l.bf16 %v10567_v25  ;;  %v8079_v18 = vld [vmem:[#allocation13 + $0x3f4] ss:$24 sps:$4 sm:$0xff]  }
 0x4a4   : > { %v3089_v56 = vmax.f32 %v11818_v3, %v3007_v23  ;;  %v3032_v13 = vsel %vm2170_vm2, %v11822_v16, %v11821_v21  ;;  %v3031_v60 = vsel %vm2170_vm2, %v7752_v61, %v11823_v43  ;;  %v11825_v14 = vmax.f32 %v11824_v5, 0.0  ;;  %v11828_v24 = vld [vmem:[#allocation75_spill] sm:$0xff]  ;;  %4887 = vmatpush1.bf16.msra.mxu1 %v8068_v39  ;;  %4673 = vmatprep.subr.bf16.mxu0 %v8073_v11  ;;  %v8077_v43 = vld [vmem:[#allocation13 + $0x3f0] ss:$24 sps:$4 sm:$0xff]  }
 0x4a5   : > { %v3079_v26 = vmax.f32 %v11827_v29, %v10705_v57  ;;  %v11829_v46 = vmax.f32 %v11828_v24, 0.0  ;;  %v11830_v19 = vld [vmem:[#allocation59_spill] sm:$0xff]  ;;  %v3039_v57 = vsel %vm2170_vm2, %v11832_v33, %v7752_v61  ;;  %v11833_v27 = vmov %v11822_v16  ;;  %4888 = vmatprep.subr.bf16.mxu1 %v8076_v31  ;;  %v11841_v63 = vld [vmem:[#allocation61_spill] sm:$0xff]  ;;  %v11843_v34 = vld [vmem:[#allocation42_spill] sm:$0xff] }
 0x4a6   : > { %v10854_v23 = vpack.c.bf16 %v3095_v22, %v3089_v56  ;;  %v3073_v54 = vmax.f32 %v11825_v14, %v10685_v9  ;;  %v11831_v47 = vmax.f32 %v11830_v19, 0.0  ;;  %v8071_v9 = vld [vmem:[#allocation13 + $0x3c0] ss:$24 sps:$4 sm:$0xff]   ;;  %v11834_v7 = vunpack.i.h.bf16 %v10567_v25  ;;  %4854 = vmatmul.mubr.bf16.gmra.mrb[72].mxu1 %v10699_v8  ;;  %v8091_v31 = vld [vmem:[#allocation13 + $0x454] ss:$24 sps:$4 sm:$0xff]  }
 0x4a7   : > { %v3086_v45 = vmax.f32 %v11829_v46, %v3031_v60  ;;  %v8074_v56 = vld [vmem:[#allocation13 + $0x368] ss:$24 sps:$4 sm:$0xff]   ;;  %v11835_v22 = vunpack.i.l.bf16 %v10595_v62  ;;  %v11836_v21 = vunpack.i.l.bf16 %v10569_v38  ;;  %v11837_v58 = vunpack.i.h.bf16 %v10595_v62  ;;  %4674 = vmatpush1.bf16.msra.mxu0 %v8071_v9  ;;  %4863 = vmatprep.mubr.bf16.mxu1 %v10718_v10  ;;  %v8080_v14 = vld [vmem:[#allocation13 + $0x398] ss:$24 sps:$4 sm:$0xff]   ;;  %v8088_v46 = vld [vmem:[#allocation13 + $0x3cc] ss:$24 sps:$4 sm:$0xff]  }
 0x4a8   : > { %v3092_v55 = vmax.f32 %v11831_v47, %v3032_v13  ;;  %v10867_v41 = vpack.c.bf16 %v3079_v26, %v3073_v54  ;;  %v3040_v3 = vsel %vm2170_vm2, %v11834_v7, %v11833_v27  ;;  %v11838_v25 = vunpack.i.h.bf16 %v10569_v38  ;;  %v8082_v13 = vld [vmem:[#allocation13 + $0x39c] ss:$24 sps:$4 sm:$0xff]   ;;  %v11839_v60 = vld [vmem:[#allocation45_spill] sm:$0xff]  ;;  %4889 = vmatpush1.bf16.msra.mxu1 %v8074_v56  ;;  %4675 = vmatprep.subr.bf16.mxu0 %v8079_v18  ;;  %v8083_v19 = vld [vmem:[#allocation13 + $0x420] ss:$24 sps:$4 sm:$0xff]  }
 0x4a9   : > { %v3009_v61 = vsel %vm2170_vm2, %v11836_v21, %v11835_v22  ;;  %v11840_v6 = vmax.f32 %v11839_v60, 0.0  ;;  %v11842_v38 = vmax.f32 %v11841_v63, 0.0  ;;  %v8085_v54 = vld [vmem:[#allocation13 + $0x424] ss:$24 sps:$4 sm:$0xff]   ;;  %v11844_v29 = vmax.f32 %v11843_v34, 0.0  ;;  %4890 = vmatprep.subr.bf16.mxu1 %v8082_v13 }
 0x4aa   : > { %v10879_v53 = vpack.c.bf16 %v3092_v55, %v3086_v45  ;;  %v3010_v16 = vsel %vm2170_vm2, %v11838_v25, %v11837_v58  ;;  %4645 = vmatmul.mubr.bf16.gmra.mrb[76].mxu0 %v10867_v41  ;;  %v11845_v39 = vld [vmem:[#allocation43_spill] sm:$0xff]  ;;  %v8089_v33 = vld [vmem:[#allocation13 + $0x450] ss:$24 sps:$4 sm:$0xff]   ;;  %v8100_v7 = vld [vmem:[#allocation13 + $0x42c] ss:$24 sps:$4 sm:$0xff]  }
 0x4ab   : > { %v3085_v62 = vmax.f32 %v11840_v6, %v3039_v57  ;;  %v3091_v5 = vmax.f32 %v11842_v38, %v3040_v3  ;;  %v3052_v26 = vmax.f32 %v11844_v29, %v3009_v61  ;;  %v11846_v11 = vmax.f32 %v11845_v39, 0.0  ;;  %4676 = vmatpush1.bf16.msra.mxu0 %v8077_v43  ;;  %v8086_v47 = vld [vmem:[#allocation13 + $0x3c8] ss:$24 sps:$4 sm:$0xff]   ;;  %v8094_v9 = vld [vmem:[#allocation13 + $0x3fc] ss:$24 sps:$4 sm:$0xff]  }
 0x4ac   : > { %4654 = vmatprep.mubr.bf16.mxu0 %v10879_v53  ;;  %4891 = vmatpush1.bf16.msra.mxu1 %v8080_v14  ;;  %v8092_v57 = vld [vmem:[#allocation13 + $0x3f8] ss:$24 sps:$4 sm:$0xff]   ;;  %v8097_v27 = vld [vmem:[#allocation13 + $0x484] ss:$24 sps:$4 sm:$0xff]   ;;  %v8098_v56 = vld [vmem:[#allocation13 + $0x428] ss:$24 sps:$4 sm:$0xff]  }
 0x4ad   : > { %v3058_v24 = vmax.f32 %v11846_v11, %v3010_v16  ;;  %v10905_v45 = vpack.c.bf16 %v3091_v5, %v3085_v62  ;;  %4677 = vmatprep.subr.bf16.mxu0 %v8085_v54  ;;  %4892 = vmatprep.subr.bf16.mxu1 %v8088_v46  ;;  %v8095_v3 = vld [vmem:[#allocation13 + $0x480] ss:$24 sps:$4 sm:$0xff]   ;;  %v8103_v18 = vld [vmem:[#allocation13 + $0x4b4] ss:$24 sps:$4 sm:$0xff]   ;;  %v8101_v21 = vld [vmem:[#allocation13 + $0x4b0] ss:$24 sps:$4 sm:$0xff]  }
 0x4ae   : > { %4864 = vmatmul.mubr.bf16.gmra.mrb[76].mxu1 %v10867_v41  ;;  %v8106_v22 = vld [vmem:[#allocation13 + $0x45c] ss:$24 sps:$4 sm:$0xff]   ;;  %v8104_v61 = vld [vmem:[#allocation13 + $0x458] ss:$24 sps:$4 sm:$0xff]   ;;  %v8112_v25 = vld [vmem:[#allocation13 + $0x48c] ss:$24 sps:$4 sm:$0xff]  }
 0x4af   : > { %v10907_v55 = vpack.c.bf16 %v3058_v24, %v3052_v26  ;;  %4678 = vmatpush1.bf16.msra.mxu0 %v8083_v19  ;;  %4873 = vmatprep.mubr.bf16.mxu1 %v10879_v53  ;;  %v8109_v58 = vld [vmem:[#allocation13 + $0x4e4] ss:$24 sps:$4 sm:$0xff]   ;;  %v8107_v16 = vld [vmem:[#allocation13 + $0x4e0] ss:$24 sps:$4 sm:$0xff]   ;;  %v8115_v43 = vld [vmem:[#allocation13 + $0x514] ss:$24 sps:$4 sm:$0xff]  }
 0x4b0   : > { %4893 = vmatpush1.bf16.msra.mxu1 %v8086_v47  ;;  %4679 = vmatprep.subr.bf16.mxu0 %v8091_v31  ;;  %v8110_v13 = vld [vmem:[#allocation13 + $0x488] ss:$24 sps:$4 sm:$0xff]   ;;  %v8118_v60 = vld [vmem:[#allocation13 + $0x4bc] ss:$24 sps:$4 sm:$0xff]   ;;  %v8116_v62 = vld [vmem:[#allocation13 + $0x4b8] ss:$24 sps:$4 sm:$0xff]   ;;  %v11847_v31 = vunpack.i.l.bf16 %v10625_v2 }
 0x4b1   : > { %4894 = vmatprep.subr.bf16.mxu1 %v8094_v9  ;;  %v8113_v6 = vld [vmem:[#allocation13 + $0x510] ss:$24 sps:$4 sm:$0xff]   ;;  %v8121_v63 = vld [vmem:[#allocation13 + $0x544] ss:$24 sps:$4 sm:$0xff]   ;;  %v8119_v5 = vld [vmem:[#allocation13 + $0x540] ss:$24 sps:$4 sm:$0xff]   ;;  %v11848_v9 = vunpack.i.l.bf16 %v10597_v48 }
 0x4b2   : > { %4655 = vmatmul.mubr.bf16.gmra.mrb[80].mxu0 %v10905_v45  ;;  %v8124_v38 = vld [vmem:[#allocation13 + $0x4ec] ss:$24 sps:$4 sm:$0xff]   ;;  %v8122_v14 = vld [vmem:[#allocation13 + $0x4e8] ss:$24 sps:$4 sm:$0xff]   ;;  %v8130_v34 = vld [vmem:[#allocation13 + $0x51c] ss:$24 sps:$4 sm:$0xff]  }
 0x4b3   : > { %4697 = vmatprep.mubr.bf16.mxu0 %v10907_v55  ;;  %4680 = vmatpush1.bf16.msra.mxu0 %v8089_v33  ;;  %v8127_v54 = vld [vmem:[#allocation13 + $0x574] ss:$24 sps:$4 sm:$0xff]   ;;  %v8125_v29 = vld [vmem:[#allocation13 + $0x570] ss:$24 sps:$4 sm:$0xff]   ;;  %v8133_v39 = vld [vmem:[#allocation13 + $0x5a4] ss:$24 sps:$4 sm:$0xff]   ;;  %v3011_v33 = vsel %vm2170_vm2, %v11848_v9, %v11847_v31 }
 0x4b4   : > { %4895 = vmatpush1.bf16.msra.mxu1 %v8092_v57  ;;  %4681 = vmatprep.subr.bf16.mxu0 %v8097_v27  ;;  %v8128_v26 = vld [vmem:[#allocation13 + $0x518] ss:$24 sps:$4 sm:$0xff]   ;;  %v8136_v11 = vld [vmem:[#allocation13 + $0x54c] ss:$24 sps:$4 sm:$0xff]   ;;  %v8134_v46 = vld [vmem:[#allocation13 + $0x548] ss:$24 sps:$4 sm:$0xff]   ;;  %v11849_v57 = vunpack.i.h.bf16 %v10625_v2  ;;  %v11850_v27 = vunpack.i.h.bf16 %v10597_v48 }
 0x4b5   : > { %4896 = vmatprep.subr.bf16.mxu1 %v8100_v7  ;;  %v8131_v24 = vld [vmem:[#allocation13 + $0x5a0] ss:$24 sps:$4 sm:$0xff]   ;;  %v8139_v19 = vld [vmem:[#allocation13 + $0x5d4] ss:$24 sps:$4 sm:$0xff]  }
 0x4b6   : > { %4874 = vmatmul.mubr.bf16.gmra.mrb[80].mxu1 %v10905_v45  ;;  %v8142_v47 = vld [vmem:[#allocation13 + $0x57c] ss:$24 sps:$4 sm:$0xff]   ;;  %v3012_v7 = vsel %vm2170_vm2, %v11850_v27, %v11849_v57  ;;  %v8143_v2 = vld [vmem:[#allocation13 + $0x600] ss:$24 sps:$4 sm:$0xff]   ;;  %v11863_v57 = vunpack.i.l.bf16 %v10663_v32 }
 0x4b7   : > { %4682 = vmatpush1.bf16.msra.mxu0 %v8095_v3  ;;  %4916 = vmatprep.mubr.bf16.mxu1 %v10907_v55  ;;  %v8137_v3 = vld [vmem:[#allocation13 + $0x5d0] ss:$24 sps:$4 sm:$0xff]  }
 0x4b8   : > { %4897 = vmatpush1.bf16.msra.mxu1 %v8098_v56  ;;  %4683 = vmatprep.subr.bf16.mxu0 %v8103_v18  ;;  %v8140_v56 = vld [vmem:[#allocation13 + $0x578] ss:$24 sps:$4 sm:$0xff]   ;;  %v8145_v18 = vld [vmem:[#allocation13 + $0x604] ss:$24 sps:$4 sm:$0xff]   ;;  %v8146_v48 = vld [vmem:[#allocation13 + $0x5a8] ss:$24 sps:$4 sm:$0xff]   ;;  %v3015_v27 = vsel %vm2170_vm2, %v11863_v57, %v7802_v40 }
 0x4b9   : > { %4898 = vmatprep.subr.bf16.mxu1 %v8106_v22  ;;  %v8148_v22 = vld [vmem:[#allocation13 + $0x5ac] ss:$24 sps:$4 sm:$0xff]   ;;  %v8158_v31 = vld [vmem:[#allocation13 + $0x608] ss:$24 sps:$4 sm:$0xff]   ;;  %v8164_v40 = vld [vmem:[#allocation13 + $0x638] ss:$24 sps:$4 sm:$0xff]  }
 0x4ba   : > { %v8206_v57 = vld [vmem:[#allocation13 + $0x788] ss:$24 sps:$4 sm:$0xff]  }
 0x4bb   : > { %4684 = vmatpush1.bf16.msra.mxu0 %v8101_v21  ;;  %v11851_v21 = vld [vmem:[#allocation41_spill] sm:$0xff] }
 0x4bc   : > { %4899 = vmatpush1.bf16.msra.mxu1 %v8104_v61  ;;  %4685 = vmatprep.subr.bf16.mxu0 %v8109_v58  ;;  %v11852_v61 = vmax.f32 %v11851_v21, 0.0 }
 0x4bd   : > { %4900 = vmatprep.subr.bf16.mxu1 %v8112_v25  ;;  %v11853_v25 = vld [vmem:[#allocation44_spill] sm:$0xff] }
 0x4be   : > { %v3064_v58 = vmax.f32 %v11852_v61, %v3011_v33  ;;  %v8163_v33 = vld [vmem:[#allocation13 + $0x694] ss:$24 sps:$4 sm:$0xff]  }
 0x4bf   : > { %4686 = vmatpush1.bf16.msra.mxu0 %v8107_v16  ;;  %v11854_v16 = vmax.f32 %v11853_v25, 0.0  ;;  %v8167_v25 = vld [vmem:[#allocation13 + $0x6c0] ss:$24 sps:$4 sm:$0xff]  }
 0x4c0   : > { %4901 = vmatpush1.bf16.msra.mxu1 %v8110_v13  ;;  %4687 = vmatprep.subr.bf16.mxu0 %v8115_v43  ;;  %v8151_v43 = vld [vmem:[#allocation13 + $0x634] ss:$24 sps:$4 sm:$0xff]  }
 0x4c1   : > { %4902 = vmatprep.subr.bf16.mxu1 %v8118_v60  ;;  %v3070_v13 = vmax.f32 %v11854_v16, %v3012_v7  ;;  %v11864_v7 = vunpack.i.h.bf16 %v10663_v32  ;;  %v8170_v16 = vld [vmem:[#allocation13 + $0x668] ss:$24 sps:$4 sm:$0xff]  }
 0x4c3   : > { %4688 = vmatpush1.bf16.msra.mxu0 %v8113_v6  ;;  %v10931_v60 = vpack.c.bf16 %v3070_v13, %v3064_v58  ;;  %v8154_v6 = vld [vmem:[#allocation13 + $0x5dc] ss:$24 sps:$4 sm:$0xff]   ;;  %v8172_v58 = vld [vmem:[#allocation13 + $0x66c] ss:$24 sps:$4 sm:$0xff]  }
 0x4c4   : > { %4903 = vmatpush1.bf16.msra.mxu1 %v8116_v62  ;;  %4689 = vmatprep.subr.bf16.mxu0 %v8121_v63  ;;  %v11855_v62 = vunpack.i.l.bf16 %v10661_v4  ;;  %v11856_v63 = vunpack.i.l.bf16 %v10627_v44 }
 0x4c5   : > { %4904 = vmatprep.subr.bf16.mxu1 %v8124_v38 }
 0x4c6   : > { %v3013_v38 = vsel %vm2170_vm2, %v11856_v63, %v11855_v62  ;;  %v8181_v62 = vld [vmem:[#allocation13 + $0x724] ss:$24 sps:$4 sm:$0xff]  }
 0x4c7   : > { %4690 = vmatpush1.bf16.msra.mxu0 %v8119_v5  ;;  %v11857_v5 = vunpack.i.h.bf16 %v10661_v4  ;;  %v8184_v63 = vld [vmem:[#allocation13 + $0x6cc] ss:$24 sps:$4 sm:$0xff]  }
 0x4c8   : > { %4905 = vmatpush1.bf16.msra.mxu1 %v8122_v14  ;;  %4691 = vmatprep.subr.bf16.mxu0 %v8127_v54  ;;  %v11858_v14 = vunpack.i.h.bf16 %v10627_v44 }
 0x4c9   : > { %4906 = vmatprep.subr.bf16.mxu1 %v8130_v34  ;;  %v8149_v34 = vld [vmem:[#allocation13 + $0x630] ss:$24 sps:$4 sm:$0xff]  }
 0x4ca   : > { %v3014_v54 = vsel %vm2170_vm2, %v11858_v14, %v11857_v5  ;;  %v8182_v5 = vld [vmem:[#allocation13 + $0x6c8] ss:$24 sps:$4 sm:$0xff]   ;;  %v8187_v14 = vld [vmem:[#allocation13 + $0x754] ss:$24 sps:$4 sm:$0xff]  }
 0x4cb   : > { %4692 = vmatpush1.bf16.msra.mxu0 %v8125_v29  ;;  %v8152_v29 = vld [vmem:[#allocation13 + $0x5d8] ss:$24 sps:$4 sm:$0xff]  }
 0x4cc   : > { %4907 = vmatpush1.bf16.msra.mxu1 %v8128_v26  ;;  %4693 = vmatprep.subr.bf16.mxu0 %v8133_v39  ;;  %v8157_v26 = vld [vmem:[#allocation13 + $0x664] ss:$24 sps:$4 sm:$0xff]  }
 0x4cd   : > { %4908 = vmatprep.subr.bf16.mxu1 %v8136_v11  ;;  %v8160_v39 = vld [vmem:[#allocation13 + $0x60c] ss:$24 sps:$4 sm:$0xff]   ;;  %v11859_v11 = vld [vmem:[#allocation46_spill] sm:$0xff] }
 0x4cf   : > { %4694 = vmatpush1.bf16.msra.mxu0 %v8131_v24  ;;  %v11860_v24 = vmax.f32 %v11859_v11, 0.0  ;;  %v8191_v11 = vld [vmem:[#allocation13 + $0x780] ss:$24 sps:$4 sm:$0xff]  }
 0x4d0   : > { %4909 = vmatpush1.bf16.msra.mxu1 %v8134_v46  ;;  %4695 = vmatprep.subr.bf16.mxu0 %v8139_v19  ;;  %v11861_v46 = vld [vmem:[#allocation47_spill] sm:$0xff] }
 0x4d1   : > { %4910 = vmatprep.subr.bf16.mxu1 %v8142_v47  ;;  %v3076_v4 = vmax.f32 %v11860_v24, %v3013_v38  ;;  %v11862_v44 = vmax.f32 %v11861_v46, 0.0  ;;  %v8155_v47 = vld [vmem:[#allocation13 + $0x660] ss:$24 sps:$4 sm:$0xff]   ;;  %v8202_v46 = vld [vmem:[#allocation13 + $0x75c] ss:$24 sps:$4 sm:$0xff]  }
 0x4d2   : > { %v8179_v38 = vld [vmem:[#allocation13 + $0x720] ss:$24 sps:$4 sm:$0xff]  }
 0x4d3   : > { %4696 = vmatpush1.bf16.msra.mxu0 %v8137_v3  ;;  %v3082_v19 = vmax.f32 %v11862_v44, %v3014_v54  ;;  %v3016_v3 = vsel %vm2170_vm2, %v11864_v7, %v7803_v51  ;;  %v11868_v51 = vmax.f32 %v11867_v35, 0.0  ;;  %v8190_v54 = vld [vmem:[#allocation13 + $0x6fc] ss:$24 sps:$4 sm:$0xff]   ;;  %v8194_v24 = vld [vmem:[#allocation13 + $0x728] ss:$24 sps:$4 sm:$0xff]  }
 0x4d4   : > { %4911 = vmatpush1.bf16.msra.mxu1 %v8140_v56  ;;  %4738 = vmatprep.subr.bf16.mxu0 %v8145_v18  ;;  %v8166_v56 = vld [vmem:[#allocation13 + $0x63c] ss:$24 sps:$4 sm:$0xff]   ;;  %v8161_v18 = vld [vmem:[#allocation13 + $0x690] ss:$24 sps:$4 sm:$0xff]  }
 0x4d5   : > { %4912 = vmatprep.subr.bf16.mxu1 %v8148_v22  ;;  %v10951_v9 = vpack.c.bf16 %v3082_v19, %v3076_v4  ;;  %v11865_v22 = vld [vmem:[#allocation49_spill] sm:$0xff]  ;;  %v3094_v61 = vmax.f32 %v11868_v51, %v3016_v3  ;;  %v8214_v7 = vld [vmem:[#allocation13 + $0x7bc] ss:$24 sps:$4 sm:$0xff]  }
 0x4d6   : > { %4698 = vmatmul.mubr.bf16.vlgmr.msra.gmra.mrb[68].mxu0 %v10613_v20  ;;  %v11866_v32 = vmax.f32 %v11865_v22, 0.0  ;;  %v8199_v4 = vld [vmem:[#allocation13 + $0x7b4] ss:$24 sps:$4 sm:$0xff]   ;;  %v8197_v44 = vld [vmem:[#allocation13 + $0x7b0] ss:$24 sps:$4 sm:$0xff]  }
 0x4d7   : > { %4707 = vmatprep.mubr.bf16.mxu0 %v10931_v60  ;;  %4739 = vmatpush1.bf16.msra.mxu0 %v8143_v2  ;;  %v8175_v2 = vld [vmem:[#allocation13 + $0x6f4] ss:$24 sps:$4 sm:$0xff]   ;;  %v8200_v19 = vld [vmem:[#allocation13 + $0x758] ss:$24 sps:$4 sm:$0xff]   ;;  %v8218_v22 = vld [vmem:[#allocation13 + $0x7e8] ss:$24 sps:$4 sm:$0xff]  }
 0x4d8   : > { %4913 = vmatpush1.bf16.msra.mxu1 %v8146_v48  ;;  %4740 = vmatprep.subr.bf16.mxu0 %v8151_v43  ;;  %v3088_v21 = vmax.f32 %v11866_v32, %v3015_v27  ;;  %v8178_v48 = vld [vmem:[#allocation13 + $0x69c] ss:$24 sps:$4 sm:$0xff]   ;;  %v8173_v43 = vld [vmem:[#allocation13 + $0x6f0] ss:$24 sps:$4 sm:$0xff]  }
 0x4d9   : > { %4914 = vmatprep.subr.bf16.mxu1 %v8154_v6  ;;  %v8176_v6 = vld [vmem:[#allocation13 + $0x698] ss:$24 sps:$4 sm:$0xff]   ;;  %v8211_v27 = vld [vmem:[#allocation13 + $0x814] ss:$24 sps:$4 sm:$0xff]  }
 0x4da   : > { %v10973_v13 = vpack.c.bf16 %v3094_v61, %v3088_v21  ;;  %v8209_v3 = vld [vmem:[#allocation13 + $0x810] ss:$24 sps:$4 sm:$0xff]   ;;  %v8223_v32 = vld [vmem:[#allocation13 + $0x874] ss:$24 sps:$4 sm:$0xff]   ;;  %v8229_v61 = vld [vmem:[#allocation13 + $0x8a4] ss:$24 sps:$4 sm:$0xff]  }
 0x4db   : > { %4741 = vmatpush1.bf16.msra.mxu0 %v8149_v34  ;;  %v8185_v34 = vld [vmem:[#allocation13 + $0x750] ss:$24 sps:$4 sm:$0xff]   ;;  %v8226_v21 = vld [vmem:[#allocation13 + $0x81c] ss:$24 sps:$4 sm:$0xff]  }
 0x4dc   : > { %4915 = vmatpush1.bf16.msra.mxu1 %v8152_v29  ;;  %4742 = vmatprep.subr.bf16.mxu0 %v8157_v26  ;;  %v8188_v29 = vld [vmem:[#allocation13 + $0x6f8] ss:$24 sps:$4 sm:$0xff]   ;;  %v8193_v26 = vld [vmem:[#allocation13 + $0x784] ss:$24 sps:$4 sm:$0xff]  }
 0x4dd   : > { %4957 = vmatprep.subr.bf16.mxu1 %v8160_v39  ;;  %v8196_v39 = vld [vmem:[#allocation13 + $0x72c] ss:$24 sps:$4 sm:$0xff]   ;;  %v8221_v35 = vld [vmem:[#allocation13 + $0x870] ss:$24 sps:$4 sm:$0xff]  }
 0x4de   : > { %4708 = vmatmul.mubr.bf16.gmra.mrb[72].mxu0 %v10646_v28  ;;  %v8224_v51 = vld [vmem:[#allocation13 + $0x818] ss:$24 sps:$4 sm:$0xff]  }
 0x4df   : > { %4917 = vmatmul.mubr.bf16.vlgmr.msra.gmra.mrb[68].mxu1 %v10613_v20  ;;  %4717 = vmatprep.mubr.bf16.mxu0 %v10951_v9 }
 0x4e0   : > { %4743 = vmatpush1.bf16.msra.mxu0 %v8155_v47  ;;  %4926 = vmatprep.mubr.bf16.mxu1 %v10931_v60  ;;  %v8205_v47 = vld [vmem:[#allocation13 + $0x7e4] ss:$24 sps:$4 sm:$0xff]  }
 0x4e1   : > { %4958 = vmatpush1.bf16.msra.mxu1 %v8158_v31  ;;  %4744 = vmatprep.subr.bf16.mxu0 %v8163_v33  ;;  %v8208_v31 = vld [vmem:[#allocation13 + $0x78c] ss:$24 sps:$4 sm:$0xff]   ;;  %v8203_v33 = vld [vmem:[#allocation13 + $0x7e0] ss:$24 sps:$4 sm:$0xff]  }
 0x4e2   : > { %4959 = vmatprep.subr.bf16.mxu1 %v8166_v56  ;;  %v8212_v56 = vld [vmem:[#allocation13 + $0x7b8] ss:$24 sps:$4 sm:$0xff]  }
 0x4e4   : > { %4745 = vmatpush1.bf16.msra.mxu0 %v8161_v18  ;;  %v8217_v18 = vld [vmem:[#allocation13 + $0x844] ss:$24 sps:$4 sm:$0xff]  }
 0x4e5   : > { %4960 = vmatpush1.bf16.msra.mxu1 %v8164_v40  ;;  %4746 = vmatprep.subr.bf16.mxu0 %v8169_v59  ;;  %v8220_v40 = vld [vmem:[#allocation13 + $0x7ec] ss:$24 sps:$4 sm:$0xff]   ;;  %v8215_v59 = vld [vmem:[#allocation13 + $0x840] ss:$24 sps:$4 sm:$0xff]  }
 0x4e6   : > { %4718 = vmatmul.mubr.bf16.gmra.mrb[76].mxu0 %v10679_v50  ;;  %4961 = vmatprep.subr.bf16.mxu1 %v8172_v58  ;;  %v8232_v58 = vld [vmem:[#allocation13 + $0x84c] ss:$24 sps:$4 sm:$0xff]  }
 0x4e7   : > { %4927 = vmatmul.mubr.bf16.gmra.mrb[72].mxu1 %v10646_v28  ;;  %4727 = vmatprep.mubr.bf16.mxu0 %v10973_v13 }
 0x4e8   : > { %4747 = vmatpush1.bf16.msra.mxu0 %v8167_v25  ;;  %4936 = vmatprep.mubr.bf16.mxu1 %v10951_v9  ;;  %v8227_v25 = vld [vmem:[#allocation13 + $0x8a0] ss:$24 sps:$4 sm:$0xff]  }
 0x4e9   : > { %4962 = vmatpush1.bf16.msra.mxu1 %v8170_v16  ;;  %4748 = vmatprep.subr.bf16.mxu0 %v8175_v2  ;;  %v8230_v16 = vld [vmem:[#allocation13 + $0x848] ss:$24 sps:$4 sm:$0xff]   ;;  %v8235_v2 = vld [vmem:[#allocation13 + $0x8d4] ss:$24 sps:$4 sm:$0xff]  }
 0x4ea   : > { %4963 = vmatprep.subr.bf16.mxu1 %v8178_v48  ;;  %v8238_v48 = vld [vmem:[#allocation13 + $0x87c] ss:$24 sps:$4 sm:$0xff]  }
 0x4ec   : > { %4749 = vmatpush1.bf16.msra.mxu0 %v8173_v43  ;;  %v8233_v43 = vld [vmem:[#allocation13 + $0x8d0] ss:$24 sps:$4 sm:$0xff]  }
 0x4ed   : > { %4964 = vmatpush1.bf16.msra.mxu1 %v8176_v6  ;;  %4750 = vmatprep.subr.bf16.mxu0 %v8181_v62  ;;  %v8236_v6 = vld [vmem:[#allocation13 + $0x878] ss:$24 sps:$4 sm:$0xff]   ;;  %v8244_v62 = vld [vmem:[#allocation13 + $0x14] ss:$24 sps:$4 sm:$0xff]  }
 0x4ee   : > { %4728 = vmatmul.mubr.bf16.gmra.mrb[80].mxu0 %v10720_v0  ;;  %4965 = vmatprep.subr.bf16.mxu1 %v8184_v63  ;;  %v8241_v63 = vld [vmem:[#allocation13 + $0x8ac] ss:$24 sps:$4 sm:$0xff]  }
 0x4ef   : > { %4937 = vmatmul.mubr.bf16.gmra.mrb[76].mxu1 %v10679_v50  ;;  %4770 = vmatprep.mubr.bf16.mxu0 %v10809_v36 }
 0x4f0   : > { %4751 = vmatpush1.bf16.msra.mxu0 %v8179_v38  ;;  %4946 = vmatprep.mubr.bf16.mxu1 %v10973_v13  ;;  %v8242_v38 = vld [vmem:[#allocation13 + $0x10] ss:$24 sps:$4 sm:$0xff]  }
 0x4f1   : > { %4966 = vmatpush1.bf16.msra.mxu1 %v8182_v5  ;;  %4752 = vmatprep.subr.bf16.mxu0 %v8187_v14  ;;  %v8239_v5 = vld [vmem:[#allocation13 + $0x8a8] ss:$24 sps:$4 sm:$0xff]   ;;  %v8250_v14 = vld [vmem:[#allocation13 + $0x44] ss:$24 sps:$4 sm:$0xff]  }
 0x4f2   : > { %4967 = vmatprep.subr.bf16.mxu1 %v8190_v54  ;;  %v8247_v54 = vld [vmem:[#allocation13 + $0x8dc] ss:$24 sps:$4 sm:$0xff]  }
 0x4f4   : > { %4753 = vmatpush1.bf16.msra.mxu0 %v8185_v34  ;;  %v8248_v34 = vld [vmem:[#allocation13 + $0x40] ss:$24 sps:$4 sm:$0xff]  }
 0x4f5   : > { %4968 = vmatpush1.bf16.msra.mxu1 %v8188_v29  ;;  %4754 = vmatprep.subr.bf16.mxu0 %v8193_v26  ;;  %v8245_v29 = vld [vmem:[#allocation13 + $0x8d8] ss:$24 sps:$4 sm:$0xff]   ;;  %v8253_v26 = vld [vmem:[#allocation13 + $0x74] ss:$24 sps:$4 sm:$0xff]  }
 0x4f6   : > { %4969 = vmatprep.subr.bf16.mxu1 %v8196_v39  ;;  %v8251_v39 = vld [vmem:[#allocation13 + $0x70] ss:$24 sps:$4 sm:$0xff]  }
 0x4f7   : > { %4947 = vmatmul.mubr.bf16.gmra.mrb[80].mxu1 %v10720_v0 }
 0x4f8   : > { %4755 = vmatpush1.bf16.msra.mxu0 %v8191_v11  ;;  %4989 = vmatprep.mubr.bf16.mxu1 %v10809_v36  ;;  %v8256_v11 = vld [vmem:[#allocation13 + $0xa4] ss:$24 sps:$4 sm:$0xff]  }
 0x4f9   : > { %4970 = vmatpush1.bf16.msra.mxu1 %v8194_v24  ;;  %4756 = vmatprep.subr.bf16.mxu0 %v8199_v4  ;;  %v8254_v24 = vld [vmem:[#allocation13 + $0xa0] ss:$24 sps:$4 sm:$0xff]   ;;  %v8259_v4 = vld [vmem:[#allocation13 + $0xd4] ss:$24 sps:$4 sm:$0xff]  }
 0x4fa   : > { %4971 = vmatprep.subr.bf16.mxu1 %v8202_v46  ;;  %v8257_v46 = vld [vmem:[#allocation13 + $0xd0] ss:$24 sps:$4 sm:$0xff]  }
 0x4fc   : > { %4757 = vmatpush1.bf16.msra.mxu0 %v8197_v44  ;;  %v8262_v44 = vld [vmem:[#allocation13 + $0x104] ss:$24 sps:$4 sm:$0xff]  }
 0x4fd   : > { %4972 = vmatpush1.bf16.msra.mxu1 %v8200_v19  ;;  %4758 = vmatprep.subr.bf16.mxu0 %v8205_v47  ;;  %v8260_v47 = vld [vmem:[#allocation13 + $0x100] ss:$24 sps:$4 sm:$0xff]  }
 0x4fe   : > { %4973 = vmatprep.subr.bf16.mxu1 %v8208_v31 }
 0x500   : > { %4759 = vmatpush1.bf16.msra.mxu0 %v8203_v33 }
 0x501   : > { %4974 = vmatpush1.bf16.msra.mxu1 %v8206_v57  ;;  %4760 = vmatprep.subr.bf16.mxu0 %v8211_v27  ;;  %v8265_v27 = vld [vmem:[#allocation13 + $0x134] ss:$24 sps:$4 sm:$0xff]  }
 0x502   : > { %4975 = vmatprep.subr.bf16.mxu1 %v8214_v7 }
 0x504   : > { %4761 = vmatpush1.bf16.msra.mxu0 %v8209_v3 }
 0x505   : > { %4976 = vmatpush1.bf16.msra.mxu1 %v8212_v56  ;;  %4762 = vmatprep.subr.bf16.mxu0 %v8217_v18  ;;  %v8263_v56 = vld [vmem:[#allocation13 + $0x130] ss:$24 sps:$4 sm:$0xff]   ;;  %v10995_v18 = vld [vmem:[#allocation11] ss:$0 sm:$0xff] }
 0x506   : > { %4977 = vmatprep.subr.bf16.mxu1 %v8220_v40  ;;  %v8268_v40 = vld [vmem:[#allocation13 + $0x164] ss:$24 sps:$4 sm:$0xff]  }
 0x508   : > { %4763 = vmatpush1.bf16.msra.mxu0 %v8215_v59 }
 0x509   : > { %4978 = vmatpush1.bf16.msra.mxu1 %v8218_v22  ;;  %4764 = vmatprep.subr.bf16.mxu0 %v8223_v32 }
 0x50a   : > { %4979 = vmatprep.subr.bf16.mxu1 %v8226_v21  ;;  %v8266_v21 = vld [vmem:[#allocation13 + $0x160] ss:$24 sps:$4 sm:$0xff]  }
 0x50c   : > { %4765 = vmatpush1.bf16.msra.mxu0 %v8221_v35 }
 0x50d   : > { %4980 = vmatpush1.bf16.msra.mxu1 %v8224_v51  ;;  %4766 = vmatprep.subr.bf16.mxu0 %v8229_v61 }
 0x50e   : > { %4981 = vmatprep.subr.bf16.mxu1 %v8232_v58 }
 0x510   : > { %4767 = vmatpush1.bf16.msra.mxu0 %v8227_v25 }
 0x511   : > { %4982 = vmatpush1.bf16.msra.mxu1 %v8230_v16  ;;  %4768 = vmatprep.subr.bf16.mxu0 %v8235_v2 }
 0x512   : > { %4983 = vmatprep.subr.bf16.mxu1 %v8238_v48  ;;  %v8271_v48 = vld [vmem:[#allocation13 + $0x194] ss:$24 sps:$4 sm:$0xff]  }
 0x514   : > { %4769 = vmatpush1.bf16.msra.mxu0 %v8233_v43 }
 0x515   : > { %4984 = vmatpush1.bf16.msra.mxu1 %v8236_v6  ;;  %5030 = vmatprep.subr.bf16.mxu0 %v8244_v62 }
 0x516   : > { %4985 = vmatprep.subr.bf16.mxu1 %v8241_v63 }
 0x517   : > { %4771 = vmatmul.mubr.bf16.vlgmr.msra.gmra.mrb[68].mxu0 %v10744_v42 }
 0x518   : > { %4780 = vmatprep.mubr.bf16.mxu0 %v10811_v12  ;;  %5031 = vmatpush1.bf16.msra.mxu0 %v8242_v38  ;;  %v8269_v38 = vld [vmem:[#allocation13 + $0x190] ss:$24 sps:$4 sm:$0xff]  }
 0x519   : > { %4986 = vmatpush1.bf16.msra.mxu1 %v8239_v5  ;;  %5032 = vmatprep.subr.bf16.mxu0 %v8250_v14 }
 0x51a   : > { %4987 = vmatprep.subr.bf16.mxu1 %v8247_v54 }
 0x51c   : > { %5033 = vmatpush1.bf16.msra.mxu0 %v8248_v34 }
 0x51d   : > { %4988 = vmatpush1.bf16.msra.mxu1 %v8245_v29  ;;  %5034 = vmatprep.subr.bf16.mxu0 %v8253_v26  ;;  %v8274_v29 = vld [vmem:[#allocation13 + $0x1c4] ss:$24 sps:$4 sm:$0xff]  }
 0x51f   : > { %4781 = vmatmul.mubr.bf16.gmra.mrb[72].mxu0 %v10825_v52 }
 0x520   : > { %4990 = vmatmul.mubr.bf16.vlgmr.msra.gmra.mrb[68].mxu1 %v10744_v42  ;;  %4790 = vmatprep.mubr.bf16.mxu0 %v10831_v1 }
 0x521   : > { %4999 = vmatprep.mubr.bf16.mxu1 %v10811_v12  ;;  %5035 = vmatpush1.bf16.msra.mxu0 %v8251_v39 }
 0x522   : > { %5036 = vmatprep.subr.bf16.mxu0 %v8256_v11 }
 0x525   : > { %5037 = vmatpush1.bf16.msra.mxu0 %v8254_v24  ;;  %v8272_v24 = vld [vmem:[#allocation13 + $0x1c0] ss:$24 sps:$4 sm:$0xff]  }
 0x526   : > { %5038 = vmatprep.subr.bf16.mxu0 %v8259_v4 }
 0x527   : > { %4791 = vmatmul.mubr.bf16.gmra.mrb[76].mxu0 %v10833_v15  ;;  %v6939_v19 = vpop.f32.mrb[52].mxu0 }
 0x528   : > { %5000 = vmatmul.mubr.bf16.gmra.mrb[72].mxu1 %v10825_v52  ;;  %4800 = vmatprep.mubr.bf16.mxu0 %v10850_v30  ;;  %v6940_v31 = vpop.f32.mrb[53].mxu0 }
 0x529   : > { %5009 = vmatprep.mubr.bf16.mxu1 %v10831_v1  ;;  %5039 = vmatpush1.bf16.msra.mxu0 %v8257_v46  ;;  %v6941_v33 = vadd.f32 %v6940_v31, %v6939_v19  ;;  %v6942_v57 = vpop.f32.mrb[54].mxu0  ;;  %v8277_v31 = vld [vmem:[#allocation13 + $0x1f4] ss:$24 sps:$4 sm:$0xff]  }
 0x52a   : > { %5040 = vmatprep.subr.bf16.mxu0 %v8262_v44  ;;  %v6943_v7 = vpop.f32.mrb[55].mxu0 }
 0x52b   : > { %v6944_v3 = vadd.f32 %v6943_v7, %v6942_v57  ;;  %v2416_v32 = vadd.f32 %v6941_v33, %v10995_v18  ;;  %v8275_v7 = vld [vmem:[#allocation13 + $0x1f0] ss:$24 sps:$4 sm:$0xff]  }
 0x52d   : > { %5041 = vmatpush1.bf16.msra.mxu0 %v8260_v47  ;;  %v2419_v2 = vadd.f32 %v6944_v3, %v10995_v18  ;;  %v8280_v3 = vld [vmem:[#allocation13 + $0x224] ss:$24 sps:$4 sm:$0xff]  }
 0x52e   : > { %5042 = vmatprep.subr.bf16.mxu0 %v8265_v27 }
 0x52f   : > { %4801 = vmatmul.mubr.bf16.gmra.mrb[80].mxu0 %v10854_v23 }
 0x530   : > { %5010 = vmatmul.mubr.bf16.gmra.mrb[76].mxu1 %v10833_v15  ;;  %5062 = vmatprep.mubr.bf16.mxu0 %v10539_v49  ;;  %v7171_v22 = vpop.f32.mrb[60].mxu1 }
 0x531   : > { %v6945_v59 = vpop.f32.mrb[56].mxu0  ;;  %5019 = vmatprep.mubr.bf16.mxu1 %v10850_v30  ;;  %5043 = vmatpush1.bf16.msra.mxu0 %v8263_v56  ;;  %v2480_v51 = vpop.f32.mrb[61].mxu1 }
 0x532   : > { %v6946_v35 = vpop.f32.mrb[57].mxu0  ;;  %5044 = vmatprep.subr.bf16.mxu0 %v8268_v40  ;;  %v2481_v58 = vadd.f32 %v2480_v51, %v2416_v32  ;;  %v7172_v16 = vpop.f32.mrb[62].mxu1 }
 0x533   : > { %v6947_v61 = vadd.f32 %v6946_v35, %v6945_v59  ;;  %v6948_v25 = vpop.f32.mrb[58].mxu0  ;;  %v2483_v49 = vpop.f32.mrb[63].mxu1 }
 0x534   : > { %v6949_v43 = vpop.f32.mrb[59].mxu0  ;;  %v2484_v63 = vadd.f32 %v2483_v49, %v2419_v2  ;;  %v2511_v14 = vmax.f32 %v2481_v58, 0.0 }
 0x535   : > { %v2424_v6 = vadd.f32 %v6947_v61, %v10995_v18  ;;  %v6950_v62 = vadd.f32 %v6949_v43, %v6948_v25  ;;  %5045 = vmatpush1.bf16.msra.mxu0 %v8266_v21 }
 0x536   : > { %v2512_v34 = vmax.f32 %v2484_v63, 0.0  ;;  %5046 = vmatprep.subr.bf16.mxu0 %v8271_v48 }
 0x537   : > { %v2489_v5 = vadd.f32 %v7171_v22, %v2424_v6  ;;  %v2427_v54 = vadd.f32 %v6950_v62, %v10995_v18  ;;  %v8278_v22 = vld [vmem:[#allocation13 + $0x220] ss:$24 sps:$4 sm:$0xff]   ;;  %v8281_v62 = vld [vmem:[#allocation13 + $0x250] ss:$24 sps:$4 sm:$0xff]  }
 0x538   : > { %v11005_v39 = vpack.c.bf16 %v2512_v34, %v2511_v14  ;;  %5020 = vmatmul.mubr.bf16.gmra.mrb[80].mxu1 %v10854_v23 }
 0x539   : > { %v2492_v26 = vadd.f32 %v7172_v16, %v2427_v54  ;;  %v6951_v11 = vpop.f32.mrb[60].mxu0  ;;  %5047 = vmatpush1.bf16.msra.mxu0 %v8269_v38  ;;  %v2513_v46 = vmax.f32 %v2489_v5, 0.0  ;;  %v8283_v16 = vld [vmem:[#allocation13 + $0x254] ss:$24 sps:$4 sm:$0xff]   ;;  %v8286_v54 = vld [vmem:[#allocation13 + $0x284] ss:$24 sps:$4 sm:$0xff]  }
 0x53a   : > { %v6952_v4 = vpop.f32.mrb[61].mxu0  ;;  %5048 = vmatprep.subr.bf16.mxu0 %v8274_v29 }
 0x53b   : > { %v2514_v44 = vmax.f32 %v2492_v26, 0.0  ;;  %v6953_v19 = vadd.f32 %v6952_v4, %v6951_v11  ;;  %v6954_v47 = vpop.f32.mrb[62].mxu0  ;;  %v8284_v26 = vld [vmem:[#allocation13 + $0x280] ss:$24 sps:$4 sm:$0xff]   ;;  %v8289_v4 = vld [vmem:[#allocation13 + $0x2b4] ss:$24 sps:$4 sm:$0xff]  }
 0x53c   : > { %v6955_v33 = vpop.f32.mrb[63].mxu0 }
 0x53d   : > { %v11008_v57 = vpack.c.bf16 %v2514_v44, %v2513_v46  ;;  %v6956_v27 = vadd.f32 %v6955_v33, %v6954_v47  ;;  %5049 = vmatpush1.bf16.msra.mxu0 %v8272_v24  ;;  %v2432_v59 = vadd.f32 %v6953_v19, %v10995_v18  ;;  %v8287_v44 = vld [vmem:[#allocation13 + $0x2b0] ss:$24 sps:$4 sm:$0xff]   ;;  %v8292_v19 = vld [vmem:[#allocation13 + $0x2e4] ss:$24 sps:$4 sm:$0xff]   ;;  %v8295_v47 = vld [vmem:[#allocation13 + $0x314] ss:$24 sps:$4 sm:$0xff]  }
 0x53e   : > { %5050 = vmatprep.subr.bf16.mxu0 %v8277_v31  ;;  %v8293_v31 = vld [vmem:[#allocation13 + $0x310] ss:$24 sps:$4 sm:$0xff]   ;;  %v8298_v33 = vld [vmem:[#allocation13 + $0x344] ss:$24 sps:$4 sm:$0xff]  }
 0x53f   : > { %v2435_v25 = vadd.f32 %v6956_v27, %v10995_v18  ;;  %v8296_v27 = vld [vmem:[#allocation13 + $0x340] ss:$24 sps:$4 sm:$0xff]  }
 0x540   : > { %v7175_v40 = vpop.f32.mrb[64].mxu1 }
 0x541   : > { %v6957_v56 = vpop.f32.mrb[64].mxu0  ;;  %5051 = vmatpush1.bf16.msra.mxu0 %v8275_v7  ;;  %v2496_v21 = vpop.f32.mrb[65].mxu1  ;;  %v8389_v7 = vld [vmem:[#allocation16 + $0x40] sm:$0xff]  }
 0x542   : > { %v6958_v32 = vpop.f32.mrb[65].mxu0  ;;  %5052 = vmatprep.subr.bf16.mxu0 %v8280_v3  ;;  %v2497_v51 = vadd.f32 %v2496_v21, %v2432_v59  ;;  %v7176_v58 = vpop.f32.mrb[66].mxu1  ;;  %v8301_v3 = vld [vmem:[#allocation13 + $0x374] ss:$24 sps:$4 sm:$0xff]   ;;  %6975 = vmatprep.subr.bf16.mxu1 %v8389_v7  ;;  %v8341_v7 = vld [vmem:[#allocation13 + $0x610] ss:$24 sps:$4 sm:$0xff]  }
 0x543   : > { %v6959_v35 = vadd.f32 %v6958_v32, %v6957_v56  ;;  %v6960_v61 = vpop.f32.mrb[66].mxu0  ;;  %v2499_v48 = vpop.f32.mrb[67].mxu1  ;;  %v8299_v56 = vld [vmem:[#allocation13 + $0x370] ss:$24 sps:$4 sm:$0xff]   ;;  %v8393_v21 = vld [vmem:[#allocation16 + $0x50] sm:$0xff]  }
 0x544   : > { %v6961_v2 = vpop.f32.mrb[67].mxu0  ;;  %v2500_v6 = vadd.f32 %v2499_v48, %v2435_v25  ;;  %v2515_v38 = vmax.f32 %v2497_v51, 0.0  ;;  %v8390_v59 = vld [vmem:[#allocation16] sm:$0xff]   ;;  %v8392_v32 = vld [vmem:[#allocation16 + $0x8] sm:$0xff]   ;;  %v8396_v25 = vld [vmem:[#allocation16 + $0x18] sm:$0xff]  }
 0x545   : > { %v2440_v43 = vadd.f32 %v6959_v35, %v10995_v18  ;;  %v6962_v49 = vadd.f32 %v6961_v2, %v6960_v61  ;;  %5053 = vmatpush1.bf16.msra.mxu0 %v8278_v22  ;;  %v8302_v22 = vld [vmem:[#allocation13 + $0x3a0] ss:$24 sps:$4 sm:$0xff]   ;;  %6976 = vmatpush3.bf16.msra.mxu1 %v8390_v59  ;;  %v8305_v35 = vld [vmem:[#allocation13 + $0x3d0] ss:$24 sps:$4 sm:$0xff]   ;;  %v8310_v51 = vld [vmem:[#allocation13 + $0x404] ss:$24 sps:$4 sm:$0xff]  }
 0x546   : > { %v2516_v14 = vmax.f32 %v2500_v6, 0.0  ;;  %5054 = vmatprep.subr.bf16.mxu0 %v8283_v16  ;;  %v8313_v61 = vld [vmem:[#allocation13 + $0x434] ss:$24 sps:$4 sm:$0xff]   ;;  %v8311_v16 = vld [vmem:[#allocation13 + $0x430] ss:$24 sps:$4 sm:$0xff]  }
 0x547   : > { %v2505_v63 = vadd.f32 %v7175_v40, %v2440_v43  ;;  %v2443_v5 = vadd.f32 %v6962_v49, %v10995_v18  ;;  %v8290_v18 = vld [vmem:[#allocation13 + $0x2e0] ss:$24 sps:$4 sm:$0xff]   ;;  %v8304_v40 = vld [vmem:[#allocation13 + $0x3a4] ss:$24 sps:$4 sm:$0xff]   ;;  %v8319_v43 = vld [vmem:[#allocation13 + $0x494] ss:$24 sps:$4 sm:$0xff]  }
 0x548   : > { %v11014_v29 = vpack.c.bf16 %v2516_v14, %v2515_v38  ;;  %v8316_v2 = vld [vmem:[#allocation13 + $0x464] ss:$24 sps:$4 sm:$0xff]   ;;  %v8399_v49 = vld [vmem:[#allocation16 + $0x68] sm:$0xff]  }
 0x549   : > { %v2508_v34 = vadd.f32 %v7176_v58, %v2443_v5  ;;  %5055 = vmatpush1.bf16.msra.mxu0 %v8281_v62  ;;  %v2517_v11 = vmax.f32 %v2505_v63, 0.0  ;;  %v8395_v58 = vld [vmem:[#allocation16 + $0x58] sm:$0xff]   ;;  %v8397_v48 = vld [vmem:[#allocation16 + $0x60] sm:$0xff]   ;;  %v8400_v6 = vld [vmem:[#allocation16 + $0x28] sm:$0xff]  }
 0x54a   : > { %5056 = vmatprep.subr.bf16.mxu0 %v8286_v54  ;;  %v8317_v62 = vld [vmem:[#allocation13 + $0x490] ss:$24 sps:$4 sm:$0xff]   ;;  %v8322_v63 = vld [vmem:[#allocation13 + $0x4c4] ss:$24 sps:$4 sm:$0xff]   ;;  %v8349_v59 = vld [vmem:[#allocation13 + $0x674] ss:$24 sps:$4 sm:$0xff]  }
 0x54b   : > { %v2518_v24 = vmax.f32 %v2508_v34, 0.0  ;;  %v8401_v38 = vld [vmem:[#allocation16 + $0x70] sm:$0xff]   ;;  %v8403_v14 = vld [vmem:[#allocation16 + $0x78] sm:$0xff]   ;;  %v8323_v34 = vld [vmem:[#allocation13 + $0x4f0] ss:$24 sps:$4 sm:$0xff]  }
 0x54c   : > { %v8402_v5 = vld [vmem:[#allocation16 + $0x30] sm:$0xff]   ;;  %v8404_v54 = vld [vmem:[#allocation16 + $0x38] sm:$0xff]  }
 0x54d   : > { %v11016_v46 = vpack.c.bf16 %v2518_v24, %v2517_v11  ;;  %5057 = vmatpush1.bf16.msra.mxu0 %v8284_v26  ;;  %v8328_v26 = vld [vmem:[#allocation13 + $0x524] ss:$24 sps:$4 sm:$0xff]   ;;  %v8326_v11 = vld [vmem:[#allocation13 + $0x520] ss:$24 sps:$4 sm:$0xff]   ;;  %v8331_v24 = vld [vmem:[#allocation13 + $0x554] ss:$24 sps:$4 sm:$0xff]  }
 0x54e   : > { %5058 = vmatprep.subr.bf16.mxu0 %v8289_v4  ;;  %v8329_v4 = vld [vmem:[#allocation13 + $0x550] ss:$24 sps:$4 sm:$0xff]  }
 0x551   : > { %5059 = vmatpush1.bf16.msra.mxu0 %v8287_v44  ;;  %v8334_v44 = vld [vmem:[#allocation13 + $0x584] ss:$24 sps:$4 sm:$0xff]  }
 0x552   : > { %5060 = vmatprep.subr.bf16.mxu0 %v8292_v19  ;;  %v8332_v19 = vld [vmem:[#allocation13 + $0x580] ss:$24 sps:$4 sm:$0xff]  }
 0x555   : > { %5061 = vmatpush1.bf16.msra.mxu0 %v8290_v18  ;;  %v8337_v18 = vld [vmem:[#allocation13 + $0x5b4] ss:$24 sps:$4 sm:$0xff]  }
 0x556   : > { %5103 = vmatprep.subr.bf16.mxu0 %v8295_v47  ;;  %v8335_v47 = vld [vmem:[#allocation13 + $0x5b0] ss:$24 sps:$4 sm:$0xff]  }
 0x558   : > { %5063 = vmatmul.mubr.bf16.vlgmr.msra.gmra.mrb[84].mxu0 %v10589_v37  ;;  %v8391_v37 = vld [vmem:[#allocation16 + $0x48] sm:$0xff]  }
 0x559   : > { %5072 = vmatprep.mubr.bf16.mxu0 %v10665_v17  ;;  %5104 = vmatpush1.bf16.msra.mxu0 %v8293_v31  ;;  %v8307_v17 = vld [vmem:[#allocation13 + $0x3d4] ss:$24 sps:$4 sm:$0xff]   ;;  %v8340_v31 = vld [vmem:[#allocation13 + $0x5e4] ss:$24 sps:$4 sm:$0xff]  }
 0x55a   : > { %5105 = vmatprep.subr.bf16.mxu0 %v8298_v33  ;;  %6977 = vmatprep.subr.bf16.mxu1 %v8391_v37  ;;  %v8338_v33 = vld [vmem:[#allocation13 + $0x5e0] ss:$24 sps:$4 sm:$0xff]   ;;  %v8352_v37 = vld [vmem:[#allocation13 + $0x6a4] ss:$24 sps:$4 sm:$0xff]  }
 0x55b   : > { %6978 = vmatpush3.bf16.msra.mxu1 %v8392_v32  ;;  %v8355_v32 = vld [vmem:[#allocation13 + $0x6d4] ss:$24 sps:$4 sm:$0xff]  }
 0x55c   : > { %6979 = vmatprep.subr.bf16.mxu1 %v8393_v21  ;;  %v8356_v21 = vld [vmem:[#allocation13 + $0x700] ss:$24 sps:$4 sm:$0xff]  }
 0x55d   : > { %5106 = vmatpush1.bf16.msra.mxu0 %v8296_v27  ;;  %v8343_v27 = vld [vmem:[#allocation13 + $0x614] ss:$24 sps:$4 sm:$0xff]  }
 0x55e   : > { %5107 = vmatprep.subr.bf16.mxu0 %v8301_v3  ;;  %v8346_v3 = vld [vmem:[#allocation13 + $0x644] ss:$24 sps:$4 sm:$0xff]  }
 0x560   : > { %5073 = vmatmul.mubr.bf16.gmra.mrb[88].mxu0 %v10699_v8  ;;  %v8394_v8 = vld [vmem:[#allocation16 + $0x10] sm:$0xff]  }
 0x561   : > { %5082 = vmatprep.mubr.bf16.mxu0 %v10718_v10  ;;  %5108 = vmatpush1.bf16.msra.mxu0 %v8299_v56  ;;  %v8308_v10 = vld [vmem:[#allocation13 + $0x400] ss:$24 sps:$4 sm:$0xff]   ;;  %v8405_v56 = vld [vmem:[#allocation16 + $0xc0] sm:$0xff]  }
 0x562   : > { %5109 = vmatprep.subr.bf16.mxu0 %v8304_v40  ;;  %6980 = vmatpush3.bf16.msra.mxu1 %v8394_v8  ;;  %v8344_v40 = vld [vmem:[#allocation13 + $0x640] ss:$24 sps:$4 sm:$0xff]   ;;  %v8367_v8 = vld [vmem:[#allocation13 + $0x794] ss:$24 sps:$4 sm:$0xff]  }
 0x563   : > { %6981 = vmatprep.subr.bf16.mxu1 %v8395_v58  ;;  %v8371_v58 = vld [vmem:[#allocation13 + $0x7f0] ss:$24 sps:$4 sm:$0xff]  }
 0x565   : > { %5110 = vmatpush1.bf16.msra.mxu0 %v8302_v22  ;;  %v8347_v22 = vld [vmem:[#allocation13 + $0x670] ss:$24 sps:$4 sm:$0xff]  }
 0x566   : > { %5111 = vmatprep.subr.bf16.mxu0 %v8307_v17  ;;  %6982 = vmatpush3.bf16.msra.mxu1 %v8396_v25  ;;  %v8350_v17 = vld [vmem:[#allocation13 + $0x6a0] ss:$24 sps:$4 sm:$0xff]   ;;  %v8376_v25 = vld [vmem:[#allocation13 + $0x824] ss:$24 sps:$4 sm:$0xff]  }
 0x567   : > { %6983 = vmatprep.subr.bf16.mxu1 %v8397_v48  ;;  %v8380_v48 = vld [vmem:[#allocation13 + $0x880] ss:$24 sps:$4 sm:$0xff]  }
 0x568   : > { %5083 = vmatmul.mubr.bf16.gmra.mrb[92].mxu0 %v10867_v41  ;;  %v8398_v41 = vld [vmem:[#allocation16 + $0x20] sm:$0xff]  }
 0x569   : > { %5092 = vmatprep.mubr.bf16.mxu0 %v10879_v53  ;;  %5112 = vmatpush1.bf16.msra.mxu0 %v8305_v35  ;;  %v8314_v53 = vld [vmem:[#allocation13 + $0x460] ss:$24 sps:$4 sm:$0xff]   ;;  %v8361_v35 = vld [vmem:[#allocation13 + $0x734] ss:$24 sps:$4 sm:$0xff]  }
 0x56a   : > { %5113 = vmatprep.subr.bf16.mxu0 %v8310_v51  ;;  %6984 = vmatpush3.bf16.msra.mxu1 %v8398_v41  ;;  %v8362_v51 = vld [vmem:[#allocation13 + $0x760] ss:$24 sps:$4 sm:$0xff]   ;;  %v8385_v41 = vld [vmem:[#allocation13 + $0x8b4] ss:$24 sps:$4 sm:$0xff]  }
 0x56b   : > { %6985 = vmatprep.subr.bf16.mxu1 %v8399_v49  ;;  %v8386_v49 = vld [vmem:[#allocation13 + $0x8e0] ss:$24 sps:$4 sm:$0xff]  }
 0x56d   : > { %5114 = vmatpush1.bf16.msra.mxu0 %v8308_v10  ;;  %v8368_v10 = vld [vmem:[#allocation13 + $0x7c0] ss:$24 sps:$4 sm:$0xff]  }
 0x56e   : > { %5115 = vmatprep.subr.bf16.mxu0 %v8313_v61  ;;  %6986 = vmatpush3.bf16.msra.mxu1 %v8400_v6  ;;  %v8373_v61 = vld [vmem:[#allocation13 + $0x7f4] ss:$24 sps:$4 sm:$0xff]   ;;  %v11038_v6 = vld [vmem:[#allocation14] sm:$0x3f] }
 0x56f   : > { %6987 = vmatprep.subr.bf16.mxu1 %v8401_v38  ;;  %v11870_v38 = vld [vmem:[#allocation39_spill] sm:$0xff] }
 0x570   : > { %5093 = vmatmul.mubr.bf16.gmra.mrb[96].mxu0 %v10905_v45  ;;  %v8320_v45 = vld [vmem:[#allocation13 + $0x4c0] ss:$24 sps:$4 sm:$0xff]  }
 0x571   : > { %5116 = vmatpush1.bf16.msra.mxu0 %v8311_v16  ;;  %5135 = vmatprep.mubr.bf16.mxu0 %v10907_v55  ;;  %v8325_v55 = vld [vmem:[#allocation13 + $0x4f4] ss:$24 sps:$4 sm:$0xff]  }
 0x572   : > { %5117 = vmatprep.subr.bf16.mxu0 %v8316_v2  ;;  %6988 = vmatpush3.bf16.msra.mxu1 %v8402_v5  ;;  %v8379_v16 = vld [vmem:[#allocation13 + $0x854] ss:$24 sps:$4 sm:$0xff]   ;;  %v8382_v2 = vld [vmem:[#allocation13 + $0x884] ss:$24 sps:$4 sm:$0xff]   ;;  %v11047_v5 = vrot.slane %v11038_v6, %v11870_v38 }
 0x573   : > { %6989 = vmatprep.subr.bf16.mxu1 %v8403_v14 }
 0x575   : > { %5118 = vmatpush1.bf16.msra.mxu0 %v8314_v53  ;;  %v8383_v53 = vld [vmem:[#allocation13 + $0x8b0] ss:$24 sps:$4 sm:$0xff]  }
 0x576   : > { %5119 = vmatprep.subr.bf16.mxu0 %v8319_v43  ;;  %6990 = vmatpush3.bf16.msra.mxu1 %v8404_v54  ;;  %v8388_v43 = vld [vmem:[#allocation13 + $0x8e4] ss:$24 sps:$4 sm:$0xff]  }
 0x577   : > { %7015 = vmatprep.subr.bf16.mxu1 %v8405_v56 }
 0x579   : > { %5120 = vmatpush1.bf16.msra.mxu0 %v8317_v62  ;;  %v11869_v62 = vld [vmem:[#allocation38_spill] sm:$0xff] }
 0x57a   : > { %5121 = vmatprep.subr.bf16.mxu0 %v8322_v63  ;;  %v11042_v63 = vrot.slane %v11038_v6, %v11869_v62 }
 0x57d   : > { %5122 = vmatpush1.bf16.msra.mxu0 %v8320_v45 }
 0x57e   : > { %5123 = vmatprep.subr.bf16.mxu0 %v8325_v55 }
 0x581   : > { %5124 = vmatpush1.bf16.msra.mxu0 %v8323_v34 }
 0x582   : > { %5125 = vmatprep.subr.bf16.mxu0 %v8328_v26 }
 0x585   : > { %5126 = vmatpush1.bf16.msra.mxu0 %v8326_v11  ;;  %v11871_v11 = vld [vmem:[#allocation40_spill] sm:$0xff] }
 0x586   : > { %5127 = vmatprep.subr.bf16.mxu0 %v8331_v24  ;;  %v11063_v24 = vrot.slane %v11038_v6, %v11871_v11 }
 0x589   : > { %5128 = vmatpush1.bf16.msra.mxu0 %v8329_v4  ;;  %v11872_v4 = vld [vmem:[#allocation37_spill] sm:$0xff] }
 0x58a   : > { %5129 = vmatprep.subr.bf16.mxu0 %v8334_v44  ;;  %v11873_v44 = vsub.s32 3, %v11872_v4 }
 0x58d   : > { %5130 = vmatpush1.bf16.msra.mxu0 %v8332_v19  ;;  %v11068_v19 = vrot.slane %v11038_v6, %v11873_v44 }
 0x58e   : > { %5131 = vmatprep.subr.bf16.mxu0 %v8337_v18 }
 0x591   : > { %5132 = vmatpush1.bf16.msra.mxu0 %v8335_v47 }
 0x592   : > { %5133 = vmatprep.subr.bf16.mxu0 %v8340_v31 }
 0x595   : > { %5134 = vmatpush1.bf16.msra.mxu0 %v8338_v33 }
 0x596   : > { %5176 = vmatprep.subr.bf16.mxu0 %v8343_v27 }
 0x598   : > { %5136 = vmatmul.mubr.bf16.vlgmr.msra.gmra.mrb[84].mxu0 %v10613_v20  ;;  %v8353_v20 = vld [vmem:[#allocation13 + $0x6d0] ss:$24 sps:$4 sm:$0xff]  }
 0x599   : > { %5145 = vmatprep.mubr.bf16.mxu0 %v10931_v60  ;;  %5177 = vmatpush1.bf16.msra.mxu0 %v8341_v7  ;;  %v8358_v60 = vld [vmem:[#allocation13 + $0x704] ss:$24 sps:$4 sm:$0xff]  }
 0x59a   : > { %5178 = vmatprep.subr.bf16.mxu0 %v8346_v3 }
 0x59d   : > { %5179 = vmatpush1.bf16.msra.mxu0 %v8344_v40 }
 0x59e   : > { %5180 = vmatprep.subr.bf16.mxu0 %v8349_v59 }
 0x5a0   : > { %5146 = vmatmul.mubr.bf16.gmra.mrb[88].mxu0 %v10646_v28  ;;  %v8359_v28 = vld [vmem:[#allocation13 + $0x730] ss:$24 sps:$4 sm:$0xff]  }
 0x5a1   : > { %5155 = vmatprep.mubr.bf16.mxu0 %v10951_v9  ;;  %5181 = vmatpush1.bf16.msra.mxu0 %v8347_v22  ;;  %v8364_v9 = vld [vmem:[#allocation13 + $0x764] ss:$24 sps:$4 sm:$0xff]  }
 0x5a2   : > { %5182 = vmatprep.subr.bf16.mxu0 %v8352_v37 }
 0x5a5   : > { %5183 = vmatpush1.bf16.msra.mxu0 %v8350_v17 }
 0x5a6   : > { %5184 = vmatprep.subr.bf16.mxu0 %v8355_v32 }
 0x5a8   : > { %5156 = vmatmul.mubr.bf16.gmra.mrb[92].mxu0 %v10679_v50  ;;  %v8365_v50 = vld [vmem:[#allocation13 + $0x790] ss:$24 sps:$4 sm:$0xff]  }
 0x5a9   : > { %5165 = vmatprep.mubr.bf16.mxu0 %v10973_v13  ;;  %5185 = vmatpush1.bf16.msra.mxu0 %v8353_v20  ;;  %v8370_v13 = vld [vmem:[#allocation13 + $0x7c4] ss:$24 sps:$4 sm:$0xff]  }
 0x5aa   : > { %5186 = vmatprep.subr.bf16.mxu0 %v8358_v60 }
 0x5ad   : > { %5187 = vmatpush1.bf16.msra.mxu0 %v8356_v21 }
 0x5ae   : > { %5188 = vmatprep.subr.bf16.mxu0 %v8361_v35 }
 0x5b0   : > { %5166 = vmatmul.mubr.bf16.gmra.mrb[96].mxu0 %v10720_v0  ;;  %v8374_v0 = vld [vmem:[#allocation13 + $0x820] ss:$24 sps:$4 sm:$0xff]  }
 0x5b1   : > { %5189 = vmatpush1.bf16.msra.mxu0 %v8359_v28  ;;  %5208 = vmatprep.mubr.bf16.mxu0 %v10809_v36  ;;  %v8377_v36 = vld [vmem:[#allocation13 + $0x850] ss:$24 sps:$4 sm:$0xff]  }
 0x5b2   : > { %5190 = vmatprep.subr.bf16.mxu0 %v8364_v9 }
 0x5b5   : > { %5191 = vmatpush1.bf16.msra.mxu0 %v8362_v51 }
 0x5b6   : > { %5192 = vmatprep.subr.bf16.mxu0 %v8367_v8 }
 0x5b9   : > { %5193 = vmatpush1.bf16.msra.mxu0 %v8365_v50 }
 0x5ba   : > { %5194 = vmatprep.subr.bf16.mxu0 %v8370_v13 }
 0x5bd   : > { %5195 = vmatpush1.bf16.msra.mxu0 %v8368_v10 }
 0x5be   : > { %5196 = vmatprep.subr.bf16.mxu0 %v8373_v61 }
 0x5c1   : > { %5197 = vmatpush1.bf16.msra.mxu0 %v8371_v58 }
 0x5c2   : > { %5198 = vmatprep.subr.bf16.mxu0 %v8376_v25 }
 0x5c5   : > { %5199 = vmatpush1.bf16.msra.mxu0 %v8374_v0 }
 0x5c6   : > { %5200 = vmatprep.subr.bf16.mxu0 %v8379_v16 }
 0x5c9   : > { %5201 = vmatpush1.bf16.msra.mxu0 %v8377_v36 }
 0x5ca   : > { %5202 = vmatprep.subr.bf16.mxu0 %v8382_v2 }
 0x5cd   : > { %5203 = vmatpush1.bf16.msra.mxu0 %v8380_v48 }
 0x5ce   : > { %5204 = vmatprep.subr.bf16.mxu0 %v8385_v41 }
 0x5d1   : > { %5205 = vmatpush1.bf16.msra.mxu0 %v8383_v53 }
 0x5d2   : > { %5206 = vmatprep.subr.bf16.mxu0 %v8388_v43 }
 0x5d5   : > { %5207 = vmatpush1.bf16.msra.mxu0 %v8386_v49 }
 0x5d8   : > { %5209 = vmatmul.mubr.bf16.vlgmr.msra.gmra.mrb[84].mxu0 %v10744_v42 }
 0x5d9   : > { %5218 = vmatprep.mubr.bf16.mxu0 %v10811_v12 }
 0x5e0   : > { %5219 = vmatmul.mubr.bf16.gmra.mrb[88].mxu0 %v10825_v52 }
 0x5e1   : > { %5228 = vmatprep.mubr.bf16.mxu0 %v10831_v1 }
 0x5e8   : > { %5229 = vmatmul.mubr.bf16.gmra.mrb[92].mxu0 %v10833_v15 }
 0x5e9   : > { %5238 = vmatprep.mubr.bf16.mxu0 %v10850_v30 }
 0x5ea   : > { %v4772_v42 = vpop.f32.mrb[68].mxu0 }
 0x5eb   : > { %v11051_v12 = vadd.f32 %v4772_v42, %v11042_v63  ;;  %v4774_v52 = vpop.f32.mrb[69].mxu0 }
 0x5ec   : > { %v7244_v1 = vadd.f32 %v4774_v52, %v11047_v5  ;;  %v4776_v45 = vpop.f32.mrb[70].mxu0 }
 0x5ed   : > { %v11055_v55 = vadd.f32 %v4776_v45, %v11042_v63  ;;  %v4778_v14 = vpop.f32.mrb[71].mxu0  ;;  %v5249_v15 = vmax.f32 %v11051_v12, 0.0  ;;  %v8406_v45 = vld [vmem:[#allocation16 + $0x80] sm:$0xff]  }
 0x5ee   : > { %v5250_v54 = vmax.f32 %v7244_v1, 0.0  ;;  %v7246_v34 = vadd.f32 %v4778_v14, %v11047_v5 }
 0x5ef   : > { %v5255_v26 = vmax.f32 %v11055_v55, 0.0 }
 0x5f0   : > { %v5256_v30 = vmax.f32 %v7246_v34, 0.0  ;;  %5239 = vmatmul.mubr.bf16.gmra.mrb[96].mxu0 %v10854_v23  ;;  %v5297_v18 = vmax.f32 %v5249_v15, %v5250_v54 }
 0x5f2   : > { %v5303_v47 = vmax.f32 %v5255_v26, %v5256_v30  ;;  %v4782_v31 = vpop.f32.mrb[72].mxu0 }
 0x5f3   : > { %v11075_v33 = vadd.f32 %v4782_v31, %v11042_v63  ;;  %v4991_v23 = vpop.f32.mrb[68].mxu1  ;;  %v4784_v27 = vpop.f32.mrb[73].mxu0 }
 0x5f4   : > { %v5345_v7 = vpack.c.bf16 %v5303_v47, %v5297_v18  ;;  %v7259_v3 = vadd.f32 %v4991_v23, %v11063_v24  ;;  %v7248_v56 = vadd.f32 %v4784_v27, %v11047_v5  ;;  %v4993_v40 = vpop.f32.mrb[69].mxu1  ;;  %v4786_v59 = vpop.f32.mrb[74].mxu0  ;;  %v8407_v18 = vld [vmem:[#allocation16 + $0xc8] sm:$0xff]  }
 0x5f5   : > { %v5261_v22 = vmax.f32 %v11075_v33, 0.0  ;;  %v11081_v37 = vadd.f32 %v4993_v40, %v11068_v19  ;;  %v11084_v17 = vadd.f32 %v4786_v59, %v11042_v63  ;;  %v4995_v32 = vpop.f32.mrb[70].mxu1  ;;  %v4788_v20 = vpop.f32.mrb[75].mxu0  ;;  %v8427_v33 = vld [vmem:[#allocation16 + $0x158] sm:$0xff]  }
 0x5f6   : > { %v5251_v60 = vmax.f32 %v7259_v3, 0.0  ;;  %v5262_v21 = vmax.f32 %v7248_v56, 0.0  ;;  %v7261_v35 = vadd.f32 %v4995_v32, %v11063_v24  ;;  %v7250_v28 = vadd.f32 %v4788_v20, %v11047_v5  ;;  %v4997_v9 = vpop.f32.mrb[71].mxu1 }
 0x5f7   : > { %v5252_v51 = vmax.f32 %v11081_v37, 0.0  ;;  %v5267_v8 = vmax.f32 %v11084_v17, 0.0  ;;  %v11091_v50 = vadd.f32 %v4997_v9, %v11068_v19 }
 0x5f8   : > { %v5298_v13 = vmax.f32 %v5250_v54, %v5251_v60  ;;  %v5257_v10 = vmax.f32 %v7261_v35, 0.0  ;;  %v5268_v61 = vmax.f32 %v7250_v28, 0.0  ;;  %v11100_v0 = vmax.f32 %v5261_v22, %v5262_v21  ;;  %v8408_v35 = vld [vmem:[#allocation16 + $0x88] sm:$0xff]  }
 0x5f9   : > { %v11095_v58 = vmax.f32 %v5251_v60, %v5252_v51  ;;  %v5258_v25 = vmax.f32 %v11091_v50, 0.0 }
 0x5fa   : > { %v5304_v16 = vmax.f32 %v5256_v30, %v5257_v10  ;;  %v11104_v36 = vmax.f32 %v5267_v8, %v5268_v61  ;;  %v4792_v2 = vpop.f32.mrb[76].mxu0 }
 0x5fb   : > { %v11108_v48 = vmax.f32 %v5257_v10, %v5258_v25  ;;  %v11111_v41 = vadd.f32 %v4792_v2, %v11042_v63  ;;  %v5001_v53 = vpop.f32.mrb[72].mxu1  ;;  %v4794_v43 = vpop.f32.mrb[77].mxu0 }
 0x5fc   : > { %v7263_v49 = vadd.f32 %v5001_v53, %v11063_v24  ;;  %v11115_v62 = vadd.f32 %v4794_v43, %v11047_v5  ;;  %v5003_v38 = vpop.f32.mrb[73].mxu1  ;;  %v4796_v42 = vpop.f32.mrb[78].mxu0  ;;  %v5346_v52 = vpack.c.bf16 %v5304_v16, %v5298_v13  ;;  %v5351_v1 = vpack.c.bf16 %v11104_v36, %v11100_v0  ;;  %v8409_v13 = vld [vmem:[#allocation16 + $0xd0] sm:$0xff]  }
 0x5fd   : > { %v5347_v14 = vpack.c.bf16 %v11108_v48, %v11095_v58  ;;  %v5273_v54 = vmax.f32 %v11111_v41, 0.0  ;;  %v11123_v34 = vadd.f32 %v5003_v38, %v11068_v19  ;;  %v11126_v30 = vadd.f32 %v4796_v42, %v11042_v63  ;;  %v5005_v11 = vpop.f32.mrb[74].mxu1  ;;  %v4798_v44 = vpop.f32.mrb[79].mxu0 }
 0x5fe   : > { %v5263_v47 = vmax.f32 %v7263_v49, 0.0  ;;  %v5274_v31 = vmax.f32 %v11115_v62, 0.0  ;;  %v7265_v23 = vadd.f32 %v5005_v11, %v11063_v24  ;;  %v7254_v27 = vadd.f32 %v4798_v44, %v11047_v5  ;;  %v5007_v3 = vpop.f32.mrb[75].mxu1  ;;  %5695 = vmatprep.mubr.bf16.mxu1 %v5346_v52  ;;  %v8410_v52 = vld [vmem:[#allocation16 + $0x90] sm:$0xff]  }
 0x5ff   : > { %v5264_v56 = vmax.f32 %v11123_v34, 0.0  ;;  %v5279_v40 = vmax.f32 %v11126_v30, 0.0  ;;  %v11134_v59 = vadd.f32 %v5007_v3, %v11068_v19  ;;  %5696 = vmatmul.mubr.bf16.vlgmr.msra.gmra.mrb[84].mxu1 %v5345_v7 }
 0x600   : > { %v5310_v32 = vmax.f32 %v5262_v21, %v5263_v47  ;;  %v5269_v20 = vmax.f32 %v7265_v23, 0.0  ;;  %v5280_v60 = vmax.f32 %v7254_v27, 0.0  ;;  %7016 = vmatpush3.bf16.msra.mxu1 %v8406_v45  ;;  %v11143_v10 = vmax.f32 %v5273_v54, %v5274_v31  ;;  %v8411_v23 = vld [vmem:[#allocation16 + $0xd8] sm:$0xff]  }
 0x601   : > { %v11138_v28 = vmax.f32 %v5263_v47, %v5264_v56  ;;  %v5270_v9 = vmax.f32 %v11134_v59, 0.0  ;;  %7017 = vmatprep.subr.bf16.mxu1 %v8407_v18 }
 0x602   : > { %v5316_v0 = vmax.f32 %v5268_v61, %v5269_v20  ;;  %v5327_v7 = vmax.f32 %v5279_v40, %v5280_v60  ;;  %v4802_v21 = vpop.f32.mrb[80].mxu0 }
 0x603   : > { %v11149_v16 = vmax.f32 %v5269_v20, %v5270_v9  ;;  %v11152_v36 = vadd.f32 %v4802_v21, %v11042_v63  ;;  %v5011_v2 = vpop.f32.mrb[76].mxu1  ;;  %v4804_v53 = vpop.f32.mrb[81].mxu0 }
 0x604   : > { %v7267_v43 = vadd.f32 %v5011_v2, %v11063_v24  ;;  %v7256_v49 = vadd.f32 %v4804_v53, %v11047_v5  ;;  %v5013_v62 = vpop.f32.mrb[77].mxu1  ;;  %v4806_v38 = vpop.f32.mrb[82].mxu0  ;;  %v5352_v61 = vpack.c.bf16 %v5316_v0, %v5310_v32  ;;  %v5357_v42 = vpack.c.bf16 %v5327_v7, %v11143_v10  ;;  %7018 = vmatpush3.bf16.msra.mxu1 %v8408_v35  ;;  %v8412_v53 = vld [vmem:[#allocation16 + $0x98] sm:$0xff]  }
 0x605   : > { %v5285_v45 = vmax.f32 %v11152_v36, 0.0  ;;  %v11159_v11 = vadd.f32 %v5013_v62, %v11068_v19  ;;  %v11162_v44 = vadd.f32 %v4806_v38, %v11042_v63  ;;  %v5015_v18 = vpop.f32.mrb[78].mxu1  ;;  %v4808_v47 = vpop.f32.mrb[83].mxu0  ;;  %7019 = vmatprep.subr.bf16.mxu1 %v8409_v13  ;;  %v5353_v27 = vpack.c.bf16 %v11149_v16, %v11138_v28  ;;  %v8436_v36 = vld [vmem:[#allocation16 + $0x138] sm:$0xff]  }
 0x606   : > { %v5275_v3 = vmax.f32 %v7267_v43, 0.0  ;;  %v5286_v32 = vmax.f32 %v7256_v49, 0.0  ;;  %v7269_v20 = vadd.f32 %v5015_v18, %v11063_v24  ;;  %v7258_v35 = vadd.f32 %v4808_v47, %v11047_v5  ;;  %v5017_v10 = vpop.f32.mrb[79].mxu1  ;;  %5703 = vmatprep.mubr.bf16.mxu1 %v5352_v61  ;;  %v8413_v49 = vld [vmem:[#allocation16 + $0xe0] sm:$0xff]  }
 0x607   : > { %v5276_v0 = vmax.f32 %v11159_v11, 0.0  ;;  %v11554_v63 = vmax.f32 %v11162_v44, 0.0  ;;  %v11171_v7 = vadd.f32 %v5017_v10, %v11068_v19  ;;  %5704 = vmatmul.mubr.bf16.gmra.mrb[88].mxu1 %v5351_v1 }
 0x608   : > { %v5322_v13 = vmax.f32 %v5274_v31, %v5275_v3  ;;  %v5281_v21 = vmax.f32 %v7269_v20, 0.0  ;;  %v5292_v2 = vmax.f32 %v7258_v35, 0.0  ;;  %7020 = vmatpush3.bf16.msra.mxu1 %v8410_v52  ;;  %v5333_v62 = vmax.f32 %v5285_v45, %v5286_v32 }
 0x609   : > { %v11175_v43 = vmax.f32 %v5275_v3, %v5276_v0  ;;  %v5282_v5 = vmax.f32 %v11171_v7, 0.0  ;;  %7021 = vmatprep.subr.bf16.mxu1 %v8411_v23  ;;  %v8414_v23 = vld [vmem:[#allocation16 + $0xa0] sm:$0xff]  }
 0x60a   : > { %v5328_v38 = vmax.f32 %v5280_v60, %v5281_v21  ;;  %v5339_v1 = vmax.f32 %v11554_v63, %v5292_v2 }
 0x60b   : > { %v11184_v31 = vmax.f32 %v5281_v21, %v5282_v5  ;;  %v5021_v61 = vpop.f32.mrb[80].mxu1 }
 0x60c   : > { %v7271_v52 = vadd.f32 %v5021_v61, %v11063_v24  ;;  %v5023_v18 = vpop.f32.mrb[81].mxu1  ;;  %v5358_v47 = vpack.c.bf16 %v5328_v38, %v5322_v13  ;;  %v5363_v3 = vpack.c.bf16 %v5339_v1, %v5333_v62  ;;  %7022 = vmatpush3.bf16.msra.mxu1 %v8412_v53 }
 0x60d   : > { %v11188_v20 = vadd.f32 %v5023_v18, %v11068_v19  ;;  %v5025_v35 = vpop.f32.mrb[82].mxu1  ;;  %7023 = vmatprep.subr.bf16.mxu1 %v8413_v49  ;;  %v5359_v60 = vpack.c.bf16 %v11184_v31, %v11175_v43  ;;  %v8418_v18 = vld [vmem:[#allocation16 + $0xb0] sm:$0xff]   ;;  %v11876_v43 = vmax.f32 %v11162_v44, 0.0 }
 0x60e   : > { %v5287_v10 = vmax.f32 %v7271_v52, 0.0  ;;  %v7273_v21 = vadd.f32 %v5025_v35, %v11063_v24  ;;  %v5027_v63 = vpop.f32.mrb[83].mxu1  ;;  %5711 = vmatprep.mubr.bf16.mxu1 %v5358_v47  ;;  %v8419_v47 = vld [vmem:[#allocation16 + $0xf8] sm:$0xff]   ;;  %v11874_v35 = vsub.s32 4, %v11872_v4 }
 0x60f   : > { %v5288_v61 = vmax.f32 %v11188_v20, 0.0  ;;  %v11195_v13 = vadd.f32 %v5027_v63, %v11068_v19  ;;  %5712 = vmatmul.mubr.bf16.gmra.mrb[92].mxu1 %v5357_v42  ;;  %v8415_v42 = vld [vmem:[#allocation16 + $0xe8] sm:$0xff]   ;;  %v8417_v63 = vld [vmem:[#allocation16 + $0xf0] sm:$0xff]  }
 0x610   : > { %v5334_v53 = vmax.f32 %v5286_v32, %v5287_v10  ;;  %v5293_v62 = vmax.f32 %v7273_v21, 0.0  ;;  %7024 = vmatpush3.bf16.msra.mxu1 %v8414_v23  ;;  %v8416_v32 = vld [vmem:[#allocation16 + $0xa8] sm:$0xff]   ;;  %v8421_v23 = vld [vmem:[#allocation16 + $0x140] sm:$0xff]  }
 0x611   : > { %v11199_v49 = vmax.f32 %v5287_v10, %v5288_v61  ;;  %v5294_v38 = vmax.f32 %v11195_v13, 0.0  ;;  %7025 = vmatprep.subr.bf16.mxu1 %v8415_v42  ;;  %v11211_v10 = vrot.slane %v11038_v6, %v11874_v35 }
 0x612   : > { %v5340_v1 = vmax.f32 %v5292_v2, %v5293_v62  ;;  %v8420_v2 = vld [vmem:[#allocation16 + $0xb8] sm:$0xff]  }
 0x613   : > { %v11204_v24 = vmax.f32 %v5293_v62, %v5294_v38 }
 0x614   : > { %v5364_v52 = vpack.c.bf16 %v5340_v1, %v5334_v53  ;;  %7026 = vmatpush3.bf16.msra.mxu1 %v8416_v32 }
 0x615   : > { %v5365_v19 = vpack.c.bf16 %v11204_v24, %v11199_v49  ;;  %7027 = vmatprep.subr.bf16.mxu1 %v8417_v63 }
 0x616   : > { %5719 = vmatprep.mubr.bf16.mxu1 %v5364_v52 }
 0x617   : > { %5720 = vmatmul.mubr.bf16.gmra.mrb[96].mxu1 %v5363_v3  ;;  %v11875_v3 = vsub.s32 5, %v11872_v4 }
 0x618   : > { %7028 = vmatpush3.bf16.msra.mxu1 %v8418_v18 }
 0x619   : > { %7029 = vmatprep.subr.bf16.mxu1 %v8419_v47  ;;  %v11216_v21 = vrot.slane %v11038_v6, %v11875_v3 }
 0x61c   : > { %7030 = vmatpush3.bf16.msra.mxu1 %v8420_v2 }
 0x61d   : > { %7055 = vmatprep.subr.bf16.mxu1 %v8421_v23 }
 0x6ab   : > { %v5210_v53 = vpop.f32.mrb[84].mxu0 }
 0x6ac   : > { %v7275_v62 = vadd.f32 %v5210_v53, %v11211_v10  ;;  %v5212_v1 = vpop.f32.mrb[85].mxu0 }
 0x6ad   : > { %v7276_v52 = vadd.f32 %v5212_v1, %v11216_v21  ;;  %v5214_v42 = vpop.f32.mrb[86].mxu0 }
 0x6ae   : > { %v5253_v32 = vmax.f32 %v7275_v62, 0.0  ;;  %v7277_v63 = vadd.f32 %v5214_v42, %v11211_v10  ;;  %v5216_v18 = vpop.f32.mrb[87].mxu0 }
 0x6af   : > { %v5254_v47 = vmax.f32 %v7276_v52, 0.0  ;;  %v7278_v2 = vadd.f32 %v5216_v18, %v11216_v21 }
 0x6b0   : > { %v5300_v4 = vmax.f32 %v5252_v51, %v5253_v32  ;;  %v5259_v23 = vmax.f32 %v7277_v63, 0.0 }
 0x6b1   : > { %v11224_v6 = vmax.f32 %v5253_v32, %v5254_v47  ;;  %v5260_v35 = vmax.f32 %v7278_v2, 0.0  ;;  %v11230_v53 = vmax.f32 %v5254_v47, %v5249_v15  ;;  %v8422_v32 = vld [vmem:[#allocation16 + $0x100] sm:$0xff]   ;;  %v8423_v15 = vld [vmem:[#allocation16 + $0x148] sm:$0xff]  }
 0x6b2   : > { %v5306_v3 = vmax.f32 %v5258_v25, %v5259_v23 }
 0x6b3   : > { %v11232_v62 = vmax.f32 %v5259_v23, %v5260_v35  ;;  %v11236_v1 = vmax.f32 %v5260_v35, %v5255_v26  ;;  %v5220_v52 = vpop.f32.mrb[88].mxu0  ;;  %v8424_v35 = vld [vmem:[#allocation16 + $0x108] sm:$0xff]  }
 0x6b4   : > { %v7279_v37 = vadd.f32 %v5220_v52, %v11211_v10  ;;  %v5222_v51 = vpop.f32.mrb[89].mxu0  ;;  %v5348_v42 = vpack.c.bf16 %v5306_v3, %v5300_v4 }
 0x6b5   : > { %v5349_v50 = vpack.c.bf16 %v11232_v62, %v11224_v6  ;;  %v7280_v25 = vadd.f32 %v5222_v51, %v11216_v21  ;;  %v5224_v12 = vpop.f32.mrb[90].mxu0  ;;  %v5350_v63 = vpack.c.bf16 %v11236_v1, %v11230_v53 }
 0x6b6   : > { %v5265_v18 = vmax.f32 %v7279_v37, 0.0  ;;  %v7281_v55 = vadd.f32 %v5224_v12, %v11211_v10  ;;  %v5226_v26 = vpop.f32.mrb[91].mxu0  ;;  %5760 = vmatprep.mubr.bf16.mxu1 %v5348_v42  ;;  %v8425_v37 = vld [vmem:[#allocation16 + $0x150] sm:$0xff]  }
 0x6b7   : > { %v5266_v47 = vmax.f32 %v7280_v25, 0.0  ;;  %v7282_v2 = vadd.f32 %v5226_v26, %v11216_v21  ;;  %5761 = vmatmul.mubr.bf16.vlgmr.msra.gmra.mrb[100].mxu1 %v5347_v14  ;;  %v8426_v25 = vld [vmem:[#allocation16 + $0x110] sm:$0xff]  }
 0x6b8   : > { %v5312_v4 = vmax.f32 %v5264_v56, %v5265_v18  ;;  %v5271_v23 = vmax.f32 %v7281_v55, 0.0  ;;  %7056 = vmatpush3.bf16.msra.mxu1 %v8422_v32 }
 0x6b9   : > { %v11251_v3 = vmax.f32 %v5265_v18, %v5266_v47  ;;  %v5272_v52 = vmax.f32 %v7282_v2, 0.0  ;;  %7057 = vmatprep.subr.bf16.mxu1 %v8423_v15  ;;  %v11257_v42 = vmax.f32 %v5266_v47, %v5261_v22  ;;  %v8428_v2 = vld [vmem:[#allocation16 + $0x118] sm:$0xff]  }
 0x6ba   : > { %v5318_v51 = vmax.f32 %v5270_v9, %v5271_v23 }
 0x6bb   : > { %v11259_v58 = vmax.f32 %v5271_v23, %v5272_v52  ;;  %v11263_v48 = vmax.f32 %v5272_v52, %v5267_v8  ;;  %v5230_v14 = vpop.f32.mrb[92].mxu0 }
 0x6bc   : > { %v7283_v34 = vadd.f32 %v5230_v14, %v11211_v10  ;;  %v5232_v56 = vpop.f32.mrb[93].mxu0  ;;  %7058 = vmatpush3.bf16.msra.mxu1 %v8424_v35  ;;  %v5354_v32 = vpack.c.bf16 %v5318_v51, %v5312_v4  ;;  %v8429_v35 = vld [vmem:[#allocation16 + $0x160] sm:$0xff]  }
 0x6bd   : > { %v7284_v59 = vadd.f32 %v5232_v56, %v11216_v21  ;;  %v5234_v9 = vpop.f32.mrb[94].mxu0  ;;  %7059 = vmatprep.subr.bf16.mxu1 %v8425_v37  ;;  %v5356_v22 = vpack.c.bf16 %v11263_v48, %v11257_v42  ;;  %v5355_v17 = vpack.c.bf16 %v11259_v58, %v11251_v3  ;;  %v8430_v14 = vld [vmem:[#allocation16 + $0x120] sm:$0xff]   ;;  %v8438_v58 = vld [vmem:[#allocation19 + $0x48] sm:$0xff]  }
 0x6be   : > { %v5277_v8 = vmax.f32 %v7283_v34, 0.0  ;;  %v7285_v12 = vadd.f32 %v5234_v9, %v11211_v10  ;;  %v5236_v15 = vpop.f32.mrb[95].mxu0  ;;  %5768 = vmatprep.mubr.bf16.mxu1 %v5354_v32  ;;  %v8437_v3 = vld [vmem:[#allocation19 + $0x40] sm:$0xff]  }
 0x6bf   : > { %v5278_v18 = vmax.f32 %v7284_v59, 0.0  ;;  %v7286_v55 = vadd.f32 %v5236_v15, %v11216_v21  ;;  %5769 = vmatmul.mubr.bf16.gmra.mrb[104].mxu1 %v5353_v27  ;;  %v8433_v15 = vld [vmem:[#allocation16 + $0x170] sm:$0xff]  }
 0x6c0   : > { %v5324_v26 = vmax.f32 %v5276_v0, %v5277_v8  ;;  %v5283_v47 = vmax.f32 %v7285_v12, 0.0  ;;  %7060 = vmatpush3.bf16.msra.mxu1 %v8426_v25 }
 0x6c1   : > { %v11278_v4 = vmax.f32 %v5277_v8, %v5278_v18  ;;  %v5284_v23 = vmax.f32 %v7286_v55, 0.0  ;;  %7061 = vmatprep.subr.bf16.mxu1 %v8427_v33  ;;  %v11284_v37 = vmax.f32 %v5278_v18, %v5273_v54  ;;  %v8432_v33 = vld [vmem:[#allocation16 + $0x128] sm:$0xff]  }
 0x6c2   : > { %v5330_v52 = vmax.f32 %v5282_v5, %v5283_v47  ;;  %v8431_v5 = vld [vmem:[#allocation16 + $0x168] sm:$0xff]  }
 0x6c3   : > { %v11286_v28 = vmax.f32 %v5283_v47, %v5284_v23  ;;  %v5332_v16 = vmax.f32 %v5284_v23, %v5279_v40  ;;  %v5240_v11 = vpop.f32.mrb[96].mxu0 }
 0x6c4   : > { %v7287_v27 = vadd.f32 %v5240_v11, %v11211_v10  ;;  %v5242_v0 = vpop.f32.mrb[97].mxu0  ;;  %7062 = vmatpush3.bf16.msra.mxu1 %v8428_v2  ;;  %v5360_v51 = vpack.c.bf16 %v5330_v52, %v5324_v26  ;;  %v8441_v11 = vld [vmem:[#allocation19 + $0x60] sm:$0xff]  }
 0x6c5   : > { %v7288_v34 = vadd.f32 %v5242_v0, %v11216_v21  ;;  %v5244_v7 = vpop.f32.mrb[98].mxu0  ;;  %7063 = vmatprep.subr.bf16.mxu1 %v8429_v35  ;;  %v5362_v41 = vpack.c.bf16 %v5332_v16, %v11284_v37  ;;  %v5361_v54 = vpack.c.bf16 %v11286_v28, %v11278_v4  ;;  %v8440_v16 = vld [vmem:[#allocation19 + $0x58] sm:$0xff]   ;;  %v8443_v0 = vld [vmem:[#allocation19 + $0x70] sm:$0xff]  }
 0x6c6   : > { %v5289_v56 = vmax.f32 %v7287_v27, 0.0  ;;  %v7289_v30 = vadd.f32 %v5244_v7, %v11211_v10  ;;  %v5246_v40 = vpop.f32.mrb[99].mxu0  ;;  %5776 = vmatprep.mubr.bf16.mxu1 %v5360_v51  ;;  %v8442_v27 = vld [vmem:[#allocation19 + $0x68] sm:$0xff]   ;;  %v8444_v51 = vld [vmem:[#allocation19 + $0x78] sm:$0xff]  }
 0x6c7   : > { %v5290_v32 = vmax.f32 %v7288_v34, 0.0  ;;  %v7290_v25 = vadd.f32 %v5246_v40, %v11216_v21  ;;  %5777 = vmatmul.mubr.bf16.gmra.mrb[108].mxu1 %v5359_v60  ;;  %v8434_v60 = vld [vmem:[#allocation16 + $0x130] sm:$0xff]   ;;  %v6794_v34 = vld [vmem:[#allocation17] ss:$0 sm:$0xff] }
 0x6c8   : > { %v5336_v59 = vmax.f32 %v5288_v61, %v5289_v56  ;;  %v5295_v9 = vmax.f32 %v7289_v30, 0.0  ;;  %7064 = vmatpush3.bf16.msra.mxu1 %v8430_v14  ;;  %v8435_v61 = vld [vmem:[#allocation16 + $0x178] sm:$0xff]   ;;  %v11329_v14 = vld [vmem:[#allocation19] sm:$0xff]  }
 0x6c9   : > { %v5337_v8 = vmax.f32 %v5289_v56, %v5290_v32  ;;  %v5296_v12 = vmax.f32 %v7290_v25, 0.0  ;;  %7065 = vmatprep.subr.bf16.mxu1 %v8431_v5  ;;  %v5338_v21 = vmax.f32 %v5290_v32, %v5285_v45 }
 0x6ca   : > { %v5342_v10 = vmax.f32 %v5294_v38, %v5295_v9 }
 0x6cb   : > { %v5343_v18 = vmax.f32 %v5295_v9, %v5296_v12  ;;  %v5344_v31 = vmax.f32 %v5296_v12, %v11876_v43 }
 0x6cc   : > { %7066 = vmatpush3.bf16.msra.mxu1 %v8432_v33  ;;  %v5366_v20 = vpack.c.bf16 %v5342_v10, %v5336_v59 }
 0x6cd   : > { %7067 = vmatprep.subr.bf16.mxu1 %v8433_v15  ;;  %v5368_v55 = vpack.c.bf16 %v5344_v31, %v5338_v21  ;;  %v5367_v26 = vpack.c.bf16 %v5343_v18, %v5337_v8 }
 0x6ce   : > { %5784 = vmatprep.mubr.bf16.mxu1 %v5366_v20 }
 0x6cf   : > { %5785 = vmatmul.mubr.bf16.gmra.mrb[112].mxu1 %v5365_v19 }
 0x6d0   : > { %7068 = vmatpush3.bf16.msra.mxu1 %v8434_v60  ;;  %5825 = vmatprep.mubr.bf16.mxu1 %v5350_v63 }
 0x6d1   : > { %7069 = vmatprep.subr.bf16.mxu1 %v8435_v61 }
 0x6d2   : > { %v6991_v45 = vpop.f32.mrb[84].mxu1 }
 0x6d3   : > { %v6992_v44 = vpop.f32.mrb[85].mxu1 }
 0x6d4   : > { %v6993_v13 = vadd.f32 %v6992_v44, %v6991_v45  ;;  %v6994_v38 = vpop.f32.mrb[86].mxu1  ;;  %7070 = vmatpush3.bf16.msra.mxu1 %v8436_v36 }
 0x6d5   : > { %v6995_v47 = vpop.f32.mrb[87].mxu1  ;;  %7177 = vmatprep.subr.bf16.mxu1 %v8437_v3 }
 0x6d6   : > { %v6996_v2 = vadd.f32 %v6995_v47, %v6994_v38 }
 0x6d7   : > { %5826 = vmatmul.mubr.bf16.vlgmr.msra.gmra.mrb[116].mxu1 %v5349_v50 }
 0x6d8   : > { %5833 = vmatprep.mubr.bf16.mxu1 %v5356_v22  ;;  %7178 = vmatpush3.bf16.msra.mxu1 %v8437_v3  ;;  %v5701_v40 = vadd.f32 %v6996_v2, %v6794_v34 }
 0x6d9   : > { %7179 = vmatprep.subr.bf16.mxu1 %v8438_v58 }
 0x6da   : > { %v6997_v49 = vpop.f32.mrb[88].mxu1 }
 0x6db   : > { %v6998_v24 = vpop.f32.mrb[89].mxu1 }
 0x6dc   : > { %v6999_v19 = vadd.f32 %v6998_v24, %v6997_v49  ;;  %v7000_v53 = vpop.f32.mrb[90].mxu1  ;;  %7180 = vmatpush3.bf16.msra.mxu1 %v8438_v58 }
 0x6dd   : > { %v7001_v1 = vpop.f32.mrb[91].mxu1 }
 0x6de   : > { %v7002_v63 = vadd.f32 %v7001_v1, %v7000_v53  ;;  %v5706_v8 = vadd.f32 %v6999_v19, %v6794_v34 }
 0x6df   : > { %5834 = vmatmul.mubr.bf16.gmra.mrb[120].mxu1 %v5355_v17  ;;  %v8439_v17 = vld [vmem:[#allocation19 + $0x50] sm:$0xff]  }
 0x6e0   : > { %5841 = vmatprep.mubr.bf16.mxu1 %v5362_v41  ;;  %7181 = vmatprep.subr.bf16.mxu1 %v8439_v17  ;;  %v5698_v41 = vadd.f32 %v6993_v13, %v6794_v34  ;;  %v5709_v21 = vadd.f32 %v7002_v63, %v6794_v34 }
 0x6e1   : > { %7182 = vmatpush3.bf16.msra.mxu1 %v8439_v17 }
 0x6e2   : > { %v7003_v4 = vpop.f32.mrb[92].mxu1  ;;  %7183 = vmatprep.subr.bf16.mxu1 %v8440_v16 }
 0x6e3   : > { %v7004_v23 = vpop.f32.mrb[93].mxu1 }
 0x6e4   : > { %v7005_v35 = vadd.f32 %v7004_v23, %v7003_v4  ;;  %v7006_v6 = vpop.f32.mrb[94].mxu1 }
 0x6e5   : > { %v7007_v62 = vpop.f32.mrb[95].mxu1  ;;  %7184 = vmatpush3.bf16.msra.mxu1 %v8440_v16 }
 0x6e6   : > { %v11323_v50 = vadd.f32 %v7007_v62, %v7006_v6  ;;  %7185 = vmatprep.subr.bf16.mxu1 %v8441_v11  ;;  %v5714_v61 = vadd.f32 %v7005_v35, %v6794_v34 }
 0x6e7   : > { %5842 = vmatmul.mubr.bf16.gmra.mrb[124].mxu1 %v5361_v54 }
 0x6e8   : > { %5849 = vmatprep.mubr.bf16.mxu1 %v5368_v55  ;;  %v5717_v45 = vadd.f32 %v11323_v50, %v6794_v34 }
 0x6e9   : > { %7186 = vmatpush3.bf16.msra.mxu1 %v8441_v11 }
 0x6ea   : > { %v7009_v42 = vpop.f32.mrb[96].mxu1  ;;  %7187 = vmatprep.subr.bf16.mxu1 %v8442_v27 }
 0x6eb   : > { %v7010_v48 = vpop.f32.mrb[97].mxu1 }
 0x6ec   : > { %v11325_v22 = vadd.f32 %v7010_v48, %v7009_v42  ;;  %v7012_v52 = vpop.f32.mrb[98].mxu1 }
 0x6ed   : > { %v7013_v37 = vpop.f32.mrb[99].mxu1  ;;  %7188 = vmatpush3.bf16.msra.mxu1 %v8442_v27 }
 0x6ee   : > { %v11327_v28 = vadd.f32 %v7013_v37, %v7012_v52  ;;  %7189 = vmatprep.subr.bf16.mxu1 %v8443_v0  ;;  %v5722_v49 = vadd.f32 %v11325_v22, %v6794_v34 }
 0x6ef   : > { %5850 = vmatmul.mubr.bf16.gmra.mrb[128].mxu1 %v5367_v26 }
 0x6f0   : > { %v5725_v1 = vadd.f32 %v11327_v28, %v6794_v34 }
 0x6f1   : > { %7190 = vmatpush3.bf16.msra.mxu1 %v8443_v0 }
 0x6f2   : > { %7191 = vmatprep.subr.bf16.mxu1 %v8444_v51 }
 0x6f5   : > { %7192 = vmatpush3.bf16.msra.mxu1 %v8444_v51 }
 0x6f6   : > { %7201 = vmatprep.subr.bf16.mxu1 %v11329_v14 }
 0x78a   : > { %v7031_v7 = vpop.f32.mrb[100].mxu1 }
 0x78b   : > { %v7032_v5 = vpop.f32.mrb[101].mxu1 }
 0x78c   : > { %v7033_v54 = vadd.f32 %v7032_v5, %v7031_v7  ;;  %v7034_v56 = vpop.f32.mrb[102].mxu1 }
 0x78d   : > { %v7035_v30 = vpop.f32.mrb[103].mxu1 }
 0x78e   : > { %v5763_v32 = vadd.f32 %v7033_v54, %v5698_v41  ;;  %v7036_v25 = vadd.f32 %v7035_v30, %v7034_v56 }
 0x790   : > { %v5766_v59 = vadd.f32 %v7036_v25, %v5701_v40 }
 0x792   : > { %v7037_v9 = vpop.f32.mrb[104].mxu1 }
 0x793   : > { %v7038_v33 = vpop.f32.mrb[105].mxu1 }
 0x794   : > { %v7039_v12 = vadd.f32 %v7038_v33, %v7037_v9  ;;  %v7040_v15 = vpop.f32.mrb[106].mxu1 }
 0x795   : > { %v7041_v10 = vpop.f32.mrb[107].mxu1 }
 0x796   : > { %v5771_v18 = vadd.f32 %v7039_v12, %v5706_v8  ;;  %v7042_v43 = vadd.f32 %v7041_v10, %v7040_v15  ;;  %v8447_v8 = vld [vmem:[#allocation19 + $0x10] sm:$0xff]  }
 0x798   : > { %v5774_v31 = vadd.f32 %v7042_v43, %v5709_v21 }
 0x79a   : > { %v7043_v20 = vpop.f32.mrb[108].mxu1 }
 0x79b   : > { %v7044_v60 = vpop.f32.mrb[109].mxu1 }
 0x79c   : > { %v7045_v55 = vadd.f32 %v7044_v60, %v7043_v20  ;;  %v7046_v26 = vpop.f32.mrb[110].mxu1  ;;  %v8448_v20 = vld [vmem:[#allocation19 + $0x18] sm:$0xff]  }
 0x79d   : > { %v7047_v36 = vpop.f32.mrb[111].mxu1 }
 0x79e   : > { %v5779_v44 = vadd.f32 %v7045_v55, %v5714_v61  ;;  %v7048_v13 = vadd.f32 %v7047_v36, %v7046_v26 }
 0x7a0   : > { %v5782_v38 = vadd.f32 %v7048_v13, %v5717_v45  ;;  %v8450_v13 = vld [vmem:[#allocation19 + $0x28] sm:$0xff]  }
 0x7a2   : > { %v7049_v47 = vpop.f32.mrb[112].mxu1 }
 0x7a3   : > { %v7050_v2 = vpop.f32.mrb[113].mxu1 }
 0x7a4   : > { %v7051_v24 = vadd.f32 %v7050_v2, %v7049_v47  ;;  %v7052_v19 = vpop.f32.mrb[114].mxu1  ;;  %v8452_v47 = vld [vmem:[#allocation19 + $0x38] sm:$0xff]   ;;  %v6859_v2 = vld [vmem:[#allocation20] ss:$0 sm:$0xff] }
 0x7a5   : > { %v7053_v53 = vpop.f32.mrb[115].mxu1 }
 0x7a6   : > { %v5787_v63 = vadd.f32 %v7051_v24, %v5722_v49  ;;  %v7054_v4 = vadd.f32 %v7053_v53, %v7052_v19 }
 0x7a8   : > { %v5790_v23 = vadd.f32 %v7054_v4, %v5725_v1 }
 0x7aa   : > { %v7071_v35 = vpop.f32.mrb[116].mxu1 }
 0x7ab   : > { %v7072_v6 = vpop.f32.mrb[117].mxu1 }
 0x7ac   : > { %v7073_v62 = vadd.f32 %v7072_v6, %v7071_v35  ;;  %v7074_v42 = vpop.f32.mrb[118].mxu1 }
 0x7ad   : > { %v7075_v50 = vpop.f32.mrb[119].mxu1 }
 0x7ae   : > { %v5828_v48 = vadd.f32 %v7073_v62, %v5763_v32  ;;  %v7076_v52 = vadd.f32 %v7075_v50, %v7074_v42  ;;  %v8446_v32 = vld [vmem:[#allocation19 + $0x8] sm:$0xff]  }
 0x7b0   : > { %v5831_v37 = vadd.f32 %v7076_v52, %v5766_v59  ;;  %v5858_v3 = vmax.f32 %v5828_v48, 0.0 }
 0x7b2   : > { %v5859_v58 = vmax.f32 %v5831_v37, 0.0  ;;  %v7077_v17 = vpop.f32.mrb[120].mxu1 }
 0x7b3   : > { %v7078_v22 = vpop.f32.mrb[121].mxu1 }
 0x7b4   : > { %v7079_v16 = vadd.f32 %v7078_v22, %v7077_v17  ;;  %v7080_v11 = vpop.f32.mrb[122].mxu1  ;;  %v5902_v27 = vpack.c.bf16 %v5859_v58, %v5858_v3 }
 0x7b5   : > { %v7081_v0 = vpop.f32.mrb[123].mxu1 }
 0x7b6   : > { %v5836_v28 = vadd.f32 %v7079_v16, %v5771_v18  ;;  %v7082_v51 = vadd.f32 %v7081_v0, %v7080_v11  ;;  %7193 = vmatprep.mubr.bf16.mxu1 %v5902_v27 }
 0x7b8   : > { %v5839_v34 = vadd.f32 %v7082_v51, %v5774_v31  ;;  %v5860_v7 = vmax.f32 %v5836_v28, 0.0 }
 0x7ba   : > { %v5861_v5 = vmax.f32 %v5839_v34, 0.0  ;;  %v7083_v41 = vpop.f32.mrb[124].mxu1 }
 0x7bb   : > { %v7084_v54 = vpop.f32.mrb[125].mxu1 }
 0x7bc   : > { %v5903_v56 = vpack.c.bf16 %v5861_v5, %v5860_v7  ;;  %v7085_v30 = vadd.f32 %v7084_v54, %v7083_v41  ;;  %v7086_v40 = vpop.f32.mrb[126].mxu1 }
 0x7bd   : > { %v7087_v25 = vpop.f32.mrb[127].mxu1 }
 0x7be   : > { %v5844_v59 = vadd.f32 %v7085_v30, %v5779_v44  ;;  %v7088_v9 = vadd.f32 %v7087_v25, %v7086_v40  ;;  %7194 = vmatmul.mubr.bf16.vlgmr.msra.gmra.mrb[132].mxu1 %v5903_v56 }
 0x7bf   : > { %7202 = vmatpush3.bf16.msra.mxu1 %v11329_v14  ;;  %v8449_v14 = vld [vmem:[#allocation19 + $0x20] sm:$0xff]  }
 0x7c0   : > { %v5847_v33 = vadd.f32 %v7088_v9, %v5782_v38  ;;  %7203 = vmatprep.subr.bf16.mxu1 %v8446_v32  ;;  %v5862_v12 = vmax.f32 %v5844_v59, 0.0  ;;  %v8451_v38 = vld [vmem:[#allocation19 + $0x30] sm:$0xff]  }
 0x7c2   : > { %v5863_v15 = vmax.f32 %v5847_v33, 0.0  ;;  %v7089_v10 = vpop.f32.mrb[128].mxu1 }
 0x7c3   : > { %7204 = vmatpush3.bf16.msra.mxu1 %v8446_v32  ;;  %v7090_v21 = vpop.f32.mrb[129].mxu1 }
 0x7c4   : > { %v7091_v18 = vadd.f32 %v7090_v21, %v7089_v10  ;;  %v7092_v43 = vpop.f32.mrb[130].mxu1  ;;  %7205 = vmatprep.subr.bf16.mxu1 %v8447_v8  ;;  %v5904_v31 = vpack.c.bf16 %v5863_v15, %v5862_v12 }
 0x7c5   : > { %v7093_v60 = vpop.f32.mrb[131].mxu1 }
 0x7c6   : > { %v5852_v61 = vadd.f32 %v7091_v18, %v5787_v63  ;;  %v7094_v55 = vadd.f32 %v7093_v60, %v7092_v43  ;;  %7197 = vmatprep.mubr.bf16.mxu1 %v5904_v31 }
 0x7c7   : > { %7206 = vmatpush3.bf16.msra.mxu1 %v8447_v8 }
 0x7c8   : > { %v5855_v26 = vadd.f32 %v7094_v55, %v5790_v23  ;;  %7207 = vmatprep.subr.bf16.mxu1 %v8448_v20  ;;  %v5864_v36 = vmax.f32 %v5852_v61, 0.0 }
 0x7ca   : > { %v5865_v45 = vmax.f32 %v5855_v26, 0.0 }
 0x7cb   : > { %7208 = vmatpush3.bf16.msra.mxu1 %v8448_v20 }
 0x7cc   : > { %7209 = vmatprep.subr.bf16.mxu1 %v8449_v14  ;;  %v5905_v44 = vpack.c.bf16 %v5865_v45, %v5864_v36 }
 0x7ce   : > { %7198 = vmatmul.mubr.bf16.gmra.mrb[136].mxu1 %v5905_v44 }
 0x7cf   : > { %7210 = vmatpush3.bf16.msra.mxu1 %v8449_v14  ;;  %7217 = vmatprep.mubr.bf16.mxu1 %v11005_v39 }
 0x7d0   : > { %7211 = vmatprep.subr.bf16.mxu1 %v8450_v13 }
 0x7d3   : > { %7212 = vmatpush3.bf16.msra.mxu1 %v8450_v13 }
 0x7d4   : > { %7213 = vmatprep.subr.bf16.mxu1 %v8451_v38 }
 0x7d7   : > { %7214 = vmatpush3.bf16.msra.mxu1 %v8451_v38 }
 0x7d8   : > { %7215 = vmatprep.subr.bf16.mxu1 %v8452_v47 }
 0x7db   : > { %7216 = vmatpush3.bf16.msra.mxu1 %v8452_v47 }
 0x7de   : > { %7218 = vmatmul.mubr.bf16.vlgmr.msra.gmra.mrb[132].mxu1 %v11008_v57 }
 0x7df   : > { %7221 = vmatprep.mubr.bf16.mxu1 %v11014_v29 }
 0x7e6   : > { %7222 = vmatmul.mubr.bf16.gmra.mrb[136].mxu1 %v11016_v46 }
 0x8b1   : > { %v7219_v49 = vpop.f32.mrb[132].mxu1 }
 0x8b2   : > { %v6141_v39 = vadd.f32 %v7219_v49, %v6859_v2  ;;  %v6101_v24 = vpop.f32.mrb[133].mxu1 }
 0x8b3   : > { %v6139_v19 = vadd.f32 %v6859_v2, %v6101_v24  ;;  %v7220_v53 = vpop.f32.mrb[134].mxu1 }
 0x8b4   : > { %6149 = vst [vmem:[%s597_s4 + $0x10] sm:$0xff] %v6141_v39  ;;  %v6142_v1 = vadd.f32 %v7220_v53, %v6859_v2  ;;  %v6104_v63 = vpop.f32.mrb[135].mxu1 }
 0x8b5   : > { %6147 = vst [vmem:[%s597_s4] sm:$0xff] %v6139_v19  ;;  %v6140_v57 = vadd.f32 %v6859_v2, %v6104_v63 }
 0x8b6   : > { %6150 = vst [vmem:[%s597_s4 + $0x18] sm:$0xff] %v6142_v1 }
 0x8b7   : > { %6148 = vst [vmem:[%s597_s4 + $0x8] sm:$0xff] %v6140_v57 }
 0x8b9   : > { %v7223_v29 = vpop.f32.mrb[136].mxu1 }
 0x8ba   : > { %v6145_v46 = vadd.f32 %v7223_v29, %v6859_v2  ;;  %v6117_v4 = vpop.f32.mrb[137].mxu1 }
 0x8bb   : > { %v6143_v23 = vadd.f32 %v6859_v2, %v6117_v4  ;;  %v7224_v35 = vpop.f32.mrb[138].mxu1 }
 0x8bc   : > { %6153 = vst [vmem:[%s597_s4 + $0x30] sm:$0xff] %v6145_v46  ;;  %v6146_v6 = vadd.f32 %v7224_v35, %v6859_v2  ;;  %v6120_v62 = vpop.f32.mrb[139].mxu1 }
 0x8bd   : > { %6151 = vst [vmem:[%s597_s4 + $0x20] sm:$0xff] %v6143_v23  ;;  %v6144_v42 = vadd.f32 %v6859_v2, %v6120_v62 }
 0x8be   : > { %6154 = vst [vmem:[%s597_s4 + $0x38] sm:$0xff] %v6146_v6 }
 0x8bf   : > { %6152 = vst [vmem:[%s597_s4 + $0x28] sm:$0xff] %v6144_v42 }
 0x8c0   : > { %8803 = shalt.err (!%p8800_p3)
}
 0x8c1   : > { %s8804_s23 = scalar_lea.hbm %s11349_s25, 1024  ;;  %s8808_s21 = scalar_lea.hbm %s11878_s15, 2048 }
 0x8c2   : > { %p8805_p4 = scmp.ne.s32.totalorder %s11349_s25, %s8804_s23  ;;  %p8809_p11 = scmp.lt.u32.totalorder %s11349_s25, %s11878_s15 }
 0x8c3   : > { %p8810_p13 = scmp.lt.u32.totalorder %s8808_s21, %s8804_s23  ;;  %p8812_p0 = scmp.lt.u32.totalorder %s8804_s23, %s11349_s25 }
 0x8c4   : > { %p8806_p7 = pnand %p8805_p4, %p11879_p6 }
 0x8c5   : > { %p8811_p1 = por %p8810_p13, %p8809_p11 }
 0x8c6   : > { %p8807_p8 = pneg %p8806_p7 }
 0x8c7   : > { %p8813_p5 = por %p8812_p0, %p8811_p1 }
 0x8c9   : > { %p8814_p9 = pnand %p8813_p5, %p8807_p8 }
 0x8cb   : > { %8817 = shalt.err (!%p8814_p9)
}
 0x8cc   : > { %s8906_s3 = smov 128   ;;  %s8907_s4 = smov 8  }
 0x8cd   : > { %7459 = dma.vmem_to_hbm [thread:$0]  (%p11879_p6), %s11344_s17, 1024, %s11349_s25, %s11353_s29, %s8906_s3, %s8906_s3, %s8907_s4  }
 0x8ce PF: > { %s11880_s19 = sld [smem:[#allocation33_spill]]  ;;  %s11881_s22 = sld [smem:[#allocation31_spill]] }
 0x8cf   : > { %s11882_s24 = sld [smem:[#allocation36_spill]] }
 0x8d4   : > { %p7526_p12 = scmp.ge.s32.totalorder %s11880_s19, 2  ;;  %s6184_s28 = sand.u32 1, %s11881_s22  }
 0x8d5   : > { %p11883_p10 = scmp.ne.s32.totalorder %s11882_s24, 0  ;;  %s6185_s16 = scalar_lea.sflag [#allocation4], %s6184_s28 }
 0x8d7   : > { %p7499_p2 = pnand %p7526_p12, %p11883_p10 }
 0x8d9   : > { %8863 = dma.done.wait (!%p7499_p2), %s6185_s16, 1024  }
 0x8da   : > { %8865 = vsyncadd (!%p7499_p2), %s6185_s16, 4294966272  ;;  %s11884_s28 = sld [smem:[#allocation34_spill]]  ;;  %s11885_s2 = sld [smem:[#allocation32_spill]] }
 0x8db   : > { %s11886_s27 = sld [smem:[#allocation35_spill]]  ;;  %s11887_s25 = smov %s8872_s26 }
 0x8e0   : > { %p30_p3 = scmp.ge.s32.totalorder %s11884_s28, 4   ;;  %s11888_s26 = smov %s11885_s2 }
 0x8e2   :  { %32 = sbr.rel (!%p30_p3) target bundleno = 16 (0x10), region = 156 }
 0x8e9   :  { %6190 = vsyncpa [#allocation3], 1 }
 0x8ea   :  { %6192 = vsyncpa [#allocation3 + $0x1], 1 }
 0x8eb   :  { %6193 = vsyncpa [#allocation6], 1 }
 0x8ec   :  { %6194 = vsyncpa [#allocation9], 1 }
 0x8ed   :  { %6195 = vsyncpa [#allocation12], 1 }
 0x8ee   :  { %6196 = vsyncpa [#allocation15], 1 }
 0x8ef   :  { %6197 = vsyncpa [#allocation18], 1 }
 0x8f0   :  { %6198 = vsyncpa [#allocation21], 1 }
 0x8f1   :  { %6199 = vsyncpa [#allocation4], 1 }
 0x8f2   :  { %6201 = vsyncpa [#allocation4 + $0x1], 1 }

</bundles_post_ra>
